<compile_context>
chip_gen: v6e
topology: v6e:2x2x1
jax: 0.10.0
libtpu: 0.0.40
codegen_flags: <defaults>
</compile_context>

<pallas_src>
import functools

import jax
import jax.numpy as jnp
from jax import lax
from jax.experimental import pallas as pl
from jax.experimental.pallas import tpu as pltpu


# ----------------------------- tiling helpers -----------------------------

def _pick_row_tile(W, H, row_bytes, budget=4 << 20):
    """Largest row tile tw with tw | W, (tw*H) % 8 == 0 (or tw == W), fitting `budget`."""
    cands = [t for t in range(1, W + 1)
             if W % t == 0 and ((t * H) % 8 == 0 or t == W)]
    fitting = [t for t in cands if t * row_bytes <= budget]
    return max(fitting) if fitting else min(cands)


def _pick_lane_tile(S, target=4096):
    """Largest multiple-of-128 divisor of S (<= target); falls back to full S."""
    cands = [t for t in range(128, min(S, target) + 1, 128) if S % t == 0]
    return max(cands) if cands else S


def _swing_rows(K):
    """Official DSC 'swing' accumulation as per-output-tap source lists (center -> 0)."""
    center = K // 2
    rows = [None] * K
    rows[center] = []
    for idx in range(1, center):
        rows[center + idx] = rows[center + idx - 1] + [center + idx]
        rows[center - idx] = rows[center - idx + 1] + [center - idx]
    for p in range(K):
        if rows[p] is None:
            rows[p] = [p]
    return [tuple(r) for r in rows]


# ----------------------------- Pallas kernels -----------------------------

def _offset_conv_kernel(x_ref, w_ref, b_ref, o_ref, *, H):
    # x_ref: (1, tw, H+2, 3*Cin) row-stacked, column-padded input tile
    # w_ref: (3, 3*Cin, K) per-horizontal-shift weight matrices; b_ref: (1, K)
    # o_ref: (1, tw*H, K)
    tw = x_ref.shape[1]
    C3 = x_ref.shape[3]
    K = w_ref.shape[2]
    xb = x_ref[0]                                             # (tw, H+2, 3*Cin)
    acc = jnp.zeros((tw * H, K), jnp.float32)
    for dx in range(3):                                       # horizontal taps, fused im2col
        a = xb[:, dx:dx + H, :].reshape(tw * H, C3)
        acc = acc + jnp.dot(a, w_ref[dx], preferred_element_type=jnp.float32)
    o_ref[0] = (acc + b_ref[...]).astype(o_ref.dtype)


def offset_conv3x3(xrs, w_all, bias, H):
    """Fused 3x3 conv (y-offset channels only). xrs: [B, W, H+2, 3*Cin] -> [B, W*H, K]."""
    B, W, Hp2, C3 = xrs.shape
    K = w_all.shape[-1]
    S = W * H
    tw = _pick_row_tile(W, H, Hp2 * C3 * 4)
    kern = functools.partial(_offset_conv_kernel, H=H)
    return pl.pallas_call(
        kern,
        out_shape=jax.ShapeDtypeStruct((B, S, K), jnp.float32),
        grid=(B, W // tw),
        in_specs=[
            pl.BlockSpec((1, tw, Hp2, C3), lambda b, i: (b, i, 0, 0)),
            pl.BlockSpec((3, C3, K), lambda b, i: (0, 0, 0)),
            pl.BlockSpec((1, K), lambda b, i: (0, 0)),
        ],
        out_specs=pl.BlockSpec((1, tw * H, K), lambda b, i: (b, i, 0)),
        compiler_params=pltpu.CompilerParams(
            dimension_semantics=("parallel", "parallel")),
    )(xrs, w_all, bias)


def _coord_kernel(off_ref, scale_ref, shift_ref, col_ref, wb_ref,
                  wy0_ref, wy1_ref, i0_ref, i1_ref,
                  *, swing_rows, W, Hpad, extend_scope):
    # Fused BN-normalize + tanh + snake swing + y-coordinate -> interpolation weights /
    # flattened gather indices.  Lane-dense [1, K, ts] blocks (spatial on lanes).
    t = jnp.tanh(off_ref[...] * scale_ref[...] + shift_ref[...])      # (1, K, ts)
    rows = []
    for src in swing_rows:
        if not src:
            rows.append(jnp.zeros_like(t[:, :1, :]))                   # pinned center tap
        else:
            r = t[:, src[0]:src[0] + 1, :]
            for j in src[1:]:
                r = r + t[:, j:j + 1, :]
            rows.append(r)
    y_cum = jnp.concatenate(rows, axis=1) if len(rows) > 1 else rows[0]
    y = wb_ref[...] + extend_scope * y_cum                             # (1, K, ts)
    y0f = jnp.floor(y)
    y0i = y0f.astype(jnp.int32)
    y0g = jnp.clip(y0i, 0, W - 1)                                      # gather rows
    y1g = jnp.clip(y0i + 1, 0, W - 1)
    # interpolation weights follow the reference DSC: coords clamped to [0, W] (max+1)
    wy0_ref[...] = jnp.clip(y0f + 1.0, 0.0, float(W)) - y
    wy1_ref[...] = y - jnp.clip(y0f, 0.0, float(W))
    col = col_ref[...]                                                 # padded column h + k
    i0_ref[...] = y0g * Hpad + col
    i1_ref[...] = y1g * Hpad + col


def snake_coords(conv_t, scale, shift, col_base, w_base, *, W, Hpad, K, extend_scope):
    B, _, S = conv_t.shape
    ts = _pick_lane_tile(S)
    kern = functools.partial(_coord_kernel, swing_rows=_swing_rows(K), W=W,
                             Hpad=Hpad, extend_scope=extend_scope)
    blk = pl.BlockSpec((1, K, ts), lambda b, i: (b, 0, i))
    cblk = pl.BlockSpec((1, K, ts), lambda b, i: (0, 0, i))
    out_shapes = (jax.ShapeDtypeStruct((B, K, S), jnp.float32),
                  jax.ShapeDtypeStruct((B, K, S), jnp.float32),
                  jax.ShapeDtypeStruct((B, K, S), jnp.int32),
                  jax.ShapeDtypeStruct((B, K, S), jnp.int32))
    return pl.pallas_call(
        kern,
        out_shape=out_shapes,
        grid=(B, S // ts),
        in_specs=[
            blk,
            pl.BlockSpec((1, K, 1), lambda b, i: (0, 0, 0)),
            pl.BlockSpec((1, K, 1), lambda b, i: (0, 0, 0)),
            cblk,
            pl.BlockSpec((1, 1, ts), lambda b, i: (0, 0, i)),
        ],
        out_specs=[blk, blk, blk, blk],
        compiler_params=pltpu.CompilerParams(
            dimension_semantics=("parallel", "parallel")),
    )(conv_t, scale, shift, col_base, w_base)


def _matmul_bias_kernel(a_ref, w_ref, b_ref, o_ref):
    acc = jnp.dot(a_ref[...], w_ref[...], preferred_element_type=jnp.float32)
    o_ref[...] = (acc + b_ref[...]).astype(o_ref.dtype)


def matmul_bias(a, w, b, tile_m=512):
    """A[M,K] @ W[K,N] + b[N] on the MXU, tiled over M (M padded to a tile multiple)."""
    M, Kd = a.shape
    _, N = w.shape
    tm = min(tile_m, M)
    Mp = pl.cdiv(M, tm) * tm
    if Mp != M:
        a = jnp.pad(a, ((0, Mp - M), (0, 0)))
    # NOTE: N (= Cout or K) is small enough to keep un-tiled; tile N as well if Cout grows.
    out = pl.pallas_call(
        _matmul_bias_kernel,
        out_shape=jax.ShapeDtypeStruct((Mp, N), jnp.float32),
        grid=(Mp // tm,),
        in_specs=[
            pl.BlockSpec((tm, Kd), lambda i: (i, 0)),
            pl.BlockSpec((Kd, N), lambda i: (0, 0)),
            pl.BlockSpec((1, N), lambda i: (0, 0)),
        ],
        out_specs=pl.BlockSpec((tm, N), lambda i: (i, 0)),
        compiler_params=pltpu.CompilerParams(dimension_semantics=("parallel",)),
    )(a.astype(jnp.float32), w.astype(jnp.float32), b.reshape(1, N).astype(jnp.float32))
    return out if Mp == M else out[:M]


def _gn_relu_kernel(x_ref, g_ref, b_ref, grp_ref, o_ref, *, inv_n, eps):
    # GroupNorm (per batch x group, biased var) + ReLU on a [1, S, C] block.
    # Group stats via a constant channel->group membership matmul (no in-kernel reshapes).
    x = x_ref[0]                                                  # (S, C) f32
    grp = grp_ref[...]                                            # (C, C)
    csum = jnp.sum(x, axis=0, keepdims=True)                      # (1, C)
    mean_c = jnp.dot(csum, grp, preferred_element_type=jnp.float32) * inv_n
    xc = x - mean_c
    vsum = jnp.sum(xc * xc, axis=0, keepdims=True)
    var_c = jnp.dot(vsum, grp, preferred_element_type=jnp.float32) * inv_n
    scale = g_ref[...] * lax.rsqrt(var_c + eps)
    shift = b_ref[...] - mean_c * scale
    o_ref[0] = jnp.maximum(x * scale + shift, 0.0).astype(o_ref.dtype)


def groupnorm_relu(x_bsc, gamma, beta, num_groups, eps=1e-5):
    # TODO(synk): for very large W*H*Cout this per-batch single-block GN should become a
    # two-pass tiled reduction; fine at typical per-image activation sizes.
    B, S, C = x_bsc.shape
    Cg = C // num_groups
    cid = jnp.arange(C) // Cg
    grp = (cid[:, None] == cid[None, :]).astype(jnp.float32)      # (C, C)
    kern = functools.partial(_gn_relu_kernel, inv_n=1.0 / float(S * Cg), eps=eps)
    return pl.pallas_call(
        kern,
        out_shape=jax.ShapeDtypeStruct((B, S, C), x_bsc.dtype),
        grid=(B,),
        in_specs=[
            pl.BlockSpec((1, S, C), lambda b: (b, 0, 0)),
            pl.BlockSpec((1, C), lambda b: (0, 0)),
            pl.BlockSpec((1, C), lambda b: (0, 0)),
            pl.BlockSpec((C, C), lambda b: (0, 0)),
        ],
        out_specs=pl.BlockSpec((1, S, C), lambda b: (b, 0, 0)),
        compiler_params=pltpu.CompilerParams(dimension_semantics=("parallel",)),
    )(x_bsc, gamma.reshape(1, C), beta.reshape(1, C), grp)


# ----------------------------- Parameters & forward -----------------------------

def init_params(key, in_planes, out_planes, kernel_size):
    K = kernel_size
    k1, k2, k3, k4 = jax.random.split(key, 4)

    def uinit(k, shape, fan_in):
        bound = 1.0 / jnp.sqrt(float(fan_in))
        return jax.random.uniform(k, shape, jnp.float32, -bound, bound)

    return dict(
        w_off=uinit(k1, (2 * K, in_planes, 3, 3), in_planes * 9),   # offset_conv
        b_off=uinit(k2, (2 * K,), in_planes * 9),
        bn_gamma=jnp.ones((2 * K,), jnp.float32),                   # BatchNorm2d defaults
        bn_beta=jnp.zeros((2 * K,), jnp.float32),
        w_dsc=uinit(k3, (out_planes, in_planes, K, 1), in_planes * K),  # dsc_conv_x
        b_dsc=uinit(k4, (out_planes,), in_planes * K),
        gn_gamma=jnp.ones((out_planes,), jnp.float32),              # GroupNorm defaults
        gn_beta=jnp.zeros((out_planes,), jnp.float32),
    )


def single_conv3d_block_dsc(x, params, kernel_size=3, extend_scope=1.0):
    # layout: x is NCHW [B, C_in, W, H]; returns NCHW [B, C_out, W, H].
    B, Cin, W, H = x.shape
    K = kernel_size
    center = K // 2
    S = W * H
    f32 = jnp.float32
    x_nhwc = jnp.transpose(x, (0, 2, 3, 1)).astype(f32)               # [B, W, H, Cin]

    # ---- offset branch: fused 3x3 conv, y-offset channels only (Pallas) ----
    # Row-stack the 3 vertical taps once (3x materialization instead of 9x im2col);
    # the 3 horizontal taps are sliced from the padded columns inside the kernel.
    xp = jnp.pad(x_nhwc, ((0, 0), (1, 1), (1, 1), (0, 0)))
    xrs = jnp.concatenate([xp[:, d:d + W] for d in range(3)], axis=-1)  # [B, W, H+2, 3*Cin]
    w_off_k = params["w_off"][:K]                                     # drop unused x-offsets
    w_all = jnp.transpose(w_off_k, (3, 2, 1, 0)).reshape(3, 3 * Cin, K)
    conv = offset_conv3x3(xrs, w_all, params["b_off"][:K].reshape(1, K), H)   # [B, S, K]

    # BatchNorm (training-mode batch stats, as in the reference) folded to scale/shift.
    # (tiny [K]-vector cross-tile reduction left to XLA == the "two-pass BN" structure)
    mean = jnp.mean(conv, axis=(0, 1))
    var = jnp.mean(jnp.square(conv - mean), axis=(0, 1))
    scale = params["bn_gamma"][:K] * lax.rsqrt(var + 1e-5)
    shift = params["bn_beta"][:K] - mean * scale

    # ---- fused BN + tanh + snake coordinates (lane-dense [B, K, S] layout, Pallas) ----
    conv_t = jnp.transpose(conv, (0, 2, 1))                           # tiny (M,K)->(K,M)
    Hpad = H + 2 * center
    s_idx = jnp.arange(S, dtype=jnp.int32)
    col_base = (s_idx % H)[None, None, :] + jnp.arange(K, dtype=jnp.int32)[None, :, None]
    w_base = (s_idx // H).astype(f32)[None, None, :]
    wy0, wy1, i0, i1 = snake_coords(
        conv_t, scale.reshape(1, K, 1), shift.reshape(1, K, 1),
        col_base, w_base, W=W, Hpad=Hpad, K=K, extend_scope=extend_scope)

    # ---- deformable sampling: 2 gathers along W + linear blend.  The integer x-taps
    # come from zero-padded columns (reference DSC out-of-range behaviour). ----
    # TODO(synk): data-dependent gather stays in plain JAX (no clean Pallas TPU gather).
    xpH = jnp.pad(x_nhwc, ((0, 0), (0, 0), (center, center), (0, 0)))  # [B, W, Hpad, Cin]
    xflat = xpH.reshape(B, W * Hpad, Cin)

    def flat(v):   # [B, K, S] -> [B, S*K]  (s-major, k-minor)
        return jnp.transpose(v, (0, 2, 1)).reshape(B, S * K)

    g0 = jnp.take_along_axis(xflat, flat(i0)[..., None], axis=1, mode="clip")
    g1 = jnp.take_along_axis(xflat, flat(i1)[..., None], axis=1, mode="clip")
    sampled = g0 * flat(wy0)[..., None] + g1 * flat(wy1)[..., None]    # [B, S*K, Cin]

    # ---- snake conv: Conv2d(Cin, Cout, (K,1), stride=(K,1)) == per-pixel (k,c) matmul ----
    Cout = params["w_dsc"].shape[0]
    a = sampled.reshape(B * S, K * Cin)
    w_dsc_mat = jnp.transpose(params["w_dsc"][..., 0], (2, 1, 0)).reshape(K * Cin, Cout)
    y = matmul_bias(a, w_dsc_mat, params["b_dsc"])                     # [B*S, Cout]

    # ---- GroupNorm(Cout // 4) + ReLU, transpose-free [B, S, Cout] layout (Pallas) ----
    out = groupnorm_relu(y.reshape(B, S, Cout), params["gn_gamma"],
                         params["gn_beta"], Cout // 4)                 # [B, S, Cout]
    return jnp.transpose(out.reshape(B, W, H, Cout), (0, 3, 1, 2))     # back to NCHW


if __name__ == "__main__":
    B, Cin, Cout, W, H, K = 2, 4, 8, 16, 16, 3
    key = jax.random.PRNGKey(0)
    kx, kp = jax.random.split(key)
    x = jax.random.normal(kx, (B, Cin, W, H), dtype=jnp.float32)
    params = init_params(kp, Cin, Cout, K)

    fwd = jax.jit(functools.partial(single_conv3d_block_dsc, kernel_size=K))
    y = fwd(x, params)
    jax.block_until_ready(y)
    assert y.shape == (B, Cout, W, H), y.shape
    assert bool(jnp.all(jnp.isfinite(y))) and bool(jnp.all(y >= 0.0))
    print("KERNEL_OK")
</pallas_src>

<mosaic_0001>
module attributes {stable_mosaic.version = 11 : i64} {
  func.func @_offset_conv_kernel(%arg0: i32, %arg1: i32, %arg2: memref<1x16x18x12xf32, #tpu.memory_space<vmem>>, %arg3: memref<3x12x3xf32, #tpu.memory_space<vmem>>, %arg4: memref<1x3xf32, #tpu.memory_space<vmem>>, %arg5: memref<1x256x3xf32, #tpu.memory_space<vmem>>) attributes {dimension_semantics = [#tpu.dimension_semantics<parallel>, #tpu.dimension_semantics<parallel>], iteration_bounds = array<i64: 2, 1>, scalar_prefetch = 0 : i64, scratch_operands = 0 : i64, tpu.core_type = #tpu.core_type<tc>, window_params = [{transform_indices = @transform_0, window_bounds = array<i64: 1, 16, 18, 12>}, {pipeline_mode = #tpu.pipeline_mode<synchronous>, transform_indices = @transform_1, window_bounds = array<i64: 3, 12, 3>}, {pipeline_mode = #tpu.pipeline_mode<synchronous>, transform_indices = @transform_2, window_bounds = array<i64: 1, 3>}, {transform_indices = @transform_3, window_bounds = array<i64: 1, 256, 3>}]} {
    %c0 = arith.constant 0 : index
    %c0_0 = arith.constant 0 : index
    %c0_1 = arith.constant 0 : index
    %c0_2 = arith.constant 0 : index
    %0 = vector.load %arg2[%c0, %c0_0, %c0_1, %c0_2] : memref<1x16x18x12xf32, #tpu.memory_space<vmem>>, vector<1x16x18x12xf32>
    %1 = vector.shape_cast %0 : vector<1x16x18x12xf32> to vector<16x18x12xf32>
    %cst = arith.constant 0.000000e+00 : f32
    %2 = vector.broadcast %cst : f32 to vector<256x3xf32>
    %3 = vector.extract_strided_slice %1 {offsets = [0, 0, 0], sizes = [16, 16, 12], strides = [1, 1, 1]} : vector<16x18x12xf32> to vector<16x16x12xf32>
    %4 = vector.shape_cast %3 : vector<16x16x12xf32> to vector<256x12xf32>
    %c0_3 = arith.constant 0 : index
    %c0_4 = arith.constant 0 : index
    %c0_5 = arith.constant 0 : index
    %5 = vector.load %arg3[%c0_3, %c0_4, %c0_5] : memref<3x12x3xf32, #tpu.memory_space<vmem>>, vector<1x12x3xf32>
    %6 = vector.shape_cast %5 : vector<1x12x3xf32> to vector<12x3xf32>
    %cst_6 = arith.constant dense<0.000000e+00> : vector<256x3xf32>
    %7 = tpu.matmul %4, %6, %cst_6 {dimension_numbers = #tpu.dot_dimension_numbers<[1], [0], [0], [1], [0, 0, 1, 1], [], []>} : vector<256x12xf32>, vector<12x3xf32>, vector<256x3xf32> -> vector<256x3xf32>
    %8 = arith.addf %2, %7 : vector<256x3xf32>
    %9 = vector.extract_strided_slice %1 {offsets = [0, 1, 0], sizes = [16, 16, 12], strides = [1, 1, 1]} : vector<16x18x12xf32> to vector<16x16x12xf32>
    %10 = vector.shape_cast %9 : vector<16x16x12xf32> to vector<256x12xf32>
    %c1 = arith.constant 1 : index
    %c0_7 = arith.constant 0 : index
    %c0_8 = arith.constant 0 : index
    %11 = vector.load %arg3[%c1, %c0_7, %c0_8] : memref<3x12x3xf32, #tpu.memory_space<vmem>>, vector<1x12x3xf32>
    %12 = vector.shape_cast %11 : vector<1x12x3xf32> to vector<12x3xf32>
    %cst_9 = arith.constant dense<0.000000e+00> : vector<256x3xf32>
    %13 = tpu.matmul %10, %12, %cst_9 {dimension_numbers = #tpu.dot_dimension_numbers<[1], [0], [0], [1], [0, 0, 1, 1], [], []>} : vector<256x12xf32>, vector<12x3xf32>, vector<256x3xf32> -> vector<256x3xf32>
    %14 = arith.addf %8, %13 : vector<256x3xf32>
    %15 = vector.extract_strided_slice %1 {offsets = [0, 2, 0], sizes = [16, 16, 12], strides = [1, 1, 1]} : vector<16x18x12xf32> to vector<16x16x12xf32>
    %16 = vector.shape_cast %15 : vector<16x16x12xf32> to vector<256x12xf32>
    %c2 = arith.constant 2 : index
    %c0_10 = arith.constant 0 : index
    %c0_11 = arith.constant 0 : index
    %17 = vector.load %arg3[%c2, %c0_10, %c0_11] : memref<3x12x3xf32, #tpu.memory_space<vmem>>, vector<1x12x3xf32>
    %18 = vector.shape_cast %17 : vector<1x12x3xf32> to vector<12x3xf32>
    %cst_12 = arith.constant dense<0.000000e+00> : vector<256x3xf32>
    %19 = tpu.matmul %16, %18, %cst_12 {dimension_numbers = #tpu.dot_dimension_numbers<[1], [0], [0], [1], [0, 0, 1, 1], [], []>} : vector<256x12xf32>, vector<12x3xf32>, vector<256x3xf32> -> vector<256x3xf32>
    %20 = arith.addf %14, %19 : vector<256x3xf32>
    %c0_13 = arith.constant 0 : index
    %c0_14 = arith.constant 0 : index
    %21 = vector.load %arg4[%c0_13, %c0_14] : memref<1x3xf32, #tpu.memory_space<vmem>>, vector<1x3xf32>
    %22 = vector.broadcast %21 : vector<1x3xf32> to vector<256x3xf32>
    %23 = arith.addf %20, %22 : vector<256x3xf32>
    %c0_15 = arith.constant 0 : index
    %c0_16 = arith.constant 0 : index
    %c0_17 = arith.constant 0 : index
    %24 = vector.load %arg5[%c0_15, %c0_16, %c0_17] : memref<1x256x3xf32, #tpu.memory_space<vmem>>, vector<1x256x3xf32>
    %25 = vector.shape_cast %24 : vector<1x256x3xf32> to vector<256x3xf32>
    %26 = vector.shape_cast %23 : vector<256x3xf32> to vector<1x256x3xf32>
    tpu.vector_store %arg5[%c0_15, %c0_16, %c0_17], %26 {strides = array<i32>} : memref<1x256x3xf32, #tpu.memory_space<vmem>>, vector<1x256x3xf32>,
    return
  }
  func.func @transform_0(%arg0: i32, %arg1: i32) -> (i32, i32, i32, i32) {
    %c0_i32 = arith.constant 0 : i32
    %c0_i32_0 = arith.constant 0 : i32
    %c0_i32_1 = arith.constant 0 : i32
    return %arg0, %arg1, %c0_i32, %c0_i32_0 : i32, i32, i32, i32
  }
  func.func @transform_1(%arg0: i32, %arg1: i32) -> (i32, i32, i32) {
    %c0_i32 = arith.constant 0 : i32
    %c0_i32_0 = arith.constant 0 : i32
    %c0_i32_1 = arith.constant 0 : i32
    %c0_i32_2 = arith.constant 0 : i32
    return %c0_i32, %c0_i32_0, %c0_i32_1 : i32, i32, i32
  }
  func.func @transform_2(%arg0: i32, %arg1: i32) -> (i32, i32) {
    %c0_i32 = arith.constant 0 : i32
    %c0_i32_0 = arith.constant 0 : i32
    %c0_i32_1 = arith.constant 0 : i32
    return %c0_i32, %c0_i32_0 : i32, i32
  }
  func.func @transform_3(%arg0: i32, %arg1: i32) -> (i32, i32, i32) {
    %c0_i32 = arith.constant 0 : i32
    %c0_i32_0 = arith.constant 0 : i32
    return %arg0, %arg1, %c0_i32 : i32, i32, i32
  }
}

module attributes {stable_mosaic.version = 11 : i64} {
  func.func @_coord_kernel(%arg0: i32, %arg1: i32, %arg2: memref<1x3x256xf32, #tpu.memory_space<vmem>>, %arg3: memref<1x3x1xf32, #tpu.memory_space<vmem>>, %arg4: memref<1x3x1xf32, #tpu.memory_space<vmem>>, %arg5: memref<1x3x256xi32, #tpu.memory_space<vmem>>, %arg6: memref<1x1x256xf32, #tpu.memory_space<vmem>>, %arg7: memref<1x3x256xf32, #tpu.memory_space<vmem>>, %arg8: memref<1x3x256xf32, #tpu.memory_space<vmem>>, %arg9: memref<1x3x256xi32, #tpu.memory_space<vmem>>, %arg10: memref<1x3x256xi32, #tpu.memory_space<vmem>>) attributes {dimension_semantics = [#tpu.dimension_semantics<parallel>, #tpu.dimension_semantics<parallel>], iteration_bounds = array<i64: 2, 1>, scalar_prefetch = 0 : i64, scratch_operands = 0 : i64, tpu.core_type = #tpu.core_type<tc>, window_params = [{transform_indices = @transform_0, window_bounds = array<i64: 1, 3, 256>}, {pipeline_mode = #tpu.pipeline_mode<synchronous>, transform_indices = @transform_1, window_bounds = array<i64: 1, 3, 1>}, {pipeline_mode = #tpu.pipeline_mode<synchronous>, transform_indices = @transform_2, window_bounds = array<i64: 1, 3, 1>}, {transform_indices = @transform_3, window_bounds = array<i64: 1, 3, 256>}, {transform_indices = @transform_4, window_bounds = array<i64: 1, 1, 256>}, {transform_indices = @transform_5, window_bounds = array<i64: 1, 3, 256>}, {transform_indices = @transform_6, window_bounds = array<i64: 1, 3, 256>}, {transform_indices = @transform_7, window_bounds = array<i64: 1, 3, 256>}, {transform_indices = @transform_8, window_bounds = array<i64: 1, 3, 256>}]} {
    %c0 = arith.constant 0 : index
    %c0_0 = arith.constant 0 : index
    %c0_1 = arith.constant 0 : index
    %0 = vector.load %arg2[%c0, %c0_0, %c0_1] : memref<1x3x256xf32, #tpu.memory_space<vmem>>, vector<1x3x256xf32>
    %c0_2 = arith.constant 0 : index
    %c0_3 = arith.constant 0 : index
    %c0_4 = arith.constant 0 : index
    %1 = vector.load %arg3[%c0_2, %c0_3, %c0_4] : memref<1x3x1xf32, #tpu.memory_space<vmem>>, vector<1x3x1xf32>
    %2 = vector.broadcast %1 : vector<1x3x1xf32> to vector<1x3x256xf32>
    %3 = arith.mulf %0, %2 : vector<1x3x256xf32>
    %c0_5 = arith.constant 0 : index
    %c0_6 = arith.constant 0 : index
    %c0_7 = arith.constant 0 : index
    %4 = vector.load %arg4[%c0_5, %c0_6, %c0_7] : memref<1x3x1xf32, #tpu.memory_space<vmem>>, vector<1x3x1xf32>
    %5 = vector.broadcast %4 : vector<1x3x1xf32> to vector<1x3x256xf32>
    %6 = arith.addf %3, %5 : vector<1x3x256xf32>
    %7 = math.tanh %6 : vector<1x3x256xf32>
    %8 = vector.extract_strided_slice %7 {offsets = [0, 0, 0], sizes = [1, 1, 256], strides = [1, 1, 1]} : vector<1x3x256xf32> to vector<1x1x256xf32>
    %cst = arith.constant 0.000000e+00 : f32
    %9 = vector.broadcast %cst : f32 to vector<1x1x256xf32>
    %10 = vector.extract_strided_slice %7 {offsets = [0, 2, 0], sizes = [1, 1, 256], strides = [1, 1, 1]} : vector<1x3x256xf32> to vector<1x1x256xf32>
    %11 = tpu.concatenate %8, %9, %10 in 1 : vector<1x1x256xf32>, vector<1x1x256xf32>, vector<1x1x256xf32> -> vector<1x3x256xf32>
    %c0_8 = arith.constant 0 : index
    %c0_9 = arith.constant 0 : index
    %c0_10 = arith.constant 0 : index
    %12 = vector.load %arg6[%c0_8, %c0_9, %c0_10] : memref<1x1x256xf32, #tpu.memory_space<vmem>>, vector<1x1x256xf32>
    %cst_11 = arith.constant 1.000000e+00 : f32
    %13 = vector.broadcast %cst_11 : f32 to vector<1x3x256xf32>
    %14 = arith.mulf %13, %11 : vector<1x3x256xf32>
    %15 = vector.broadcast %12 : vector<1x1x256xf32> to vector<1x3x256xf32>
    %16 = arith.addf %15, %14 : vector<1x3x256xf32>
    %17 = math.floor %16 : vector<1x3x256xf32>
    %18 = arith.fptosi %17 : vector<1x3x256xf32> to vector<1x3x256xi32>
    %c0_i32 = arith.constant 0 : i32
    %c15_i32 = arith.constant 15 : i32
    %19 = vector.broadcast %c0_i32 : i32 to vector<1x3x256xi32>
    %20 = arith.maxsi %19, %18 : vector<1x3x256xi32>
    %21 = vector.broadcast %c15_i32 : i32 to vector<1x3x256xi32>
    %22 = arith.minsi %21, %20 : vector<1x3x256xi32>
    %c1_i32 = arith.constant 1 : i32
    %23 = vector.broadcast %c1_i32 : i32 to vector<1x3x256xi32>
    %24 = arith.addi %18, %23 : vector<1x3x256xi32>
    %c0_i32_12 = arith.constant 0 : i32
    %c15_i32_13 = arith.constant 15 : i32
    %25 = vector.broadcast %c0_i32_12 : i32 to vector<1x3x256xi32>
    %26 = arith.maxsi %25, %24 : vector<1x3x256xi32>
    %27 = vector.broadcast %c15_i32_13 : i32 to vector<1x3x256xi32>
    %28 = arith.minsi %27, %26 : vector<1x3x256xi32>
    %cst_14 = arith.constant 1.000000e+00 : f32
    %29 = vector.broadcast %cst_14 : f32 to vector<1x3x256xf32>
    %30 = arith.addf %17, %29 : vector<1x3x256xf32>
    %cst_15 = arith.constant 0.000000e+00 : f32
    %cst_16 = arith.constant 1.600000e+01 : f32
    %31 = vector.broadcast %cst_15 : f32 to vector<1x3x256xf32>
    %32 = arith.maximumf %31, %30 : vector<1x3x256xf32>
    %33 = vector.broadcast %cst_16 : f32 to vector<1x3x256xf32>
    %34 = arith.minimumf %33, %32 : vector<1x3x256xf32>
    %35 = arith.subf %34, %16 : vector<1x3x256xf32>
    %c0_17 = arith.constant 0 : index
    %c0_18 = arith.constant 0 : index
    %c0_19 = arith.constant 0 : index
    %36 = vector.load %arg7[%c0_17, %c0_18, %c0_19] : memref<1x3x256xf32, #tpu.memory_space<vmem>>, vector<1x3x256xf32>
    tpu.vector_store %arg7[%c0_17, %c0_18, %c0_19], %35 {strides = array<i32>} : memref<1x3x256xf32, #tpu.memory_space<vmem>>, vector<1x3x256xf32>,
    %cst_20 = arith.constant 0.000000e+00 : f32
    %cst_21 = arith.constant 1.600000e+01 : f32
    %37 = vector.broadcast %cst_20 : f32 to vector<1x3x256xf32>
    %38 = arith.maximumf %37, %17 : vector<1x3x256xf32>
    %39 = vector.broadcast %cst_21 : f32 to vector<1x3x256xf32>
    %40 = arith.minimumf %39, %38 : vector<1x3x256xf32>
    %41 = arith.subf %16, %40 : vector<1x3x256xf32>
    %c0_22 = arith.constant 0 : index
    %c0_23 = arith.constant 0 : index
    %c0_24 = arith.constant 0 : index
    %42 = vector.load %arg8[%c0_22, %c0_23, %c0_24] : memref<1x3x256xf32, #tpu.memory_space<vmem>>, vector<1x3x256xf32>
    tpu.vector_store %arg8[%c0_22, %c0_23, %c0_24], %41 {strides = array<i32>} : memref<1x3x256xf32, #tpu.memory_space<vmem>>, vector<1x3x256xf32>,
    %c0_25 = arith.constant 0 : index
    %c0_26 = arith.constant 0 : index
    %c0_27 = arith.constant 0 : index
    %43 = vector.load %arg5[%c0_25, %c0_26, %c0_27] : memref<1x3x256xi32, #tpu.memory_space<vmem>>, vector<1x3x256xi32>
    %c18_i32 = arith.constant 18 : i32
    %44 = vector.broadcast %c18_i32 : i32 to vector<1x3x256xi32>
    %45 = arith.muli %22, %44 : vector<1x3x256xi32>
    %46 = arith.addi %45, %43 : vector<1x3x256xi32>
    %c0_28 = arith.constant 0 : index
    %c0_29 = arith.constant 0 : index
    %c0_30 = arith.constant 0 : index
    %47 = vector.load %arg9[%c0_28, %c0_29, %c0_30] : memref<1x3x256xi32, #tpu.memory_space<vmem>>, vector<1x3x256xi32>
    tpu.vector_store %arg9[%c0_28, %c0_29, %c0_30], %46 {strides = array<i32>} : memref<1x3x256xi32, #tpu.memory_space<vmem>>, vector<1x3x256xi32>,
    %c18_i32_31 = arith.constant 18 : i32
    %48 = vector.broadcast %c18_i32_31 : i32 to vector<1x3x256xi32>
    %49 = arith.muli %28, %48 : vector<1x3x256xi32>
    %50 = arith.addi %49, %43 : vector<1x3x256xi32>
    %c0_32 = arith.constant 0 : index
    %c0_33 = arith.constant 0 : index
    %c0_34 = arith.constant 0 : index
    %51 = vector.load %arg10[%c0_32, %c0_33, %c0_34] : memref<1x3x256xi32, #tpu.memory_space<vmem>>, vector<1x3x256xi32>
    tpu.vector_store %arg10[%c0_32, %c0_33, %c0_34], %50 {strides = array<i32>} : memref<1x3x256xi32, #tpu.memory_space<vmem>>, vector<1x3x256xi32>,
    return
  }
  func.func @transform_0(%arg0: i32, %arg1: i32) -> (i32, i32, i32) {
    %c0_i32 = arith.constant 0 : i32
    %c0_i32_0 = arith.constant 0 : i32
    return %arg0, %c0_i32, %arg1 : i32, i32, i32
  }
  func.func @transform_1(%arg0: i32, %arg1: i32) -> (i32, i32, i32) {
    %c0_i32 = arith.constant 0 : i32
    %c0_i32_0 = arith.constant 0 : i32
    %c0_i32_1 = arith.constant 0 : i32
    %c0_i32_2 = arith.constant 0 : i32
    return %c0_i32, %c0_i32_0, %c0_i32_1 : i32, i32, i32
  }
  func.func @transform_2(%arg0: i32, %arg1: i32) -> (i32, i32, i32) {
    %c0_i32 = arith.constant 0 : i32
    %c0_i32_0 = arith.constant 0 : i32
    %c0_i32_1 = arith.constant 0 : i32
    %c0_i32_2 = arith.constant 0 : i32
    return %c0_i32, %c0_i32_0, %c0_i32_1 : i32, i32, i32
  }
  func.func @transform_3(%arg0: i32, %arg1: i32) -> (i32, i32, i32) {
    %c0_i32 = arith.constant 0 : i32
    %c0_i32_0 = arith.constant 0 : i32
    %c0_i32_1 = arith.constant 0 : i32
    return %c0_i32, %c0_i32_0, %arg1 : i32, i32, i32
  }
  func.func @transform_4(%arg0: i32, %arg1: i32) -> (i32, i32, i32) {
    %c0_i32 = arith.constant 0 : i32
    %c0_i32_0 = arith.constant 0 : i32
    %c0_i32_1 = arith.constant 0 : i32
    return %c0_i32, %c0_i32_0, %arg1 : i32, i32, i32
  }
  func.func @transform_5(%arg0: i32, %arg1: i32) -> (i32, i32, i32) {
    %c0_i32 = arith.constant 0 : i32
    %c0_i32_0 = arith.constant 0 : i32
    return %arg0, %c0_i32, %arg1 : i32, i32, i32
  }
  func.func @transform_6(%arg0: i32, %arg1: i32) -> (i32, i32, i32) {
    %c0_i32 = arith.constant 0 : i32
    %c0_i32_0 = arith.constant 0 : i32
    return %arg0, %c0_i32, %arg1 : i32, i32, i32
  }
  func.func @transform_7(%arg0: i32, %arg1: i32) -> (i32, i32, i32) {
    %c0_i32 = arith.constant 0 : i32
    %c0_i32_0 = arith.constant 0 : i32
    return %arg0, %c0_i32, %arg1 : i32, i32, i32
  }
  func.func @transform_8(%arg0: i32, %arg1: i32) -> (i32, i32, i32) {
    %c0_i32 = arith.constant 0 : i32
    %c0_i32_0 = arith.constant 0 : i32
    return %arg0, %c0_i32, %arg1 : i32, i32, i32
  }
}

module attributes {stable_mosaic.version = 11 : i64} {
  func.func @_matmul_bias_kernel(%arg0: i32, %arg1: memref<512x12xf32, #tpu.memory_space<vmem>>, %arg2: memref<12x8xf32, #tpu.memory_space<vmem>>, %arg3: memref<1x8xf32, #tpu.memory_space<vmem>>, %arg4: memref<512x8xf32, #tpu.memory_space<vmem>>) attributes {dimension_semantics = [#tpu.dimension_semantics<parallel>], iteration_bounds = array<i64: 1>, scalar_prefetch = 0 : i64, scratch_operands = 0 : i64, tpu.core_type = #tpu.core_type<tc>, window_params = [{transform_indices = @transform_0, window_bounds = array<i64: 512, 12>}, {pipeline_mode = #tpu.pipeline_mode<synchronous>, transform_indices = @transform_1, window_bounds = array<i64: 12, 8>}, {pipeline_mode = #tpu.pipeline_mode<synchronous>, transform_indices = @transform_2, window_bounds = array<i64: 1, 8>}, {transform_indices = @transform_3, window_bounds = array<i64: 512, 8>}]} {
    %c0 = arith.constant 0 : index
    %c0_0 = arith.constant 0 : index
    %0 = vector.load %arg1[%c0, %c0_0] : memref<512x12xf32, #tpu.memory_space<vmem>>, vector<512x12xf32>
    %c0_1 = arith.constant 0 : index
    %c0_2 = arith.constant 0 : index
    %1 = vector.load %arg2[%c0_1, %c0_2] : memref<12x8xf32, #tpu.memory_space<vmem>>, vector<12x8xf32>
    %cst = arith.constant dense<0.000000e+00> : vector<512x8xf32>
    %2 = tpu.matmul %0, %1, %cst {dimension_numbers = #tpu.dot_dimension_numbers<[1], [0], [0], [1], [0, 0, 1, 1], [], []>} : vector<512x12xf32>, vector<12x8xf32>, vector<512x8xf32> -> vector<512x8xf32>
    %c0_3 = arith.constant 0 : index
    %c0_4 = arith.constant 0 : index
    %3 = vector.load %arg3[%c0_3, %c0_4] : memref<1x8xf32, #tpu.memory_space<vmem>>, vector<1x8xf32>
    %4 = vector.broadcast %3 : vector<1x8xf32> to vector<512x8xf32>
    %5 = arith.addf %2, %4 : vector<512x8xf32>
    %c0_5 = arith.constant 0 : index
    %c0_6 = arith.constant 0 : index
    %6 = vector.load %arg4[%c0_5, %c0_6] : memref<512x8xf32, #tpu.memory_space<vmem>>, vector<512x8xf32>
    tpu.vector_store %arg4[%c0_5, %c0_6], %5 {strides = array<i32>} : memref<512x8xf32, #tpu.memory_space<vmem>>, vector<512x8xf32>,
    return
  }
  func.func @transform_0(%arg0: i32) -> (i32, i32) {
    %c0_i32 = arith.constant 0 : i32
    %c0_i32_0 = arith.constant 0 : i32
    return %arg0, %c0_i32 : i32, i32
  }
  func.func @transform_1(%arg0: i32) -> (i32, i32) {
    %c0_i32 = arith.constant 0 : i32
    %c0_i32_0 = arith.constant 0 : i32
    %c0_i32_1 = arith.constant 0 : i32
    return %c0_i32, %c0_i32_0 : i32, i32
  }
  func.func @transform_2(%arg0: i32) -> (i32, i32) {
    %c0_i32 = arith.constant 0 : i32
    %c0_i32_0 = arith.constant 0 : i32
    %c0_i32_1 = arith.constant 0 : i32
    return %c0_i32, %c0_i32_0 : i32, i32
  }
  func.func @transform_3(%arg0: i32) -> (i32, i32) {
    %c0_i32 = arith.constant 0 : i32
    %c0_i32_0 = arith.constant 0 : i32
    return %arg0, %c0_i32 : i32, i32
  }
}

module attributes {stable_mosaic.version = 11 : i64} {
  func.func @_gn_relu_kernel(%arg0: i32, %arg1: memref<1x256x8xf32, #tpu.memory_space<vmem>>, %arg2: memref<1x8xf32, #tpu.memory_space<vmem>>, %arg3: memref<1x8xf32, #tpu.memory_space<vmem>>, %arg4: memref<8x8xf32, #tpu.memory_space<vmem>>, %arg5: memref<1x256x8xf32, #tpu.memory_space<vmem>>) attributes {dimension_semantics = [#tpu.dimension_semantics<parallel>], iteration_bounds = array<i64: 2>, scalar_prefetch = 0 : i64, scratch_operands = 0 : i64, tpu.core_type = #tpu.core_type<tc>, window_params = [{transform_indices = @transform_0, window_bounds = array<i64: 1, 256, 8>}, {pipeline_mode = #tpu.pipeline_mode<synchronous>, transform_indices = @transform_1, window_bounds = array<i64: 1, 8>}, {pipeline_mode = #tpu.pipeline_mode<synchronous>, transform_indices = @transform_2, window_bounds = array<i64: 1, 8>}, {pipeline_mode = #tpu.pipeline_mode<synchronous>, transform_indices = @transform_3, window_bounds = array<i64: 8, 8>}, {transform_indices = @transform_4, window_bounds = array<i64: 1, 256, 8>}]} {
    %c0 = arith.constant 0 : index
    %c0_0 = arith.constant 0 : index
    %c0_1 = arith.constant 0 : index
    %0 = vector.load %arg1[%c0, %c0_0, %c0_1] : memref<1x256x8xf32, #tpu.memory_space<vmem>>, vector<1x256x8xf32>
    %1 = vector.shape_cast %0 : vector<1x256x8xf32> to vector<256x8xf32>
    %c0_2 = arith.constant 0 : index
    %c0_3 = arith.constant 0 : index
    %2 = vector.load %arg4[%c0_2, %c0_3] : memref<8x8xf32, #tpu.memory_space<vmem>>, vector<8x8xf32>
    %cst = arith.constant dense<0.000000e+00> : vector<8xf32>
    %3 = vector.multi_reduction <add>, %1, %cst [0] : vector<256x8xf32> to vector<8xf32>
    %4 = vector.shape_cast %3 : vector<8xf32> to vector<1x8xf32>
    %cst_4 = arith.constant dense<0.000000e+00> : vector<1x8xf32>
    %5 = tpu.matmul %4, %2, %cst_4 {dimension_numbers = #tpu.dot_dimension_numbers<[1], [0], [0], [1], [0, 0, 1, 1], [], []>} : vector<1x8xf32>, vector<8x8xf32>, vector<1x8xf32> -> vector<1x8xf32>
    %cst_5 = arith.constant 9.765625E-4 : f32
    %6 = vector.broadcast %cst_5 : f32 to vector<1x8xf32>
    %7 = arith.mulf %5, %6 : vector<1x8xf32>
    %8 = vector.broadcast %7 : vector<1x8xf32> to vector<256x8xf32>
    %9 = arith.subf %1, %8 : vector<256x8xf32>
    %10 = arith.mulf %9, %9 : vector<256x8xf32>
    %cst_6 = arith.constant dense<0.000000e+00> : vector<8xf32>
    %11 = vector.multi_reduction <add>, %10, %cst_6 [0] : vector<256x8xf32> to vector<8xf32>
    %12 = vector.shape_cast %11 : vector<8xf32> to vector<1x8xf32>
    %cst_7 = arith.constant dense<0.000000e+00> : vector<1x8xf32>
    %13 = tpu.matmul %12, %2, %cst_7 {dimension_numbers = #tpu.dot_dimension_numbers<[1], [0], [0], [1], [0, 0, 1, 1], [], []>} : vector<1x8xf32>, vector<8x8xf32>, vector<1x8xf32> -> vector<1x8xf32>
    %cst_8 = arith.constant 9.765625E-4 : f32
    %14 = vector.broadcast %cst_8 : f32 to vector<1x8xf32>
    %15 = arith.mulf %13, %14 : vector<1x8xf32>
    %c0_9 = arith.constant 0 : index
    %c0_10 = arith.constant 0 : index
    %16 = vector.load %arg2[%c0_9, %c0_10] : memref<1x8xf32, #tpu.memory_space<vmem>>, vector<1x8xf32>
    %cst_11 = arith.constant 9.99999974E-6 : f32
    %17 = vector.broadcast %cst_11 : f32 to vector<1x8xf32>
    %18 = arith.addf %15, %17 : vector<1x8xf32>
    %19 = math.rsqrt %18 : vector<1x8xf32>
    %20 = arith.mulf %16, %19 : vector<1x8xf32>
    %c0_12 = arith.constant 0 : index
    %c0_13 = arith.constant 0 : index
    %21 = vector.load %arg3[%c0_12, %c0_13] : memref<1x8xf32, #tpu.memory_space<vmem>>, vector<1x8xf32>
    %22 = arith.mulf %7, %20 : vector<1x8xf32>
    %23 = arith.subf %21, %22 : vector<1x8xf32>
    %24 = vector.broadcast %20 : vector<1x8xf32> to vector<256x8xf32>
    %25 = arith.mulf %1, %24 : vector<256x8xf32>
    %26 = vector.broadcast %23 : vector<1x8xf32> to vector<256x8xf32>
    %27 = arith.addf %25, %26 : vector<256x8xf32>
    %cst_14 = arith.constant 0.000000e+00 : f32
    %28 = vector.broadcast %cst_14 : f32 to vector<256x8xf32>
    %29 = arith.maximumf %27, %28 : vector<256x8xf32>
    %c0_15 = arith.constant 0 : index
    %c0_16 = arith.constant 0 : index
    %c0_17 = arith.constant 0 : index
    %30 = vector.load %arg5[%c0_15, %c0_16, %c0_17] : memref<1x256x8xf32, #tpu.memory_space<vmem>>, vector<1x256x8xf32>
    %31 = vector.shape_cast %30 : vector<1x256x8xf32> to vector<256x8xf32>
    %32 = vector.shape_cast %29 : vector<256x8xf32> to vector<1x256x8xf32>
    tpu.vector_store %arg5[%c0_15, %c0_16, %c0_17], %32 {strides = array<i32>} : memref<1x256x8xf32, #tpu.memory_space<vmem>>, vector<1x256x8xf32>,
    return
  }
  func.func @transform_0(%arg0: i32) -> (i32, i32, i32) {
    %c0_i32 = arith.constant 0 : i32
    %c0_i32_0 = arith.constant 0 : i32
    %c0_i32_1 = arith.constant 0 : i32
    return %arg0, %c0_i32, %c0_i32_0 : i32, i32, i32
  }
  func.func @transform_1(%arg0: i32) -> (i32, i32) {
    %c0_i32 = arith.constant 0 : i32
    %c0_i32_0 = arith.constant 0 : i32
    %c0_i32_1 = arith.constant 0 : i32
    return %c0_i32, %c0_i32_0 : i32, i32
  }
  func.func @transform_2(%arg0: i32) -> (i32, i32) {
    %c0_i32 = arith.constant 0 : i32
    %c0_i32_0 = arith.constant 0 : i32
    %c0_i32_1 = arith.constant 0 : i32
    return %c0_i32, %c0_i32_0 : i32, i32
  }
  func.func @transform_3(%arg0: i32) -> (i32, i32) {
    %c0_i32 = arith.constant 0 : i32
    %c0_i32_0 = arith.constant 0 : i32
    %c0_i32_1 = arith.constant 0 : i32
    return %c0_i32, %c0_i32_0 : i32, i32
  }
  func.func @transform_4(%arg0: i32) -> (i32, i32, i32) {
    %c0_i32 = arith.constant 0 : i32
    %c0_i32_0 = arith.constant 0 : i32
    %c0_i32_1 = arith.constant 0 : i32
    return %arg0, %c0_i32, %c0_i32_0 : i32, i32, i32
  }
}

</mosaic_0001>

<bundles_post_ra>
// kernel: single_conv3d_block_dsc.4
= control target key start
LH: loop header
LB: loop body
LE: loop exit
PB: predicated region body
PF: predicated region fallthrough
CT: control target
= control target key end

     0   :  { %s1997_s12 = smov 0   ;;  %s1999_s13 = smov 0   ;;  %s2672_s0 = inlined_call_operand.vmem [shape: f32[2,16,18,12], index: 0, kind: input, shape index: {}]   ;;  %s2673_s1 = inlined_call_operand.vmem [shape: f32[3,12,3], index: 1, kind: input, shape index: {}]   ;;  %s2674_s2 = inlined_call_operand.vmem [shape: f32[1,3], index: 2, kind: input, shape index: {}]   ;;  %s2675_s3 = inlined_call_operand.vmem [shape: f32[2,256,3], index: 3, kind: output, shape index: {}]  }
   0x1   :  { %s2001_s14 = smov 0  }
   0x2 LB: > { %s25_s15 = sadd.s32 1, %s1971_s13  ;;  %p1555_p0 = scmp.ge.s32.totalorder %s1975_s14, 1  ;;  %s1975_s14 = sphi %s2001_s14, %s13_s14   ;;  %s1971_s13 = sphi %s1999_s13, %s2685_s13   ;;  %s1967_s12 = sphi %s1997_s12, %s2684_s12  }
   0x3   : > { %p27_p1 = scmp.ge.s32.totalorder %s25_s15, 2  ;;  %p159_p2 = scmp.lt.s32.totalorder %s1975_s14, 3 }
   0x5   : > { %s2687_s15 = smov (%p27_p1, %s25_s15), 0  ;;  %p160_p3 = pnand %p1555_p0, %p159_p2 }
   0x7   : > { %163 = sbr.rel (%p160_p3) target bundleno = 318 (0x13e), region = 32 }
   0xc   : > { %v1560_v0 = vld [vmem:[%s2673_s1 + $0x18] sm:$0xf]  ;;  %vm460_vm0 = vcmask 1043456   ;;  %v1559_v1 = vld [vmem:[%s2673_s1 + $0x10] sm:$0xff]  ;;  %p193_p4 = scmp.lt.s32.totalorder %s1967_s12, 1  ;;  %vm311_vm1 = vcmask 1046528  }
   0xd   : > { %1924 = vmatprep.subr.msk.mxu1 %vm460_vm0, %v1560_v0  ;;  %1768 = vmatprep.subr.msk.mxu0 %vm460_vm0, %v1560_v0  ;;  %v262_v2 = vld [vmem:[%s2673_s1 + $0x8] sm:$0xf]  ;;  %vm395_vm2 = vcmask 97280   ;;  %v261_v22 = vld [vmem:[%s2673_s1] sm:$0xff]  ;;  %vm981_vm3 = vcmask 1045504   ;;  %vm1428_vm4 = vcmask 23552  }
   0xe   : > { %1926 = vmatpush3.msk.msra.mxu1 %vm460_vm0, %v1560_v0  ;;  %1769 = vmatpush3.msk.msra.mxu0 %vm460_vm0, %v1560_v0  ;;  %s2689_s12 = smov (!%p193_p4, %s1967_s12), 1  ;;  %v1628_v3 = vld [vmem:[%s2673_s1 + $0x28] sm:$0xf]  ;;  %v1627_v42 = vld [vmem:[%s2673_s1 + $0x20] sm:$0xff] }
   0xf   : > { %1925 = vmatprep.subr.mxu1 %v1559_v1  ;;  %1770 = vmatprep.subr.mxu0 %v1559_v1  ;;  %s1928_s24 = smul.u32 384, %s2689_s12  ;;  %s1665_s5 = sshll.u32 %s2689_s12, 8 }
  0x10   : > { %1927 = vmatpush3.msra.mxu1 %v1559_v1  ;;  %1771 = vmatpush3.msra.mxu0 %v1559_v1  ;;  %s2540_s10 = scalar_lea.vmem %s2675_s3, %s1665_s5 }
  0x11   : > { %1820 = vmatprep.subr.msk.mxu1 %vm460_vm0, %v262_v2  ;;  %1872 = vmatprep.subr.msk.mxu0 %vm460_vm0, %v1628_v3  ;;  %s2039_s27 = scalar_lea.vmem %s2672_s0, %s1928_s24 }
  0x12   : > { %v2042_v4 = vld [vmem:[%s2039_s27] sm:$0xff]  ;;  %v2045_v5 = vld [vmem:[%s2039_s27 + $0x8] sm:$0xff]  ;;  %v2057_v11 = vld [vmem:[%s2039_s27 + $0x10] sm:$0x3] }
  0x13   : > { %v2048_v6 = vld [vmem:[%s2039_s27 + $0xc0] sm:$0xff]  ;;  %v312_v7 = vrot.slane %v2042_v4, 1  ;;  %v313_v8 = vrot.slane %v2045_v5, 1  ;;  %v2053_v9 = vld [vmem:[%s2039_s27 + $0xc8] sm:$0xff]  ;;  %v315_v13 = vrot.slane %v2057_v11, 1  ;;  %v2065_v15 = vld [vmem:[%s2039_s27 + $0x18] sm:$0xff] }
  0x14   : > { %v352_v10 = vrot.slane %v2048_v6, 1  ;;  %v353_v12 = vrot.slane %v2053_v9, 1  ;;  %v2062_v14 = vld [vmem:[%s2039_s27 + $0xd0] sm:$0x3]  ;;  %v2070_v18 = vld [vmem:[%s2039_s27 + $0x20] sm:$0xff]  ;;  %v317_v19 = vrot.slane %v2065_v15, 1 }
  0x15   : > { %v314_v16 = vsel %vm311_vm1, %v312_v7, %v313_v8  ;;  %v355_v17 = vrot.slane %v2062_v14, 1  ;;  %v2074_v20 = vld [vmem:[%s2039_s27 + $0xd8] sm:$0xff]  ;;  %v2077_v21 = vld [vmem:[%s2039_s27 + $0xe0] sm:$0xff]  ;;  %v316_v24 = vsel %vm311_vm1, %v313_v8, %v315_v13  ;;  %v318_v25 = vrot.slane %v2070_v18, 1  ;;  %v2088_v27 = vld [vmem:[%s2039_s27 + $0x28] sm:$0x3] }
  0x16   : > { %1772 = vmatprep.mubr.msk.f32.mxu0 %vm395_vm2, %v314_v16  ;;  %v354_v23 = vsel %vm311_vm1, %v352_v10, %v353_v12  ;;  %v357_v26 = vrot.slane %v2074_v20, 1  ;;  %v2091_v28 = vld [vmem:[%s2039_s27 + $0xe8] sm:$0x3]  ;;  %v358_v30 = vrot.slane %v2077_v21, 1  ;;  %v320_v31 = vrot.slane %v2088_v27, 1  ;;  %v2100_v33 = vld [vmem:[%s2039_s27 + $0x30] sm:$0xff] }
  0x17   : > { %1796 = vmatprep.mubr.msk.f32.mxu1 %vm395_vm2, %v354_v23  ;;  %1773 = vmatmul.mubr.msk.f32.vlgmr.msra.gmra.mxu0 %vm395_vm2, %v316_v24  ;;  %v356_v29 = vsel %vm311_vm1, %v353_v12, %v355_v17  ;;  %v360_v32 = vrot.slane %v2091_v28, 1  ;;  %v2103_v34 = vld [vmem:[%s2039_s27 + $0x38] sm:$0xff]  ;;  %v2106_v35 = vld [vmem:[%s2039_s27 + $0xf0] sm:$0xff]  ;;  %v319_v36 = vsel %vm311_vm1, %v317_v19, %v318_v25  ;;  %v322_v37 = vrot.slane %v2100_v33, 1  ;;  %v2118_v41 = vld [vmem:[%s2039_s27 + $0x40] sm:$0x3] }
  0x18   : > { %1797 = vmatmul.mubr.msk.f32.vlgmr.msra.gmra.mxu1 %vm395_vm2, %v356_v29  ;;  %1873 = vmatpush3.msk.msra.mxu0 %vm460_vm0, %v1628_v3  ;;  %v323_v38 = vrot.slane %v2103_v34, 1  ;;  %v2114_v39 = vld [vmem:[%s2039_s27 + $0xf8] sm:$0xff]  ;;  %v362_v40 = vrot.slane %v2106_v35, 1  ;;  %v359_v43 = vsel %vm311_vm1, %v357_v26, %v358_v30  ;;  %v321_v44 = vsel %vm311_vm1, %v318_v25, %v320_v31  ;;  %v2130_v47 = vld [vmem:[%s2039_s27 + $0x100] sm:$0x3]  ;;  %v2133_v48 = vld [vmem:[%s2039_s27 + $0x48] sm:$0xff] }
  0x19   : > { %1821 = vmatpush3.msk.msra.mxu1 %vm460_vm0, %v262_v2  ;;  %1775 = vmatprep.mubr.msk.f32.mxu0 %vm395_vm2, %v319_v36  ;;  %v361_v45 = vsel %vm311_vm1, %v358_v30, %v360_v32  ;;  %v363_v46 = vrot.slane %v2114_v39, 1  ;;  %v2136_v49 = vld [vmem:[%s2039_s27 + $0x50] sm:$0xff]  ;;  %v325_v51 = vrot.slane %v2118_v41, 1  ;;  %v365_v52 = vrot.slane %v2130_v47, 1  ;;  %v2144_v54 = vld [vmem:[%s2039_s27 + $0x108] sm:$0xff]  ;;  %v2150_v56 = vld [vmem:[%s2039_s27 + $0x60] sm:$0xff] }
  0x1a   : > { %1799 = vmatprep.mubr.msk.f32.mxu1 %vm395_vm2, %v359_v43  ;;  %v324_v50 = vsel %vm311_vm1, %v322_v37, %v323_v38  ;;  %v327_v53 = vrot.slane %v2133_v48, 1  ;;  %v2147_v55 = vld [vmem:[%s2039_s27 + $0x110] sm:$0xff]  ;;  %1822 = vmatprep.subr.mxu1 %v261_v22  ;;  %v328_v58 = vrot.slane %v2136_v49, 1  ;;  %v367_v59 = vrot.slane %v2144_v54, 1  ;;  %v2158_v61 = vld [vmem:[%s2039_s27 + $0x58] sm:$0x3] }
  0x1b   : > { %1776 = vmatmul.mubr.msk.f32.gmra.mxu0 %vm395_vm2, %v321_v44  ;;  %v364_v57 = vsel %vm311_vm1, %v362_v40, %v363_v46  ;;  %v368_v60 = vrot.slane %v2147_v55, 1  ;;  %v2161_v62 = vld [vmem:[%s2039_s27 + $0x68] sm:$0xff]  ;;  %1823 = vmatpush3.msra.mxu1 %v261_v22  ;;  %v326_v63 = vsel %vm311_vm1, %v323_v38, %v325_v51  ;;  %v330_v0 = vrot.slane %v2158_v61, 1  ;;  %v2168_v1 = vld [vmem:[%s2039_s27 + $0x118] sm:$0x3]  ;;  %v2172_v3 = vld [vmem:[%s2039_s27 + $0x120] sm:$0xff] }
  0x1c   : > { %1800 = vmatmul.mubr.msk.f32.gmra.mxu1 %vm395_vm2, %v361_v45  ;;  %1778 = vmatprep.mubr.msk.f32.mxu0 %vm395_vm2, %v324_v50  ;;  %v332_v2 = vrot.slane %v2150_v56, 1  ;;  %v2175_v7 = vld [vmem:[%s2039_s27 + $0x128] sm:$0xff]  ;;  %v366_v8 = vsel %vm311_vm1, %v363_v46, %v365_v52  ;;  %v329_v10 = vsel %vm311_vm1, %v327_v53, %v328_v58  ;;  %v370_v12 = vrot.slane %v2168_v1, 1  ;;  %v2183_v16 = vld [vmem:[%s2039_s27 + $0x70] sm:$0x3]  ;;  %v2192_v24 = vld [vmem:[%s2039_s27 + $0x78] sm:$0xff] }
  0x1d   : > { %1802 = vmatprep.mubr.msk.f32.mxu1 %vm395_vm2, %v364_v57  ;;  %v333_v13 = vrot.slane %v2161_v62, 1  ;;  %v2186_v17 = vld [vmem:[%s2039_s27 + $0x130] sm:$0x3]  ;;  %1874 = vmatprep.subr.mxu0 %v1627_v42  ;;  %v369_v19 = vsel %vm311_vm1, %v367_v59, %v368_v60  ;;  %v372_v22 = vrot.slane %v2172_v3, 1  ;;  %v373_v23 = vrot.slane %v2175_v7, 1  ;;  %v2195_v25 = vld [vmem:[%s2039_s27 + $0x80] sm:$0xff] }
  0x1e   : > { %1875 = vmatpush3.msra.mxu0 %v1627_v42  ;;  %v2199_v26 = vld [vmem:[%s2039_s27 + $0x138] sm:$0xff]  ;;  %v2202_v29 = vld [vmem:[%s2039_s27 + $0x140] sm:$0xff]  ;;  %v331_v30 = vsel %vm311_vm1, %v328_v58, %v330_v0  ;;  %v335_v31 = vrot.slane %v2183_v16, 1  ;;  %v375_v32 = vrot.slane %v2186_v17, 1  ;;  %v371_v36 = vsel %vm311_vm1, %v368_v60, %v370_v12  ;;  %v2215_v42 = vld [vmem:[%s2039_s27 + $0x88] sm:$0x3] }
  0x1f   : > { %1779 = vmatmul.mubr.msk.f32.gmra.mxu0 %vm395_vm2, %v326_v63  ;;  %v334_v37 = vsel %vm311_vm1, %v332_v2, %v333_v13  ;;  %v337_v38 = vrot.slane %v2192_v24, 1  ;;  %v338_v40 = vrot.slane %v2195_v25, 1  ;;  %v2218_v43 = vld [vmem:[%s2039_s27 + $0x148] sm:$0x3]  ;;  %v374_v44 = vsel %vm311_vm1, %v372_v22, %v373_v23  ;;  %v2224_v50 = vld [vmem:[%s2039_s27 + $0x90] sm:$0xff]  ;;  %v2227_v51 = vld [vmem:[%s2039_s27 + $0x98] sm:$0xff] }
  0x20   : > { %1803 = vmatmul.mubr.msk.f32.gmra.mxu1 %vm395_vm2, %v366_v8  ;;  %1781 = vmatprep.mubr.msk.f32.mxu0 %vm395_vm2, %v329_v10  ;;  %v377_v45 = vrot.slane %v2199_v26, 1  ;;  %v378_v46 = vrot.slane %v2202_v29, 1  ;;  %v2231_v52 = vld [vmem:[%s2039_s27 + $0x150] sm:$0xff]  ;;  %v2234_v53 = vld [vmem:[%s2039_s27 + $0x158] sm:$0xff]  ;;  %v336_v57 = vsel %vm311_vm1, %v333_v13, %v335_v31  ;;  %v340_v58 = vrot.slane %v2215_v42, 1  ;;  %v2256_v22 = vld [vmem:[%s2039_s27 + $0xa8] sm:$0xff] }
  0x21   : > { %1805 = vmatprep.mubr.msk.f32.mxu1 %vm395_vm2, %v369_v19  ;;  %2680 = vst [vmem:[#allocation2_spill] sm:$0xff] %v2234_v53  ;;  %v380_v59 = vrot.slane %v2218_v43, 1  ;;  %v376_v60 = vsel %vm311_vm1, %v373_v23, %v375_v32  ;;  %v339_v63 = vsel %vm311_vm1, %v337_v38, %v338_v40  ;;  %v342_v0 = vrot.slane %v2224_v50, 1  ;;  %v2247_v8 = vld [vmem:[%s2039_s27 + $0xa0] sm:$0x3]  ;;  %v2259_v23 = vld [vmem:[%s2039_s27 + $0xb0] sm:$0xff] }
  0x22   : > { %v343_v2 = vrot.slane %v2227_v51, 1  ;;  %v379_v10 = vsel %vm311_vm1, %v377_v45, %v378_v46  ;;  %v382_v12 = vrot.slane %v2231_v52, 1  ;;  %v383_v13 = vrot.slane %v2234_v53, 1  ;;  %v2253_v19 = vld [vmem:[%s2039_s27 + $0x160] sm:$0x3]  ;;  %v2266_v31 = vld [vmem:[%s2039_s27 + $0x170] sm:$0xff] }
  0x23   : > { %1782 = vmatmul.mubr.msk.f32.gmra.mxu0 %vm395_vm2, %v331_v30  ;;  %v2263_v30 = vld [vmem:[%s2039_s27 + $0x168] sm:$0xff]  ;;  %2681 = vst [vmem:[#allocation3_spill] sm:$0xff] %v2266_v31  ;;  %v341_v32 = vsel %vm311_vm1, %v338_v40, %v340_v58  ;;  %v347_v45 = vrot.slane %v2256_v22, 1  ;;  %v2279_v53 = vld [vmem:[%s2039_s27 + $0xb8] sm:$0x3] }
  0x24   : > { %1806 = vmatmul.mubr.msk.f32.gmra.mxu1 %vm395_vm2, %v371_v36  ;;  %1784 = vmatprep.mubr.msk.f32.mxu0 %vm395_vm2, %v334_v37  ;;  %v381_v36 = vsel %vm311_vm1, %v378_v46, %v380_v59  ;;  %v345_v37 = vrot.slane %v2247_v8, 1  ;;  %v344_v38 = vsel %vm311_vm1, %v342_v0, %v343_v2  ;;  %v387_v40 = vrot.slane %v2263_v30, 1  ;;  %v2285_v58 = vld [vmem:[%s2039_s27 + $0x178] sm:$0x3] }
  0x25   : > { %1808 = vmatprep.mubr.msk.f32.mxu1 %vm395_vm2, %v374_v44  ;;  %v385_v44 = vrot.slane %v2253_v19, 1  ;;  %v388_v46 = vrot.slane %v2266_v31, 1  ;;  %v982_v0 = vrot.slane %v2042_v4, 2  ;;  %v390_v31 = vrot.slane %v2285_v58, 1 }
  0x26   : > { %v346_v59 = vsel %vm311_vm1, %v343_v2, %v345_v37  ;;  %v985_v2 = vrot.slane %v2057_v11, 2 }
  0x27   : > { %1785 = vmatmul.mubr.msk.f32.gmra.mxu0 %vm395_vm2, %v336_v57  ;;  %v348_v57 = vrot.slane %v2259_v23, 1 }
  0x28   : > { %1809 = vmatmul.mubr.msk.f32.gmra.mxu1 %vm395_vm2, %v376_v60  ;;  %1787 = vmatprep.mubr.msk.f32.mxu0 %vm395_vm2, %v339_v63  ;;  %v384_v60 = vsel %vm311_vm1, %v382_v12, %v383_v13  ;;  %v350_v63 = vrot.slane %v2279_v53, 1 }
  0x29   : > { %1811 = vmatprep.mubr.msk.f32.mxu1 %vm395_vm2, %v379_v10  ;;  %v386_v10 = vsel %vm311_vm1, %v383_v13, %v385_v44  ;;  %v349_v12 = vsel %vm311_vm1, %v347_v45, %v348_v57  ;;  %v391_v13 = vsel %vm311_vm1, %v388_v46, %v390_v31  ;;  %v987_v44 = vrot.slane %v2065_v15, 2 }
  0x2a   : > { %v351_v37 = vsel %vm311_vm1, %v348_v57, %v350_v63  ;;  %v988_v45 = vrot.slane %v2070_v18, 2  ;;  %v990_v57 = vrot.slane %v2088_v27, 2  ;;  %v995_v27 = vrot.slane %v2118_v41, 2 }
  0x2b   : > { %1788 = vmatmul.mubr.msk.f32.gmra.mxu0 %vm395_vm2, %v341_v32  ;;  %v983_v32 = vrot.slane %v2045_v5, 2  ;;  %v998_v63 = vrot.slane %v2136_v49, 2  ;;  %v1000_v41 = vrot.slane %v2158_v61, 2  ;;  %v1005_v61 = vrot.slane %v2183_v16, 2 }
  0x2c   : > { %1812 = vmatmul.mubr.msk.f32.gmra.mxu1 %vm395_vm2, %v381_v36  ;;  %1790 = vmatprep.mubr.msk.f32.mxu0 %vm395_vm2, %v344_v38  ;;  %v389_v36 = vsel %vm311_vm1, %v387_v40, %v388_v46  ;;  %v989_v31 = vsel %vm981_vm3, %v987_v44, %v988_v45  ;;  %v993_v40 = vrot.slane %v2103_v34, 2  ;;  %v991_v46 = vsel %vm981_vm3, %v988_v45, %v990_v57 }
  0x2d   : > { %1814 = vmatprep.mubr.msk.f32.mxu1 %vm395_vm2, %v384_v60  ;;  %v984_v38 = vsel %vm981_vm3, %v982_v0, %v983_v32  ;;  %v986_v11 = vsel %vm981_vm3, %v983_v32, %v985_v2  ;;  %v992_v60 = vrot.slane %v2100_v33, 2  ;;  %v1002_v0 = vrot.slane %v2150_v56, 2 }
  0x2e   : > { %v1008_v32 = vrot.slane %v2195_v25, 2  ;;  %v1010_v16 = vrot.slane %v2215_v42, 2  ;;  %v1013_v2 = vrot.slane %v2227_v51, 2  ;;  %v1015_v42 = vrot.slane %v2247_v8, 2 }
  0x2f   : > { %1791 = vmatmul.mubr.msk.f32.gmra.mxu0 %vm395_vm2, %v346_v59  ;;  %v997_v59 = vrot.slane %v2133_v48, 2  ;;  %v1020_v8 = vrot.slane %v2279_v53, 2  ;;  %v1023_v44 = vrot.slane %v2053_v9, 2  ;;  %v1025_v53 = vrot.slane %v2062_v14, 2 }
  0x30   : > { %1815 = vmatmul.mubr.msk.f32.gmra.mxu1 %vm395_vm2, %v386_v10  ;;  %1793 = vmatprep.mubr.msk.f32.mxu0 %vm395_vm2, %v349_v12  ;;  %v1003_v10 = vrot.slane %v2161_v62, 2  ;;  %v1007_v12 = vrot.slane %v2192_v24, 2  ;;  %v1027_v45 = vrot.slane %v2074_v20, 2  ;;  %v1030_v14 = vrot.slane %v2091_v28, 2 }
  0x31   : > { %1817 = vmatprep.mubr.msk.f32.mxu1 %vm395_vm2, %v389_v36  ;;  %v1012_v36 = vrot.slane %v2224_v50, 2  ;;  %v1032_v57 = vrot.slane %v2106_v35, 2  ;;  %v1035_v28 = vrot.slane %v2130_v47, 2  ;;  %v1040_v47 = vrot.slane %v2168_v1, 2 }
  0x32   : > { %v1045_v1 = vrot.slane %v2186_v17, 2  ;;  %v1050_v17 = vrot.slane %v2218_v43, 2  ;;  %v1055_v43 = vrot.slane %v2253_v19, 2  ;;  %v1060_v19 = vrot.slane %v2285_v58, 2 }
  0x33   : > { %1794 = vmatmul.mubr.msk.f32.gmra.mxu0 %vm395_vm2, %v351_v37  ;;  %v1017_v37 = vrot.slane %v2256_v22, 2 }
  0x34   : > { %1818 = vmatmul.mubr.msk.f32.gmra.mxu1 %vm395_vm2, %v391_v13  ;;  %1876 = vmatprep.mubr.msk.f32.mxu0 %vm395_vm2, %v984_v38  ;;  %v1018_v13 = vrot.slane %v2259_v23, 2  ;;  %v1022_v38 = vrot.slane %v2048_v6, 2 }
  0x35   : > { %1824 = vmatprep.mubr.msk.f32.mxu1 %vm395_vm2, %v2042_v4  ;;  %v994_v4 = vsel %vm981_vm3, %v992_v60, %v993_v40  ;;  %v1037_v60 = vrot.slane %v2144_v54, 2 }
  0x37   : > { %1877 = vmatmul.mubr.msk.f32.vlgmr.msra.gmra.mxu0 %vm395_vm2, %v986_v11  ;;  %v1028_v11 = vrot.slane %v2077_v21, 2 }
  0x38   : > { %1825 = vmatmul.mubr.msk.f32.vlgmr.msra.gmra.mxu1 %vm395_vm2, %v2045_v5  ;;  %1879 = vmatprep.mubr.msk.f32.mxu0 %vm395_vm2, %v989_v31  ;;  %v996_v5 = vsel %vm981_vm3, %v993_v40, %v995_v27  ;;  %v1033_v31 = vrot.slane %v2114_v39, 2  ;;  %v1038_v40 = vrot.slane %v2147_v55, 2  ;;  %v1043_v27 = vrot.slane %v2175_v7, 2 }
  0x39   : > { %1827 = vmatprep.mubr.msk.f32.mxu1 %vm395_vm2, %v2065_v15  ;;  %v999_v15 = vsel %vm981_vm3, %v997_v59, %v998_v63  ;;  %v1048_v59 = vrot.slane %v2202_v29, 2 }
  0x3b   : > { %1880 = vmatmul.mubr.msk.f32.gmra.mxu0 %vm395_vm2, %v991_v46  ;;  %v1042_v46 = vrot.slane %v2172_v3, 2 }
  0x3c   : > { %1828 = vmatmul.mubr.msk.f32.gmra.mxu1 %vm395_vm2, %v2070_v18  ;;  %1882 = vmatprep.mubr.msk.f32.mxu0 %vm395_vm2, %v994_v4  ;;  %v1001_v18 = vsel %vm981_vm3, %v998_v63, %v1000_v41  ;;  %v1047_v4 = vrot.slane %v2199_v26, 2  ;;  %v1052_v63 = vrot.slane %v2231_v52, 2 }
  0x3d   : > { %1830 = vmatprep.mubr.msk.f32.mxu1 %vm395_vm2, %v2100_v33  ;;  %v1004_v33 = vsel %vm981_vm3, %v1002_v0, %v1003_v10  ;;  %v2683_v0 = vld [vmem:[#allocation3_spill] sm:$0xff] }
  0x3f   : > { %1883 = vmatmul.mubr.msk.f32.gmra.mxu0 %vm395_vm2, %v996_v5  ;;  %v2682_v5 = vld [vmem:[#allocation2_spill] sm:$0xff] }
  0x40   : > { %1831 = vmatmul.mubr.msk.f32.gmra.mxu1 %vm395_vm2, %v2103_v34  ;;  %1885 = vmatprep.mubr.msk.f32.mxu0 %vm395_vm2, %v999_v15  ;;  %v1006_v34 = vsel %vm981_vm3, %v1003_v10, %v1005_v61  ;;  %v1053_v41 = vrot.slane %v2682_v5, 2  ;;  %v1057_v15 = vrot.slane %v2263_v30, 2  ;;  %v1058_v10 = vrot.slane %v2683_v0, 2 }
  0x41   : > { %1833 = vmatprep.mubr.msk.f32.mxu1 %vm395_vm2, %v2133_v48  ;;  %v1009_v48 = vsel %vm981_vm3, %v1007_v12, %v1008_v32 }
  0x43   : > { %1886 = vmatmul.mubr.msk.f32.gmra.mxu0 %vm395_vm2, %v1001_v18 }
  0x44   : > { %1834 = vmatmul.mubr.msk.f32.gmra.mxu1 %vm395_vm2, %v2136_v49  ;;  %1888 = vmatprep.mubr.msk.f32.mxu0 %vm395_vm2, %v1004_v33  ;;  %v1011_v49 = vsel %vm981_vm3, %v1008_v32, %v1010_v16 }
  0x45   : > { %1836 = vmatprep.mubr.msk.f32.mxu1 %vm395_vm2, %v2150_v56  ;;  %v1014_v56 = vsel %vm981_vm3, %v1012_v36, %v1013_v2 }
  0x47   : > { %1889 = vmatmul.mubr.msk.f32.gmra.mxu0 %vm395_vm2, %v1006_v34 }
  0x48   : > { %1837 = vmatmul.mubr.msk.f32.gmra.mxu1 %vm395_vm2, %v2161_v62  ;;  %1891 = vmatprep.mubr.msk.f32.mxu0 %vm395_vm2, %v1009_v48  ;;  %v1016_v62 = vsel %vm981_vm3, %v1013_v2, %v1015_v42 }
  0x49   : > { %1839 = vmatprep.mubr.msk.f32.mxu1 %vm395_vm2, %v2192_v24  ;;  %v1019_v24 = vsel %vm981_vm3, %v1017_v37, %v1018_v13 }
  0x4b   : > { %1892 = vmatmul.mubr.msk.f32.gmra.mxu0 %vm395_vm2, %v1011_v49 }
  0x4c   : > { %1840 = vmatmul.mubr.msk.f32.gmra.mxu1 %vm395_vm2, %v2195_v25  ;;  %1894 = vmatprep.mubr.msk.f32.mxu0 %vm395_vm2, %v1014_v56  ;;  %v1021_v25 = vsel %vm981_vm3, %v1018_v13, %v1020_v8 }
  0x4d   : > { %1842 = vmatprep.mubr.msk.f32.mxu1 %vm395_vm2, %v2224_v50  ;;  %v1024_v50 = vsel %vm981_vm3, %v1022_v38, %v1023_v44 }
  0x4f   : > { %1895 = vmatmul.mubr.msk.f32.gmra.mxu0 %vm395_vm2, %v1016_v62 }
  0x50   : > { %1843 = vmatmul.mubr.msk.f32.gmra.mxu1 %vm395_vm2, %v2227_v51  ;;  %1897 = vmatprep.mubr.msk.f32.mxu0 %vm395_vm2, %v1019_v24  ;;  %v1026_v51 = vsel %vm981_vm3, %v1023_v44, %v1025_v53 }
  0x51   : > { %1845 = vmatprep.mubr.msk.f32.mxu1 %vm395_vm2, %v2256_v22  ;;  %v1029_v22 = vsel %vm981_vm3, %v1027_v45, %v1028_v11 }
  0x53   : > { %1898 = vmatmul.mubr.msk.f32.gmra.mxu0 %vm395_vm2, %v1021_v25 }
  0x54   : > { %1846 = vmatmul.mubr.msk.f32.gmra.mxu1 %vm395_vm2, %v2259_v23  ;;  %1900 = vmatprep.mubr.msk.f32.mxu0 %vm395_vm2, %v1024_v50  ;;  %v1031_v23 = vsel %vm981_vm3, %v1028_v11, %v1030_v14 }
  0x55   : > { %1848 = vmatprep.mubr.msk.f32.mxu1 %vm395_vm2, %v2048_v6  ;;  %v1034_v6 = vsel %vm981_vm3, %v1032_v57, %v1033_v31 }
  0x57   : > { %1901 = vmatmul.mubr.msk.f32.gmra.mxu0 %vm395_vm2, %v1026_v51 }
  0x58   : > { %1849 = vmatmul.mubr.msk.f32.gmra.mxu1 %vm395_vm2, %v2053_v9  ;;  %1903 = vmatprep.mubr.msk.f32.mxu0 %vm395_vm2, %v1029_v22  ;;  %v1036_v9 = vsel %vm981_vm3, %v1033_v31, %v1035_v28 }
  0x59   : > { %1851 = vmatprep.mubr.msk.f32.mxu1 %vm395_vm2, %v2074_v20  ;;  %v1039_v20 = vsel %vm981_vm3, %v1037_v60, %v1038_v40  ;;  %v2535_v60 = vld [vmem:[%s2674_s2] ss:$0 sm:$0xff] }
  0x5b   : > { %1904 = vmatmul.mubr.msk.f32.gmra.mxu0 %vm395_vm2, %v1031_v23 }
  0x5c   : > { %1852 = vmatmul.mubr.msk.f32.gmra.mxu1 %vm395_vm2, %v2077_v21  ;;  %1906 = vmatprep.mubr.msk.f32.mxu0 %vm395_vm2, %v1034_v6  ;;  %v1041_v21 = vsel %vm981_vm3, %v1038_v40, %v1040_v47 }
  0x5d   : > { %1854 = vmatprep.mubr.msk.f32.mxu1 %vm395_vm2, %v2106_v35  ;;  %v1044_v35 = vsel %vm981_vm3, %v1042_v46, %v1043_v27 }
  0x5f   : > { %1907 = vmatmul.mubr.msk.f32.gmra.mxu0 %vm395_vm2, %v1036_v9 }
  0x60   : > { %1855 = vmatmul.mubr.msk.f32.gmra.mxu1 %vm395_vm2, %v2114_v39  ;;  %1909 = vmatprep.mubr.msk.f32.mxu0 %vm395_vm2, %v1039_v20  ;;  %v1046_v39 = vsel %vm981_vm3, %v1043_v27, %v1045_v1 }
  0x61   : > { %1857 = vmatprep.mubr.msk.f32.mxu1 %vm395_vm2, %v2144_v54  ;;  %v1049_v54 = vsel %vm981_vm3, %v1047_v4, %v1048_v59 }
  0x63   : > { %1910 = vmatmul.mubr.msk.f32.gmra.mxu0 %vm395_vm2, %v1041_v21 }
  0x64   : > { %1858 = vmatmul.mubr.msk.f32.gmra.mxu1 %vm395_vm2, %v2147_v55  ;;  %1912 = vmatprep.mubr.msk.f32.mxu0 %vm395_vm2, %v1044_v35  ;;  %v1051_v55 = vsel %vm981_vm3, %v1048_v59, %v1050_v17 }
  0x65   : > { %1860 = vmatprep.mubr.msk.f32.mxu1 %vm395_vm2, %v2172_v3  ;;  %v1054_v3 = vsel %vm981_vm3, %v1052_v63, %v1053_v41 }
  0x67   : > { %1913 = vmatmul.mubr.msk.f32.gmra.mxu0 %vm395_vm2, %v1046_v39 }
  0x68   : > { %1861 = vmatmul.mubr.msk.f32.gmra.mxu1 %vm395_vm2, %v2175_v7  ;;  %1915 = vmatprep.mubr.msk.f32.mxu0 %vm395_vm2, %v1049_v54  ;;  %v1056_v7 = vsel %vm981_vm3, %v1053_v41, %v1055_v43 }
  0x69   : > { %1863 = vmatprep.mubr.msk.f32.mxu1 %vm395_vm2, %v2199_v26  ;;  %v1059_v26 = vsel %vm981_vm3, %v1057_v15, %v1058_v10 }
  0x6b   : > { %1916 = vmatmul.mubr.msk.f32.gmra.mxu0 %vm395_vm2, %v1051_v55 }
  0x6c   : > { %1864 = vmatmul.mubr.msk.f32.gmra.mxu1 %vm395_vm2, %v2202_v29  ;;  %1918 = vmatprep.mubr.msk.f32.mxu0 %vm395_vm2, %v1054_v3  ;;  %v1061_v29 = vsel %vm981_vm3, %v1058_v10, %v1060_v19 }
  0x6d   : > { %1866 = vmatprep.mubr.msk.f32.mxu1 %vm395_vm2, %v2231_v52 }
  0x6f   : > { %1919 = vmatmul.mubr.msk.f32.gmra.mxu0 %vm395_vm2, %v1056_v7 }
  0x70   : > { %1867 = vmatmul.mubr.msk.f32.gmra.mxu1 %vm395_vm2, %v2682_v5  ;;  %1921 = vmatprep.mubr.msk.f32.mxu0 %vm395_vm2, %v1059_v26 }
  0x71   : > { %1869 = vmatprep.mubr.msk.f32.mxu1 %vm395_vm2, %v2263_v30 }
  0x73   : > { %1922 = vmatmul.mubr.msk.f32.gmra.mxu0 %vm395_vm2, %v1061_v29 }
  0x74   : > { %1870 = vmatmul.mubr.msk.f32.gmra.mxu1 %vm395_vm2, %v2683_v0 }
  0xd7   : > { %v1774_v52 = vpop.f32.mrf.mxu0 }
  0xd8   : > { %v2481_v58 = vpop.f32.mrf.mxu1 }
  0xd9   : > { %v530_v18 = vpop.f32.mrf.mxu0 }
  0xda   : > { %v2483_v61 = vpop.f32.mrf.mxu1 }
  0xdb   : > { %v1777_v33 = vpop.f32.mrf.mxu0 }
  0xdc   : > { %v2485_v12 = vpop.f32.mrf.mxu1 }
  0xdd   : > { %v540_v32 = vpop.f32.mrf.mxu0 }
  0xde   : > { %v2487_v34 = vpop.f32.mrf.mxu1 }
  0xdf   : > { %v1780_v16 = vpop.f32.mrf.mxu0 }
  0xe0   : > { %v2489_v48 = vpop.f32.mrf.mxu1 }
  0xe1   : > { %v550_v30 = vpop.f32.mrf.mxu0 }
  0xe2   : > { %v2491_v36 = vpop.f32.mrf.mxu1 }
  0xe3   : > { %v1783_v2 = vpop.f32.mrf.mxu0 }
  0xe4   : > { %v2493_v49 = vpop.f32.mrf.mxu1 }
  0xe5   : > { %v2495_v42 = vpop.f32.mrf.mxu0 }
  0xe6   : > { %v2497_v56 = vpop.f32.mrf.mxu1 }
  0xe7   : > { %v2499_v37 = vpop.f32.mrf.mxu0 }
  0xe8   : > { %v2501_v13 = vpop.f32.mrf.mxu1 }
  0xe9   : > { %v2503_v62 = vpop.f32.mrf.mxu0 }
  0xea   : > { %v2505_v8 = vpop.f32.mrf.mxu1 }
  0xeb   : > { %v2507_v24 = vpop.f32.mrf.mxu0 }
  0xec   : > { %v2509_v38 = vpop.f32.mrf.mxu1 }
  0xed   : > { %v2511_v44 = vpop.f32.mrf.mxu0 }
  0xee   : > { %v2513_v25 = vpop.f32.mrf.mxu1 }
  0xef   : > { %v2515_v53 = vpop.f32.mrf.mxu0 }
  0xf0   : > { %v2517_v50 = vpop.f32.mrf.mxu1 }
  0xf1   : > { %v2519_v45 = vpop.f32.mrf.mxu0 }
  0xf2   : > { %v2521_v11 = vpop.f32.mrf.mxu1 }
  0xf3   : > { %v2523_v51 = vpop.f32.mrf.mxu0 }
  0xf4   : > { %v2525_v14 = vpop.f32.mrf.mxu1 }
  0xf5   : > { %v2527_v22 = vpop.f32.mrf.mxu0 }
  0xf6   : > { %v2529_v57 = vpop.f32.mrf.mxu1 }
  0xf7   : > { %v1878_v31 = vpop.f32.mrf.mxu0 }
  0xf8   : > { %v1826_v23 = vpop.f32.mrf.mxu1 }
  0xf9   : > { %v828_v28 = vadd.f32 %v1826_v23, %v1774_v52  ;;  %v1198_v6 = vpop.f32.mrf.mxu0 }
  0xfa   : > { %v822_v40 = vpop.f32.mrf.mxu1 }
  0xfb   : > { %v1358_v9 = vadd.f32 %v1878_v31, %v828_v28  ;;  %v823_v47 = vadd.f32 %v822_v40, %v530_v18  ;;  %v1881_v20 = vpop.f32.mrf.mxu0 }
  0xfc   : > { %v1829_v46 = vpop.f32.mrf.mxu1 }
  0xfd   : > { %v1397_v27 = vadd.f32 %v2535_v60, %v1358_v9  ;;  %v1357_v21 = vadd.f32 %v1198_v6, %v823_v47  ;;  %v838_v1 = vadd.f32 %v1829_v46, %v1777_v33  ;;  %v1208_v35 = vpop.f32.mrf.mxu0 }
  0xfe   : > { %v832_v4 = vpop.f32.mrf.mxu1 }
  0xff   : > { %1430 = vst.msk [vmem:[%s2540_s10 + $0x8] sm:$0xff] %vm1428_vm4, %v1397_v27  ;;  %v1396_v59 = vadd.f32 %v2535_v60, %v1357_v21  ;;  %v1360_v39 = vadd.f32 %v1881_v20, %v838_v1  ;;  %v833_v17 = vadd.f32 %v832_v4, %v540_v32  ;;  %v1884_v54 = vpop.f32.mrf.mxu0 }
 0x100   : > { %v1832_v63 = vpop.f32.mrf.mxu1 }
 0x101   : > { %1429 = vst.msk [vmem:[%s2540_s10] sm:$0xff] %vm1428_vm4, %v1396_v59  ;;  %v1399_v5 = vadd.f32 %v2535_v60, %v1360_v39  ;;  %v1359_v41 = vadd.f32 %v1208_v35, %v833_v17  ;;  %v848_v55 = vadd.f32 %v1832_v63, %v1780_v16  ;;  %v1218_v43 = vpop.f32.mrf.mxu0 }
 0x102   : > { %v842_v3 = vpop.f32.mrf.mxu1 }
 0x103   : > { %1432 = vst.msk [vmem:[%s2540_s10 + $0x18] sm:$0xff] %vm1428_vm4, %v1399_v5  ;;  %v1398_v15 = vadd.f32 %v2535_v60, %v1359_v41  ;;  %v1362_v0 = vadd.f32 %v1884_v54, %v848_v55  ;;  %v843_v10 = vadd.f32 %v842_v3, %v550_v30  ;;  %v1887_v7 = vpop.f32.mrf.mxu0 }
 0x104   : > { %v1835_v19 = vpop.f32.mrf.mxu1 }
 0x105   : > { %1431 = vst.msk [vmem:[%s2540_s10 + $0x10] sm:$0xff] %vm1428_vm4, %v1398_v15  ;;  %v1401_v26 = vadd.f32 %v2535_v60, %v1362_v0  ;;  %v1361_v29 = vadd.f32 %v1218_v43, %v843_v10  ;;  %v858_v52 = vadd.f32 %v1835_v19, %v1783_v2  ;;  %v1228_v18 = vpop.f32.mrf.mxu0 }
 0x106   : > { %v852_v33 = vpop.f32.mrf.mxu1 }
 0x107   : > { %1434 = vst.msk [vmem:[%s2540_s10 + $0x28] sm:$0xff] %vm1428_vm4, %v1401_v26  ;;  %v1400_v32 = vadd.f32 %v2535_v60, %v1361_v29  ;;  %v1364_v16 = vadd.f32 %v1887_v7, %v858_v52  ;;  %v853_v31 = vadd.f32 %v852_v33, %v2495_v42  ;;  %v1890_v30 = vpop.f32.mrf.mxu0 }
 0x108   : > { %v1838_v23 = vpop.f32.mrf.mxu1 }
 0x109   : > { %1433 = vst.msk [vmem:[%s2540_s10 + $0x20] sm:$0xff] %vm1428_vm4, %v1400_v32  ;;  %v1403_v28 = vadd.f32 %v2535_v60, %v1364_v16  ;;  %v1363_v6 = vadd.f32 %v1228_v18, %v853_v31  ;;  %v868_v2 = vadd.f32 %v1838_v23, %v2499_v37  ;;  %v1238_v40 = vpop.f32.mrf.mxu0 }
 0x10a   : > { %v862_v9 = vpop.f32.mrf.mxu1 }
 0x10b   : > { %1436 = vst.msk [vmem:[%s2540_s10 + $0x38] sm:$0xff] %vm1428_vm4, %v1403_v28  ;;  %v1402_v47 = vadd.f32 %v2535_v60, %v1363_v6  ;;  %v1366_v20 = vadd.f32 %v1890_v30, %v868_v2  ;;  %v863_v42 = vadd.f32 %v862_v9, %v2503_v62  ;;  %v1893_v46 = vpop.f32.mrf.mxu0 }
 0x10c   : > { %v1841_v27 = vpop.f32.mrf.mxu1 }
 0x10d   : > { %1435 = vst.msk [vmem:[%s2540_s10 + $0x30] sm:$0xff] %vm1428_vm4, %v1402_v47  ;;  %v1405_v21 = vadd.f32 %v2535_v60, %v1366_v20  ;;  %v1365_v1 = vadd.f32 %v1238_v40, %v863_v42  ;;  %v878_v37 = vadd.f32 %v1841_v27, %v2507_v24  ;;  %v1248_v35 = vpop.f32.mrf.mxu0 }
 0x10e   : > { %v872_v4 = vpop.f32.mrf.mxu1 }
 0x10f   : > { %1438 = vst.msk [vmem:[%s2540_s10 + $0x48] sm:$0xff] %vm1428_vm4, %v1405_v21  ;;  %v1404_v59 = vadd.f32 %v2535_v60, %v1365_v1  ;;  %v1368_v39 = vadd.f32 %v1893_v46, %v878_v37  ;;  %v873_v62 = vadd.f32 %v872_v4, %v2511_v44  ;;  %v1896_v17 = vpop.f32.mrf.mxu0 }
 0x110   : > { %v1844_v54 = vpop.f32.mrf.mxu1 }
 0x111   : > { %1437 = vst.msk [vmem:[%s2540_s10 + $0x40] sm:$0xff] %vm1428_vm4, %v1404_v59  ;;  %v1407_v63 = vadd.f32 %v2535_v60, %v1368_v39  ;;  %v1367_v5 = vadd.f32 %v1248_v35, %v873_v62  ;;  %v888_v24 = vadd.f32 %v1844_v54, %v2515_v53  ;;  %v1258_v41 = vpop.f32.mrf.mxu0 }
 0x112   : > { %v882_v55 = vpop.f32.mrf.mxu1 }
 0x113   : > { %1440 = vst.msk [vmem:[%s2540_s10 + $0x58] sm:$0xff] %vm1428_vm4, %v1407_v63  ;;  %v1406_v43 = vadd.f32 %v2535_v60, %v1367_v5  ;;  %v1370_v3 = vadd.f32 %v1896_v17, %v888_v24  ;;  %v883_v44 = vadd.f32 %v882_v55, %v2519_v45  ;;  %v1899_v15 = vpop.f32.mrf.mxu0 }
 0x114   : > { %v1847_v0 = vpop.f32.mrf.mxu1 }
 0x115   : > { %1439 = vst.msk [vmem:[%s2540_s10 + $0x50] sm:$0xff] %vm1428_vm4, %v1406_v43  ;;  %v1409_v10 = vadd.f32 %v2535_v60, %v1370_v3  ;;  %v1369_v7 = vadd.f32 %v1258_v41, %v883_v44  ;;  %v898_v53 = vadd.f32 %v1847_v0, %v2523_v51  ;;  %v1268_v19 = vpop.f32.mrf.mxu0 }
 0x116   : > { %v892_v26 = vpop.f32.mrf.mxu1 }
 0x117   : > { %1442 = vst.msk [vmem:[%s2540_s10 + $0x68] sm:$0xff] %vm1428_vm4, %v1409_v10  ;;  %v1408_v29 = vadd.f32 %v2535_v60, %v1369_v7  ;;  %v1372_v52 = vadd.f32 %v1899_v15, %v898_v53  ;;  %v893_v45 = vadd.f32 %v892_v26, %v2527_v22  ;;  %v1902_v18 = vpop.f32.mrf.mxu0 }
 0x118   : > { %v1850_v33 = vpop.f32.mrf.mxu1 }
 0x119   : > { %1441 = vst.msk [vmem:[%s2540_s10 + $0x60] sm:$0xff] %vm1428_vm4, %v1408_v29  ;;  %v1411_v32 = vadd.f32 %v2535_v60, %v1372_v52  ;;  %v1371_v16 = vadd.f32 %v1268_v19, %v893_v45  ;;  %v908_v51 = vadd.f32 %v1850_v33, %v2481_v58  ;;  %v1278_v31 = vpop.f32.mrf.mxu0 }
 0x11a   : > { %v902_v30 = vpop.f32.mrf.mxu1 }
 0x11b   : > { %1444 = vst.msk [vmem:[%s2540_s10 + $0x78] sm:$0xff] %vm1428_vm4, %v1411_v32  ;;  %v1410_v23 = vadd.f32 %v2535_v60, %v1371_v16  ;;  %v1374_v28 = vadd.f32 %v1902_v18, %v908_v51  ;;  %v903_v22 = vadd.f32 %v902_v30, %v2483_v61  ;;  %v1905_v6 = vpop.f32.mrf.mxu0 }
 0x11c   : > { %v1853_v2 = vpop.f32.mrf.mxu1 }
 0x11d   : > { %1443 = vst.msk [vmem:[%s2540_s10 + $0x70] sm:$0xff] %vm1428_vm4, %v1410_v23  ;;  %v1413_v40 = vadd.f32 %v2535_v60, %v1374_v28  ;;  %v1373_v9 = vadd.f32 %v1278_v31, %v903_v22  ;;  %v918_v58 = vadd.f32 %v1853_v2, %v2485_v12  ;;  %v1288_v47 = vpop.f32.mrf.mxu0 }
 0x11e   : > { %v912_v20 = vpop.f32.mrf.mxu1 }
 0x11f   : > { %1446 = vst.msk [vmem:[%s2540_s10 + $0x88] sm:$0xff] %vm1428_vm4, %v1413_v40  ;;  %v1412_v42 = vadd.f32 %v2535_v60, %v1373_v9  ;;  %v1376_v46 = vadd.f32 %v1905_v6, %v918_v58  ;;  %v913_v61 = vadd.f32 %v912_v20, %v2487_v34  ;;  %v1908_v27 = vpop.f32.mrf.mxu0 }
 0x120   : > { %v1856_v21 = vpop.f32.mrf.mxu1 }
 0x121   : > { %1445 = vst.msk [vmem:[%s2540_s10 + $0x80] sm:$0xff] %vm1428_vm4, %v1412_v42  ;;  %v1415_v1 = vadd.f32 %v2535_v60, %v1376_v46  ;;  %v1375_v37 = vadd.f32 %v1288_v47, %v913_v61  ;;  %v928_v12 = vadd.f32 %v1856_v21, %v2489_v48  ;;  %v1298_v35 = vpop.f32.mrf.mxu0 }
 0x122   : > { %v922_v4 = vpop.f32.mrf.mxu1 }
 0x123   : > { %1448 = vst.msk [vmem:[%s2540_s10 + $0x98] sm:$0xff] %vm1428_vm4, %v1415_v1  ;;  %v1414_v59 = vadd.f32 %v2535_v60, %v1375_v37  ;;  %v1378_v39 = vadd.f32 %v1908_v27, %v928_v12  ;;  %v923_v34 = vadd.f32 %v922_v4, %v2491_v36  ;;  %v1911_v62 = vpop.f32.mrf.mxu0 }
 0x124   : > { %v1859_v17 = vpop.f32.mrf.mxu1 }
 0x125   : > { %1447 = vst.msk [vmem:[%s2540_s10 + $0x90] sm:$0xff] %vm1428_vm4, %v1414_v59  ;;  %v1417_v54 = vadd.f32 %v2535_v60, %v1378_v39  ;;  %v1377_v63 = vadd.f32 %v1298_v35, %v923_v34  ;;  %v938_v48 = vadd.f32 %v1859_v17, %v2493_v49  ;;  %v1308_v5 = vpop.f32.mrf.mxu0 }
 0x126   : > { %v932_v24 = vpop.f32.mrf.mxu1 }
 0x127   : > { %1450 = vst.msk [vmem:[%s2540_s10 + $0xa8] sm:$0xff] %vm1428_vm4, %v1417_v54  ;;  %v1416_v41 = vadd.f32 %v2535_v60, %v1377_v63  ;;  %v1380_v55 = vadd.f32 %v1911_v62, %v938_v48  ;;  %v933_v36 = vadd.f32 %v932_v24, %v2497_v56  ;;  %v1914_v43 = vpop.f32.mrf.mxu0 }
 0x128   : > { %v1862_v3 = vpop.f32.mrf.mxu1 }
 0x129   : > { %1449 = vst.msk [vmem:[%s2540_s10 + $0xa0] sm:$0xff] %vm1428_vm4, %v1416_v41  ;;  %v1419_v44 = vadd.f32 %v2535_v60, %v1380_v55  ;;  %v1379_v15 = vadd.f32 %v1308_v5, %v933_v36  ;;  %v948_v49 = vadd.f32 %v1862_v3, %v2501_v13  ;;  %v1318_v0 = vpop.f32.mrf.mxu0 }
 0x12a   : > { %v942_v10 = vpop.f32.mrf.mxu1 }
 0x12b   : > { %1452 = vst.msk [vmem:[%s2540_s10 + $0xb8] sm:$0xff] %vm1428_vm4, %v1419_v44  ;;  %v1418_v7 = vadd.f32 %v2535_v60, %v1379_v15  ;;  %v1382_v53 = vadd.f32 %v1914_v43, %v948_v49  ;;  %v943_v56 = vadd.f32 %v942_v10, %v2505_v8  ;;  %v1917_v19 = vpop.f32.mrf.mxu0 }
 0x12c   : > { %v1865_v26 = vpop.f32.mrf.mxu1 }
 0x12d   : > { %1451 = vst.msk [vmem:[%s2540_s10 + $0xb0] sm:$0xff] %vm1428_vm4, %v1418_v7  ;;  %v1421_v29 = vadd.f32 %v2535_v60, %v1382_v53  ;;  %v1381_v52 = vadd.f32 %v1318_v0, %v943_v56  ;;  %v958_v13 = vadd.f32 %v1865_v26, %v2509_v38  ;;  %v1328_v45 = vpop.f32.mrf.mxu0 }
 0x12e   : > { %v952_v18 = vpop.f32.mrf.mxu1 }
 0x12f   : > { %1454 = vst.msk [vmem:[%s2540_s10 + $0xc8] sm:$0xff] %vm1428_vm4, %v1421_v29  ;;  %v1420_v33 = vadd.f32 %v2535_v60, %v1381_v52  ;;  %v1384_v32 = vadd.f32 %v1917_v19, %v958_v13  ;;  %v953_v8 = vadd.f32 %v952_v18, %v2513_v25  ;;  %v1920_v16 = vpop.f32.mrf.mxu0 }
 0x130   : > { %v1868_v51 = vpop.f32.mrf.mxu1 }
 0x131   : > { %1453 = vst.msk [vmem:[%s2540_s10 + $0xc0] sm:$0xff] %vm1428_vm4, %v1420_v33  ;;  %v1423_v31 = vadd.f32 %v2535_v60, %v1384_v32  ;;  %v1383_v30 = vadd.f32 %v1328_v45, %v953_v8  ;;  %v968_v38 = vadd.f32 %v1868_v51, %v2517_v50  ;;  %v1338_v23 = vpop.f32.mrf.mxu0 }
 0x132   : > { %v962_v28 = vpop.f32.mrf.mxu1 }
 0x133   : > { %1456 = vst.msk [vmem:[%s2540_s10 + $0xd8] sm:$0xff] %vm1428_vm4, %v1423_v31  ;;  %v1422_v22 = vadd.f32 %v2535_v60, %v1383_v30  ;;  %v1386_v6 = vadd.f32 %v1920_v16, %v968_v38  ;;  %v963_v25 = vadd.f32 %v962_v28, %v2521_v11  ;;  %v1923_v40 = vpop.f32.mrf.mxu0 }
 0x134   : > { %v1871_v2 = vpop.f32.mrf.mxu1 }
 0x135   : > { %1455 = vst.msk [vmem:[%s2540_s10 + $0xd0] sm:$0xff] %vm1428_vm4, %v1422_v22  ;;  %v1425_v9 = vadd.f32 %v2535_v60, %v1386_v6  ;;  %v1385_v58 = vadd.f32 %v1338_v23, %v963_v25  ;;  %v978_v50 = vadd.f32 %v1871_v2, %v2525_v14  ;;  %v1348_v11 = vpop.f32.mrf.mxu0 }
 0x136   : > { %v972_v47 = vpop.f32.mrf.mxu1 }
 0x137   : > { %1458 = vst.msk [vmem:[%s2540_s10 + $0xe8] sm:$0xff] %vm1428_vm4, %v1425_v9  ;;  %v1424_v20 = vadd.f32 %v2535_v60, %v1385_v58  ;;  %v1388_v42 = vadd.f32 %v1923_v40, %v978_v50  ;;  %v973_v46 = vadd.f32 %v972_v47, %v2529_v57 }
 0x139   : > { %1457 = vst.msk [vmem:[%s2540_s10 + $0xe0] sm:$0xff] %vm1428_vm4, %v1424_v20  ;;  %v1427_v61 = vadd.f32 %v2535_v60, %v1388_v42  ;;  %v1387_v27 = vadd.f32 %v1348_v11, %v973_v46 }
 0x13b   : > { %1460 = vst.msk [vmem:[%s2540_s10 + $0xf8] sm:$0xff] %vm1428_vm4, %v1427_v61  ;;  %v1426_v21 = vadd.f32 %v2535_v60, %v1387_v27 }
 0x13d   : > { %1459 = vst.msk [vmem:[%s2540_s10 + $0xf0] sm:$0xff] %vm1428_vm4, %v1426_v21 }
 0x13e PF: > { %s13_s14 = sadd.s32 1, %s1975_s14   ;;  %s2684_s12 = smov %s1971_s13 }
 0x13f   : > { %p10_p5 = scmp.ge.s32.totalorder %s13_s14, 4   ;;  %s2685_s13 = smov %s2687_s15 }
 0x141   :  { %12 = sbr.rel (!%p10_p5) target bundleno = 2 (0x2), region = 64 }

// kernel: single_conv3d_block_dsc.5
= control target key start
LH: loop header
LB: loop body
LE: loop exit
PB: predicated region body
PF: predicated region fallthrough
CT: control target
= control target key end

     0   :  { %s980_s27 = smov 0   ;;  %s982_s28 = smov 0   ;;  %s1041_s0 = inlined_call_operand.vmem [shape: f32[2,3,256], index: 0, kind: input, shape index: {}]   ;;  %s1042_s1 = inlined_call_operand.vmem [shape: f32[1,3,1], index: 1, kind: input, shape index: {}]   ;;  %s1043_s2 = inlined_call_operand.vmem [shape: f32[1,3,1], index: 2, kind: input, shape index: {}]   ;;  %s1044_s3 = inlined_call_operand.vmem [shape: s32[1,3,256], index: 3, kind: input, shape index: {}]   ;;  %s1045_s4 = inlined_call_operand.vmem [shape: f32[1,1,256], index: 4, kind: input, shape index: {}]   ;;  %s1046_s5 = inlined_call_operand.vmem [shape: f32[2,3,256], index: 5, kind: output, shape index: {0}]   ;;  %s1047_s6 = inlined_call_operand.vmem [shape: f32[2,3,256], index: 6, kind: output, shape index: {1}]   ;;  %s1048_s7 = inlined_call_operand.vmem [shape: s32[2,3,256], index: 7, kind: output, shape index: {2}]   ;;  %s1049_s8 = inlined_call_operand.vmem [shape: s32[2,3,256], index: 8, kind: output, shape index: {3}]  }
   0x1   :  { %s984_s29 = smov 0  }
   0x2 LB: > { %s31_s30 = sadd.s32 1, %s927_s28  ;;  %p857_p0 = scmp.ge.s32.totalorder %s931_s29, 1  ;;  %s931_s29 = sphi %s984_s29, %s19_s29   ;;  %s927_s28 = sphi %s982_s28, %s1051_s28   ;;  %s923_s27 = sphi %s980_s27, %s1050_s27  }
   0x3   : > { %p33_p1 = scmp.ge.s32.totalorder %s31_s30, 2  ;;  %p317_p2 = scmp.lt.s32.totalorder %s931_s29, 3 }
   0x5   : > { %s1053_s30 = smov (%p33_p1, %s31_s30), 0  ;;  %p318_p3 = pnand %p857_p0, %p317_p2 }
   0x6   : > { %p396_p4 = scmp.lt.s32.totalorder (!%p318_p3), %s923_s27, 1 }
   0x7   : > { %321 = sbr.rel (%p318_p3) target bundleno = 186 (0xba), region = 40 }
   0xc   : > { %v457_v0 = vld [vmem:[%s1042_s1] sm:$0x7]  ;;  %v933_v1 = vmov 0   ;;  %v934_v3 = vmov 839922192   ;;  %v465_v5 = vlaneseq  ;;  %s1055_s27 = smov (!%p396_p4, %s923_s27), 1 }
   0xd   : > { %905 = vset.pattern.permute.xlu0 %v933_v1  ;;  %v471_v2 = vld [vmem:[%s1043_s2] sm:$0x7]  ;;  %v463_v4 = vunpack.c.l.s4 %v934_v3  ;;  %s1004_s13 = sshll.u32 %s1055_s27, 3  ;;  %vm507_vm0 = vcmask 1040384   ;;  %vm510_vm1 = vcmask 1041408  }
   0xe   : > { %460 = vperm.xlu0 %905, %v457_v0   ;;  %v466_v7 = vshrl.u32 %v465_v5, 7  ;;  %s403_s16 = scalar_lea.vmem %s1041_s0, %s1004_s13  ;;  %v513_v21 = vld [vmem:[%s1045_s4] sm:$0x3]  ;;  %s424_s23 = scalar_lea.vmem %s1046_s5, %s1004_s13 }
   0xf   : > { %v464_v6 = vunpack.c.0.s8 %v463_v4  ;;  %v456_v11 = vld [vmem:[%s403_s16] sm:$0x77]  ;;  %s434_s26 = scalar_lea.vmem %s1047_s6, %s1004_s13  ;;  %s444_s10 = scalar_lea.vmem %s1048_s7, %s1004_s13 }
  0x10   : > { %v521_v16 = vsub.s32 1, %v466_v7  ;;  %v489_v17 = vsub.s32 0, %v466_v7  ;;  %v493_v18 = vsub.s32 4, %v466_v7  ;;  %v499_v19 = vsub.s32 2, %v466_v7  ;;  %v573_v37 = vld [vmem:[%s1044_s3] sm:$0x77]  ;;  %s454_s14 = scalar_lea.vmem %s1049_s8, %s1004_s13 }
  0x11   : > { %v467_v8 = vsub.s32 %v464_v6, %v466_v7  ;;  %v503_v20 = vsub.s32 6, %v466_v7  ;;  %v576_v48 = vcombine.high %v573_v37, %v573_v37 }
  0x12   : > { %474 = vperm.xlu0 %905, %v471_v2   ;;  %v518_v23 = vrot.slane %v513_v21, %v489_v17  ;;  %v522_v24 = vrot.slane %v513_v21, %v521_v16 }
  0x89   : > { %v461_v9 = vpop.permute.xlu0 %460 }
  0x8a   : > { %v468_v10 = vrot.slane %v461_v9, %v467_v8 }
  0x8c   : > { %v470_v13 = vmul.f32 %v468_v10, %v456_v11 }
  0x8d   : > { %v475_v12 = vpop.permute.xlu0 %474 }
  0x8e   : > { %v482_v14 = vrot.slane %v475_v12, %v467_v8 }
  0x90   : > { %v484_v15 = vadd.f32 %v482_v14, %v470_v13 }
  0x92   : > { %907 = vtanh.f32 %v484_v15 }
  0x9f   : > { %v908_v22 = vpop.eup %907 }
  0xa0   : > { %v490_v25 = vrot.slane %v908_v22, %v489_v17  ;;  %v494_v26 = vrot.slane %v908_v22, %v493_v18  ;;  %v500_v27 = vrot.slane %v908_v22, %v499_v19  ;;  %v504_v28 = vrot.slane %v908_v22, %v503_v20 }
  0xa2   : > { %v508_v29 = vsel %vm507_vm0, %v490_v25, 0.0  ;;  %v509_v30 = vsel %vm507_vm0, %v494_v26, 0.0 }
  0xa3   : > { %v511_v31 = vsel %vm510_vm1, %v508_v29, %v500_v27  ;;  %v512_v32 = vsel %vm510_vm1, %v509_v30, %v504_v28 }
  0xa4   : > { %v525_v33 = vadd.f32 %v518_v23, %v511_v31  ;;  %v526_v34 = vadd.f32 %v522_v24, %v512_v32 }
  0xa6   : > { %v527_v35 = vfloor.f32 %v525_v33  ;;  %v528_v36 = vfloor.f32 %v526_v34 }
  0xa8   : > { %v875_v38 = vtrunc.f32 %v527_v35  ;;  %v877_v39 = vtrunc.f32 %v528_v36  ;;  %v549_v40 = vadd.f32 1.0, %v527_v35  ;;  %v550_v41 = vadd.f32 1.0, %v528_v36 }
  0xa9   : > { %v562_v42 = vmax.f32 %v527_v35, 0.0  ;;  %v563_v43 = vmax.f32 %v528_v36, 0.0 }
  0xaa   : > { %v876_v44 = vcvt.f32.s32 %v875_v38  ;;  %v878_v45 = vcvt.f32.s32 %v877_v39  ;;  %v551_v46 = vmax.f32 %v549_v40, 0.0  ;;  %v552_v47 = vmax.f32 %v550_v41, 0.0 }
  0xab   : > { %v564_v49 = vmin.f32 %v562_v42, 16.0  ;;  %v565_v50 = vmin.f32 %v563_v43, 16.0 }
  0xac   : > { %vm531_vm2 = vcmp.gt.s32.totalorder %v876_v44, 0  ;;  %vm533_vm3 = vcmp.gt.s32.totalorder %v878_v45, 0  ;;  %v539_v51 = vadd.s32 1, %v876_v44  ;;  %v540_v52 = vadd.s32 1, %v878_v45 }
  0xad   : > { %v532_v53 = vsel %vm531_vm2, %v876_v44, 0  ;;  %v534_v54 = vsel %vm533_vm3, %v878_v45, 0  ;;  %v553_v55 = vmin.f32 %v551_v46, 16.0  ;;  %v554_v56 = vmin.f32 %v552_v47, 16.0 }
  0xae   : > { %vm535_vm4 = vcmp.lt.s32.totalorder %v532_v53, 15  ;;  %vm537_vm5 = vcmp.lt.s32.totalorder %v534_v54, 15  ;;  %vm541_vm6 = vcmp.gt.s32.totalorder %v539_v51, 0  ;;  %vm543_vm7 = vcmp.gt.s32.totalorder %v540_v52, 0 }
  0xaf   : > { %v536_v57 = vsel %vm535_vm4, %v532_v53, 15  ;;  %v538_v58 = vsel %vm537_vm5, %v534_v54, 15  ;;  %v542_v59 = vsel %vm541_vm6, %v539_v51, 0  ;;  %v544_v60 = vsel %vm543_vm7, %v540_v52, 0 }
  0xb0   : > { %vm545_vm8 = vcmp.lt.s32.totalorder %v542_v59, 15  ;;  %vm547_vm9 = vcmp.lt.s32.totalorder %v544_v60, 15  ;;  %v555_v61 = vsub.f32 %v553_v55, %v525_v33  ;;  %v556_v62 = vsub.f32 %v554_v56, %v526_v34 }
  0xb1   : > { %v546_v63 = vsel %vm545_vm8, %v542_v59, 15  ;;  %v548_v0 = vsel %vm547_vm9, %v544_v60, 15  ;;  %v566_v1 = vsub.f32 %v525_v33, %v564_v49  ;;  %v567_v2 = vsub.f32 %v526_v34, %v565_v50 }
  0xb2   : > { %v559_v3 = vcombine.low %v555_v61, %v556_v62  ;;  %v574_v4 = vmul.u32 18, %v536_v57  ;;  %v575_v5 = vmul.u32 18, %v538_v58 }
  0xb3   : > { %v570_v6 = vcombine.low %v566_v1, %v567_v2  ;;  %v581_v7 = vmul.u32 18, %v546_v63  ;;  %v582_v8 = vmul.u32 18, %v548_v0 }
  0xb4   : > { %561 = vst [vmem:[%s424_s23] sm:$0x77] %v559_v3  ;;  %v577_v9 = vadd.s32 %v574_v4, %v573_v37  ;;  %v578_v10 = vadd.s32 %v576_v48, %v575_v5 }
  0xb5   : > { %572 = vst [vmem:[%s434_s26] sm:$0x77] %v570_v6  ;;  %v583_v11 = vadd.s32 %v581_v7, %v573_v37  ;;  %v584_v12 = vadd.s32 %v582_v8, %v576_v48 }
  0xb6   : > { %v579_v13 = vcombine.low %v577_v9, %v578_v10 }
  0xb7   : > { %v585_v14 = vcombine.low %v583_v11, %v584_v12 }
  0xb8   : > { %580 = vst [vmem:[%s444_s10] sm:$0x77] %v579_v13 }
  0xb9   : > { %586 = vst [vmem:[%s454_s14] sm:$0x77] %v585_v14 }
  0xba PF: > { %s19_s29 = sadd.s32 1, %s931_s29   ;;  %s1050_s27 = smov %s927_s28 }
  0xbb   : > { %p16_p5 = scmp.ge.s32.totalorder %s19_s29, 4   ;;  %s1051_s28 = smov %s1053_s30 }
  0xbd   :  { %18 = sbr.rel (!%p16_p5) target bundleno = 2 (0x2), region = 112 }

// kernel: mul.13
= control target key start
LH: loop header
LB: loop body
LE: loop exit
PB: predicated region body
PF: predicated region fallthrough
CT: control target
= control target key end

     0   :  { %vm5_vm0 = vcmask 1041409   ;;  %vm9_vm1 = vcmask 1042434   ;;  %vm13_vm2 = vcmask 1043459   ;;  %vm47_vm3 = vcmask 7168   ;;  %s3383_s11 = smov 127   ;;  %s3384_s18 = smov 125   ;;  %s5562_s0 = inlined_call_operand.vmem [shape: f32[2,256,3], index: 0, kind: input, shape index: {}]   ;;  %s5563_s1 = inlined_call_operand.vmem [shape: f32[2,768], index: 1, kind: output, shape index: {}]  }
   0x1   :  { %v2735_v0 = vld [vmem:[%s5562_s0 + $0xd5] sm:$0x1]   ;;  %v2751_v11 = vld [vmem:[%s5562_s0 + $0xff] sm:$0x1]   ;;  %vm51_vm4 = vcmask 15360   ;;  %s3385_s10 = smov 126  }
   0x2   :  { %v2736_v1 = vld [vmem:[%s5562_s0 + $0x1d4] sm:$0x2]   ;;  %v2752_v14 = vld [vmem:[%s5562_s0 + $0x1fe] sm:$0x2]   ;;  %v2743_v19 = vld [vmem:[%s5562_s0 + $0xaa] sm:$0x1]  }
   0x3   :  { %v2737_v2 = vld [vmem:[%s5562_s0 + $0x53] sm:$0x4]   ;;  %v24_v4 = vsel %vm5_vm0, %v2736_v1, %v2735_v0  ;;  %v2753_v15 = vld [vmem:[%s5562_s0 + $0x7d] sm:$0x4]   ;;  %v107_v18 = vsel %vm5_vm0, %v2752_v14, %v2751_v11  ;;  %v2744_v20 = vld [vmem:[%s5562_s0 + $0x1a9] sm:$0x2]  }
   0x4   :  { %v2738_v3 = vld [vmem:[%s5562_s0 + $0x152] sm:$0x8]   ;;  %v28_v8 = vsel %vm9_vm1, %v2737_v2, %v24_v4  ;;  %v2754_v16 = vld [vmem:[%s5562_s0 + $0x17c] sm:$0x8]   ;;  %v111_v22 = vsel %vm9_vm1, %v2753_v15, %v107_v18  ;;  %v66_v23 = vsel %vm5_vm0, %v2744_v20, %v2743_v19  ;;  %v2745_v24 = vld [vmem:[%s5562_s0 + $0x28] sm:$0x4]  }
   0x5   :  { %v2739_v5 = vld [vmem:[%s5562_s0 + $0xd5] sm:$0x1]   ;;  %v32_v12 = vsel %vm13_vm2, %v2738_v3, %v28_v8  ;;  %v2746_v25 = vld [vmem:[%s5562_s0 + $0x127] sm:$0x8]   ;;  %v115_v27 = vsel %vm13_vm2, %v2754_v16, %v111_v22  ;;  %v70_v28 = vsel %vm9_vm1, %v2745_v24, %v66_v23  ;;  %v2755_v34 = vld [vmem:[%s5562_s0 + $0xd4] sm:$0x1]  }
   0x6   :  { %v2740_v6 = vld [vmem:[%s5562_s0 + $0x1d4] sm:$0x2]   ;;  %v2747_v26 = vld [vmem:[%s5562_s0 + $0x2a] sm:$0x1]   ;;  %116 = vrot.lane.b32.xlu1 %v115_v27, %s3384_s18  ;;  %v74_v32 = vsel %vm13_vm2, %v2746_v25, %v70_v28  ;;  %v2756_v35 = vld [vmem:[%s5562_s0 + $0x1d3] sm:$0x2]  }
   0x7   :  { %v2741_v7 = vld [vmem:[%s5562_s0 + $0x53] sm:$0x4]   ;;  %v38_v9 = vsel %vm5_vm0, %v2740_v6, %v2739_v5  ;;  %v2748_v29 = vld [vmem:[%s5562_s0 + $0x129] sm:$0x2]   ;;  %v128_v37 = vsel %vm5_vm0, %v2756_v35, %v2755_v34  ;;  %v2757_v38 = vld [vmem:[%s5562_s0 + $0x52] sm:$0x4]  }
   0x8   :  { %v2742_v10 = vld [vmem:[%s5562_s0 + $0x152] sm:$0x8]   ;;  %v42_v13 = vsel %vm9_vm1, %v2741_v7, %v38_v9  ;;  %v2749_v30 = vld [vmem:[%s5562_s0 + $0xa8] sm:$0x4]   ;;  %v80_v33 = vsel %vm5_vm0, %v2748_v29, %v2747_v26  ;;  %v2758_v39 = vld [vmem:[%s5562_s0 + $0x151] sm:$0x8]   ;;  %v132_v42 = vsel %vm9_vm1, %v2757_v38, %v128_v37 }
   0x9   :  { %v46_v17 = vsel %vm13_vm2, %v2742_v10, %v42_v13  ;;  %v2750_v31 = vld [vmem:[%s5562_s0 + $0x1a7] sm:$0x8]   ;;  %v84_v36 = vsel %vm9_vm1, %v2749_v30, %v80_v33  ;;  %v2759_v40 = vld [vmem:[%s5562_s0 + $0x29] sm:$0x1]   ;;  %v136_v47 = vsel %vm13_vm2, %v2758_v39, %v132_v42  ;;  %v2763_v49 = vld [vmem:[%s5562_s0 + $0xfe] sm:$0x1]  }
   0xa   :  { %v48_v21 = vsel %vm47_vm3, %v46_v17, %v32_v12  ;;  %v88_v41 = vsel %vm13_vm2, %v2750_v31, %v84_v36  ;;  %v2760_v43 = vld [vmem:[%s5562_s0 + $0x128] sm:$0x2]   ;;  %v2764_v50 = vld [vmem:[%s5562_s0 + $0x1fd] sm:$0x2]   ;;  %v2767_v57 = vld [vmem:[%s5562_s0 + $0xd3] sm:$0x1]  }
   0xb   :  { %49 = vrot.lane.b32.xlu0 %v48_v21, %s3383_s11  ;;  %v2761_v44 = vld [vmem:[%s5562_s0 + $0xa7] sm:$0x4]   ;;  %v90_v46 = vsel %vm51_vm4, %v88_v41, %v74_v32  ;;  %v149_v48 = vsel %vm5_vm0, %v2760_v43, %v2759_v40  ;;  %s3386_s11 = smov 124   ;;  %v169_v52 = vsel %vm5_vm0, %v2764_v50, %v2763_v49  ;;  %v2765_v53 = vld [vmem:[%s5562_s0 + $0x7c] sm:$0x4]   ;;  %s3387_s5 = smov 123  }
   0xc   :  { %v2762_v45 = vld [vmem:[%s5562_s0 + $0x1a6] sm:$0x8]   ;;  %137 = vrot.lane.b32.xlu1 %v136_v47, %s3386_s11  ;;  %v153_v51 = vsel %vm9_vm1, %v2761_v44, %v149_v48  ;;  %v2766_v54 = vld [vmem:[%s5562_s0 + $0x17b] sm:$0x8]   ;;  %v173_v56 = vsel %vm9_vm1, %v2765_v53, %v169_v52  ;;  %v2768_v58 = vld [vmem:[%s5562_s0 + $0x1d2] sm:$0x2]  }
   0xd   :  { %v157_v55 = vsel %vm13_vm2, %v2762_v45, %v153_v51  ;;  %v2769_v59 = vld [vmem:[%s5562_s0 + $0x51] sm:$0x4]   ;;  %v177_v60 = vsel %vm13_vm2, %v2766_v54, %v173_v56  ;;  %v190_v61 = vsel %vm5_vm0, %v2768_v58, %v2767_v57  ;;  %v2771_v63 = vld [vmem:[%s5562_s0 + $0x28] sm:$0x1]   ;;  %v2775_v5 = vld [vmem:[%s5562_s0 + $0xfd] sm:$0x1]  }
   0xe   :  { %v2770_v62 = vld [vmem:[%s5562_s0 + $0x150] sm:$0x8]   ;;  %v2772_v0 = vld [vmem:[%s5562_s0 + $0x127] sm:$0x2]   ;;  %v194_v1 = vsel %vm9_vm1, %v2769_v59, %v190_v61  ;;  %s3388_s6 = smov 122   ;;  %s3389_s27 = smov 121  }
   0xf   :  { %91 = vrot.lane.b32.xlu0 %v90_v46, %s3385_s10  ;;  %v211_v2 = vsel %vm5_vm0, %v2772_v0, %v2771_v63  ;;  %v2773_v3 = vld [vmem:[%s5562_s0 + $0xa6] sm:$0x4]   ;;  %v2776_v7 = vld [vmem:[%s5562_s0 + $0x1fc] sm:$0x2]   ;;  %v198_v9 = vsel %vm13_vm2, %v2770_v62, %v194_v1  ;;  %v2779_v13 = vld [vmem:[%s5562_s0 + $0xd2] sm:$0x1]  }
  0x10   :  { %v2774_v4 = vld [vmem:[%s5562_s0 + $0x1a5] sm:$0x8]   ;;  %178 = vrot.lane.b32.xlu1 %v177_v60, %s3388_s6  ;;  %v215_v6 = vsel %vm9_vm1, %v2773_v3, %v211_v2  ;;  %v2777_v8 = vld [vmem:[%s5562_s0 + $0x7b] sm:$0x4]   ;;  %v231_v11 = vsel %vm5_vm0, %v2776_v7, %v2775_v5  ;;  %v2780_v14 = vld [vmem:[%s5562_s0 + $0x1d1] sm:$0x2]  }
  0x11   :  { %v219_v10 = vsel %vm13_vm2, %v2774_v4, %v215_v6  ;;  %v2778_v12 = vld [vmem:[%s5562_s0 + $0x17a] sm:$0x8]   ;;  %v235_v15 = vsel %vm9_vm1, %v2777_v8, %v231_v11  ;;  %v252_v16 = vsel %vm5_vm0, %v2780_v14, %v2779_v13  ;;  %v2781_v17 = vld [vmem:[%s5562_s0 + $0x50] sm:$0x4]   ;;  %v2783_v19 = vld [vmem:[%s5562_s0 + $0x27] sm:$0x1]  }
  0x12   :  { %v2782_v18 = vld [vmem:[%s5562_s0 + $0x14f] sm:$0x8]   ;;  %v256_v20 = vsel %vm9_vm1, %v2781_v17, %v252_v16  ;;  %v2784_v21 = vld [vmem:[%s5562_s0 + $0x126] sm:$0x2]   ;;  %s3390_s28 = smov 120   ;;  %v239_v26 = vsel %vm13_vm2, %v2778_v12, %v235_v15  ;;  %s3391_s20 = smov 119  }
  0x13   :  { %158 = vrot.lane.b32.xlu0 %v157_v55, %s3387_s5  ;;  %v2785_v22 = vld [vmem:[%s5562_s0 + $0xa5] sm:$0x4]   ;;  %v273_v23 = vsel %vm5_vm0, %v2784_v21, %v2783_v19  ;;  %v2787_v24 = vld [vmem:[%s5562_s0 + $0xfc] sm:$0x1]   ;;  %v260_v27 = vsel %vm13_vm2, %v2782_v18, %v256_v20  ;;  %v2791_v30 = vld [vmem:[%s5562_s0 + $0xd1] sm:$0x1]  }
  0x14   :  { %220 = vrot.lane.b32.xlu1 %v219_v10, %s3390_s28  ;;  %v2788_v25 = vld [vmem:[%s5562_s0 + $0x1fb] sm:$0x2]   ;;  %v277_v31 = vsel %vm9_vm1, %v2785_v22, %v273_v23  ;;  %v2786_v32 = vld [vmem:[%s5562_s0 + $0x1a4] sm:$0x8]   ;;  %v2792_v35 = vld [vmem:[%s5562_s0 + $0x1d0] sm:$0x2]  }
  0x15   :  { %v293_v28 = vsel %vm5_vm0, %v2788_v25, %v2787_v24  ;;  %v2789_v29 = vld [vmem:[%s5562_s0 + $0x7a] sm:$0x4]   ;;  %v314_v36 = vsel %vm5_vm0, %v2792_v35, %v2791_v30  ;;  %v2793_v37 = vld [vmem:[%s5562_s0 + $0x4f] sm:$0x4]   ;;  %v2795_v38 = vld [vmem:[%s5562_s0 + $0x26] sm:$0x1]   ;;  %v281_v42 = vsel %vm13_vm2, %v2786_v32, %v277_v31 }
  0x16   :  { %v297_v33 = vsel %vm9_vm1, %v2789_v29, %v293_v28  ;;  %v2790_v34 = vld [vmem:[%s5562_s0 + $0x179] sm:$0x8]   ;;  %v2796_v39 = vld [vmem:[%s5562_s0 + $0x125] sm:$0x2]   ;;  %s3392_s21 = smov 118   ;;  %v318_v47 = vsel %vm9_vm1, %v2793_v37, %v314_v36  ;;  %s3393_s11 = smov 117  }
  0x17   :  { %199 = vrot.lane.b32.xlu0 %v198_v9, %s3389_s27  ;;  %v335_v40 = vsel %vm5_vm0, %v2796_v39, %v2795_v38  ;;  %v2797_v41 = vld [vmem:[%s5562_s0 + $0xa4] sm:$0x4]   ;;  %v301_v43 = vsel %vm13_vm2, %v2790_v34, %v297_v33  ;;  %v2794_v44 = vld [vmem:[%s5562_s0 + $0x14e] sm:$0x8]   ;;  %v2799_v45 = vld [vmem:[%s5562_s0 + $0xfb] sm:$0x1]  }
  0x18   :  { %261 = vrot.lane.b32.xlu1 %v260_v27, %s3392_s21  ;;  %v2800_v46 = vld [vmem:[%s5562_s0 + $0x1fa] sm:$0x2]   ;;  %v339_v48 = vsel %vm9_vm1, %v2797_v41, %v335_v40  ;;  %v2798_v49 = vld [vmem:[%s5562_s0 + $0x1a3] sm:$0x8]   ;;  %v2803_v50 = vld [vmem:[%s5562_s0 + $0xd0] sm:$0x1]   ;;  %v322_v58 = vsel %vm13_vm2, %v2794_v44, %v318_v47 }
  0x19   :  { %v2804_v51 = vld [vmem:[%s5562_s0 + $0x1cf] sm:$0x2]   ;;  %v355_v52 = vsel %vm5_vm0, %v2800_v46, %v2799_v45  ;;  %v2801_v53 = vld [vmem:[%s5562_s0 + $0x79] sm:$0x4]   ;;  %s3394_s12 = smov 116   ;;  %v343_v59 = vsel %vm13_vm2, %v2798_v49, %v339_v48  ;;  %s3395_s4 = smov 115  }
  0x1a   :  { %v376_v54 = vsel %vm5_vm0, %v2804_v51, %v2803_v50  ;;  %v2805_v55 = vld [vmem:[%s5562_s0 + $0x4e] sm:$0x4]   ;;  %v2807_v56 = vld [vmem:[%s5562_s0 + $0x25] sm:$0x1]   ;;  %v2811_v60 = vld [vmem:[%s5562_s0 + $0xfa] sm:$0x1]   ;;  %v359_v62 = vsel %vm9_vm1, %v2801_v53, %v355_v52 }
  0x1b   :  { %240 = vrot.lane.b32.xlu0 %v239_v26, %s3391_s20  ;;  %v2808_v57 = vld [vmem:[%s5562_s0 + $0x124] sm:$0x2]   ;;  %v2812_v61 = vld [vmem:[%s5562_s0 + $0x1f9] sm:$0x2]   ;;  %v2802_v63 = vld [vmem:[%s5562_s0 + $0x178] sm:$0x8]   ;;  %v380_v0 = vsel %vm9_vm1, %v2805_v55, %v376_v54 }
  0x1c   :  { %302 = vrot.lane.b32.xlu1 %v301_v43, %s3394_s12  ;;  %v2806_v1 = vld [vmem:[%s5562_s0 + $0x14d] sm:$0x8]   ;;  %v2809_v2 = vld [vmem:[%s5562_s0 + $0xa3] sm:$0x4]   ;;  %v397_v3 = vsel %vm5_vm0, %v2808_v57, %v2807_v56  ;;  %v417_v4 = vsel %vm5_vm0, %v2812_v61, %v2811_v60  ;;  %v2813_v5 = vld [vmem:[%s5562_s0 + $0x78] sm:$0x4]   ;;  %v363_v10 = vsel %vm13_vm2, %v2802_v63, %v359_v62 }
  0x1d   :  { %v2815_v6 = vld [vmem:[%s5562_s0 + $0xcf] sm:$0x1]   ;;  %s3396_s5 = smov 114   ;;  %v2819_v8 = vld [vmem:[%s5562_s0 + $0x24] sm:$0x1]   ;;  %v384_v11 = vsel %vm13_vm2, %v2806_v1, %v380_v0  ;;  %v401_v12 = vsel %vm9_vm1, %v2809_v2, %v397_v3  ;;  %v421_v14 = vsel %vm9_vm1, %v2813_v5, %v417_v4  ;;  %s3397_s22 = smov 113  }
  0x1e   :  { %v2816_v7 = vld [vmem:[%s5562_s0 + $0x1ce] sm:$0x2]   ;;  %v2820_v9 = vld [vmem:[%s5562_s0 + $0x123] sm:$0x2]   ;;  %v2810_v13 = vld [vmem:[%s5562_s0 + $0x1a2] sm:$0x8]  }
  0x1f   :  { %282 = vrot.lane.b32.xlu0 %v281_v42, %s3393_s11  ;;  %v2814_v15 = vld [vmem:[%s5562_s0 + $0x177] sm:$0x8]   ;;  %v2817_v16 = vld [vmem:[%s5562_s0 + $0x4d] sm:$0x4]   ;;  %v438_v17 = vsel %vm5_vm0, %v2816_v7, %v2815_v6  ;;  %v459_v18 = vsel %vm5_vm0, %v2820_v9, %v2819_v8  ;;  %v2821_v19 = vld [vmem:[%s5562_s0 + $0xa2] sm:$0x4]   ;;  %v405_v24 = vsel %vm13_vm2, %v2810_v13, %v401_v12 }
  0x20   :  { %344 = vrot.lane.b32.xlu1 %v343_v59, %s3396_s5  ;;  %v2823_v20 = vld [vmem:[%s5562_s0 + $0xf9] sm:$0x1]   ;;  %s3398_s23 = smov 112   ;;  %v2827_v22 = vld [vmem:[%s5562_s0 + $0xce] sm:$0x1]   ;;  %v425_v25 = vsel %vm13_vm2, %v2814_v15, %v421_v14  ;;  %v442_v26 = vsel %vm9_vm1, %v2817_v16, %v438_v17  ;;  %v463_v28 = vsel %vm9_vm1, %v2821_v19, %v459_v18  ;;  %s3399_s11 = smov 111  }
  0x21   :  { %v2824_v21 = vld [vmem:[%s5562_s0 + $0x1f8] sm:$0x2]   ;;  %v2828_v23 = vld [vmem:[%s5562_s0 + $0x1cd] sm:$0x2]   ;;  %v2818_v27 = vld [vmem:[%s5562_s0 + $0x14c] sm:$0x8]  }
  0x22   :  { %v2822_v29 = vld [vmem:[%s5562_s0 + $0x1a1] sm:$0x8]   ;;  %v2825_v30 = vld [vmem:[%s5562_s0 + $0x77] sm:$0x4]   ;;  %v479_v31 = vsel %vm5_vm0, %v2824_v21, %v2823_v20  ;;  %v500_v32 = vsel %vm5_vm0, %v2828_v23, %v2827_v22  ;;  %v2829_v33 = vld [vmem:[%s5562_s0 + $0x4c] sm:$0x4]   ;;  %v446_v38 = vsel %vm13_vm2, %v2818_v27, %v442_v26 }
  0x23   :  { %323 = vrot.lane.b32.xlu0 %v322_v58, %s3395_s4  ;;  %v2831_v34 = vld [vmem:[%s5562_s0 + $0x23] sm:$0x1]   ;;  %s3400_s12 = smov 110   ;;  %v2835_v36 = vld [vmem:[%s5562_s0 + $0xf8] sm:$0x1]   ;;  %v467_v39 = vsel %vm13_vm2, %v2822_v29, %v463_v28  ;;  %v483_v40 = vsel %vm9_vm1, %v2825_v30, %v479_v31  ;;  %v504_v42 = vsel %vm9_vm1, %v2829_v33, %v500_v32  ;;  %s3401_s29 = smov 109  }
  0x24   :  { %385 = vrot.lane.b32.xlu1 %v384_v11, %s3398_s23  ;;  %v2832_v35 = vld [vmem:[%s5562_s0 + $0x122] sm:$0x2]   ;;  %v2836_v37 = vld [vmem:[%s5562_s0 + $0x1f7] sm:$0x2]   ;;  %v2826_v41 = vld [vmem:[%s5562_s0 + $0x176] sm:$0x8]  }
  0x25   :  { %v2830_v43 = vld [vmem:[%s5562_s0 + $0x14b] sm:$0x8]   ;;  %v2833_v44 = vld [vmem:[%s5562_s0 + $0xa1] sm:$0x4]   ;;  %v521_v45 = vsel %vm5_vm0, %v2832_v35, %v2831_v34  ;;  %v541_v46 = vsel %vm5_vm0, %v2836_v37, %v2835_v36  ;;  %v2837_v47 = vld [vmem:[%s5562_s0 + $0x76] sm:$0x4]   ;;  %v487_v52 = vsel %vm13_vm2, %v2826_v41, %v483_v40 }
  0x26   :  { %v2839_v48 = vld [vmem:[%s5562_s0 + $0xcd] sm:$0x1]   ;;  %s3402_s30 = smov 108   ;;  %v2843_v50 = vld [vmem:[%s5562_s0 + $0x22] sm:$0x1]   ;;  %v508_v53 = vsel %vm13_vm2, %v2830_v43, %v504_v42  ;;  %v525_v54 = vsel %vm9_vm1, %v2833_v44, %v521_v45  ;;  %v545_v56 = vsel %vm9_vm1, %v2837_v47, %v541_v46  ;;  %s3403_s18 = smov 107  }
  0x27   :  { %364 = vrot.lane.b32.xlu0 %v363_v10, %s3397_s22  ;;  %v2840_v49 = vld [vmem:[%s5562_s0 + $0x1cc] sm:$0x2]   ;;  %v2844_v51 = vld [vmem:[%s5562_s0 + $0x121] sm:$0x2]   ;;  %v2834_v55 = vld [vmem:[%s5562_s0 + $0x1a0] sm:$0x8]  }
  0x28   :  { %426 = vrot.lane.b32.xlu1 %v425_v25, %s3400_s12  ;;  %v2838_v57 = vld [vmem:[%s5562_s0 + $0x175] sm:$0x8]   ;;  %v2841_v58 = vld [vmem:[%s5562_s0 + $0x4b] sm:$0x4]   ;;  %v562_v59 = vsel %vm5_vm0, %v2840_v49, %v2839_v48  ;;  %v583_v60 = vsel %vm5_vm0, %v2844_v51, %v2843_v50  ;;  %v2845_v61 = vld [vmem:[%s5562_s0 + $0xa0] sm:$0x4]   ;;  %v529_v2 = vsel %vm13_vm2, %v2834_v55, %v525_v54 }
  0x29   :  { %v2847_v62 = vld [vmem:[%s5562_s0 + $0xf7] sm:$0x1]   ;;  %s3404_s19 = smov 106   ;;  %v2851_v0 = vld [vmem:[%s5562_s0 + $0xcc] sm:$0x1]   ;;  %v549_v3 = vsel %vm13_vm2, %v2838_v57, %v545_v56  ;;  %v566_v4 = vsel %vm9_vm1, %v2841_v58, %v562_v59  ;;  %v587_v6 = vsel %vm9_vm1, %v2845_v61, %v583_v60  ;;  %s3405_s7 = smov 105  }
  0x2a   :  { %v2848_v63 = vld [vmem:[%s5562_s0 + $0x1f6] sm:$0x2]   ;;  %v2852_v1 = vld [vmem:[%s5562_s0 + $0x1cb] sm:$0x2]   ;;  %v2842_v5 = vld [vmem:[%s5562_s0 + $0x14a] sm:$0x8]  }
  0x2b   :  { %406 = vrot.lane.b32.xlu0 %v405_v24, %s3399_s11  ;;  %v2846_v7 = vld [vmem:[%s5562_s0 + $0x19f] sm:$0x8]   ;;  %v2849_v8 = vld [vmem:[%s5562_s0 + $0x75] sm:$0x4]   ;;  %v603_v9 = vsel %vm5_vm0, %v2848_v63, %v2847_v62  ;;  %v624_v10 = vsel %vm5_vm0, %v2852_v1, %v2851_v0  ;;  %v2853_v11 = vld [vmem:[%s5562_s0 + $0x4a] sm:$0x4]   ;;  %v570_v16 = vsel %vm13_vm2, %v2842_v5, %v566_v4 }
  0x2c   :  { %468 = vrot.lane.b32.xlu1 %v467_v39, %s3402_s30  ;;  %v2855_v12 = vld [vmem:[%s5562_s0 + $0x21] sm:$0x1]   ;;  %s3406_s8 = smov 104   ;;  %v2859_v14 = vld [vmem:[%s5562_s0 + $0xf6] sm:$0x1]   ;;  %v591_v17 = vsel %vm13_vm2, %v2846_v7, %v587_v6  ;;  %v607_v18 = vsel %vm9_vm1, %v2849_v8, %v603_v9  ;;  %v628_v20 = vsel %vm9_vm1, %v2853_v11, %v624_v10  ;;  %s3407_s25 = smov 103  }
  0x2d   :  { %v2856_v13 = vld [vmem:[%s5562_s0 + $0x120] sm:$0x2]   ;;  %v2860_v15 = vld [vmem:[%s5562_s0 + $0x1f5] sm:$0x2]   ;;  %v2850_v19 = vld [vmem:[%s5562_s0 + $0x174] sm:$0x8]  }
  0x2e   :  { %v2854_v21 = vld [vmem:[%s5562_s0 + $0x149] sm:$0x8]   ;;  %v2857_v22 = vld [vmem:[%s5562_s0 + $0x9f] sm:$0x4]   ;;  %v645_v23 = vsel %vm5_vm0, %v2856_v13, %v2855_v12  ;;  %v665_v24 = vsel %vm5_vm0, %v2860_v15, %v2859_v14  ;;  %v2861_v25 = vld [vmem:[%s5562_s0 + $0x74] sm:$0x4]   ;;  %v611_v30 = vsel %vm13_vm2, %v2850_v19, %v607_v18 }
  0x2f   :  { %447 = vrot.lane.b32.xlu0 %v446_v38, %s3401_s29  ;;  %v2863_v26 = vld [vmem:[%s5562_s0 + $0xcb] sm:$0x1]   ;;  %s3408_s26 = smov 102   ;;  %v2867_v28 = vld [vmem:[%s5562_s0 + $0x20] sm:$0x1]   ;;  %v632_v31 = vsel %vm13_vm2, %v2854_v21, %v628_v20  ;;  %v649_v32 = vsel %vm9_vm1, %v2857_v22, %v645_v23  ;;  %v669_v34 = vsel %vm9_vm1, %v2861_v25, %v665_v24  ;;  %s3409_s14 = smov 101  }
  0x30   :  { %509 = vrot.lane.b32.xlu1 %v508_v53, %s3404_s19  ;;  %v2864_v27 = vld [vmem:[%s5562_s0 + $0x1ca] sm:$0x2]   ;;  %v2868_v29 = vld [vmem:[%s5562_s0 + $0x11f] sm:$0x2]   ;;  %v2858_v33 = vld [vmem:[%s5562_s0 + $0x19e] sm:$0x8]  }
  0x31   :  { %v2862_v35 = vld [vmem:[%s5562_s0 + $0x173] sm:$0x8]   ;;  %v2865_v36 = vld [vmem:[%s5562_s0 + $0x49] sm:$0x4]   ;;  %v686_v37 = vsel %vm5_vm0, %v2864_v27, %v2863_v26  ;;  %v707_v38 = vsel %vm5_vm0, %v2868_v29, %v2867_v28  ;;  %v2869_v39 = vld [vmem:[%s5562_s0 + $0x9e] sm:$0x4]   ;;  %v653_v44 = vsel %vm13_vm2, %v2858_v33, %v649_v32 }
  0x32   :  { %v2871_v40 = vld [vmem:[%s5562_s0 + $0xf5] sm:$0x1]   ;;  %s3410_s15 = smov 100   ;;  %v2875_v42 = vld [vmem:[%s5562_s0 + $0xca] sm:$0x1]   ;;  %v673_v45 = vsel %vm13_vm2, %v2862_v35, %v669_v34  ;;  %v690_v46 = vsel %vm9_vm1, %v2865_v36, %v686_v37  ;;  %v711_v48 = vsel %vm9_vm1, %v2869_v39, %v707_v38  ;;  %s3411_s3 = smov 99  }
  0x33   :  { %488 = vrot.lane.b32.xlu0 %v487_v52, %s3403_s18  ;;  %v2872_v41 = vld [vmem:[%s5562_s0 + $0x1f4] sm:$0x2]   ;;  %v2876_v43 = vld [vmem:[%s5562_s0 + $0x1c9] sm:$0x2]   ;;  %v2866_v47 = vld [vmem:[%s5562_s0 + $0x148] sm:$0x8]  }
  0x34   :  { %550 = vrot.lane.b32.xlu1 %v549_v3, %s3406_s8  ;;  %v2870_v49 = vld [vmem:[%s5562_s0 + $0x19d] sm:$0x8]   ;;  %v2873_v50 = vld [vmem:[%s5562_s0 + $0x73] sm:$0x4]   ;;  %v727_v51 = vsel %vm5_vm0, %v2872_v41, %v2871_v40  ;;  %v748_v52 = vsel %vm5_vm0, %v2876_v43, %v2875_v42  ;;  %v2877_v53 = vld [vmem:[%s5562_s0 + $0x48] sm:$0x4]   ;;  %v694_v58 = vsel %vm13_vm2, %v2866_v47, %v690_v46 }
  0x35   :  { %v2879_v54 = vld [vmem:[%s5562_s0 + $0x1f] sm:$0x1]   ;;  %s3412_s4 = smov 98   ;;  %v2883_v56 = vld [vmem:[%s5562_s0 + $0xf4] sm:$0x1]   ;;  %v715_v59 = vsel %vm13_vm2, %v2870_v49, %v711_v48  ;;  %v731_v60 = vsel %vm9_vm1, %v2873_v50, %v727_v51  ;;  %v752_v62 = vsel %vm9_vm1, %v2877_v53, %v748_v52  ;;  %s3413_s21 = smov 97  }
  0x36   :  { %v2880_v55 = vld [vmem:[%s5562_s0 + $0x11e] sm:$0x2]   ;;  %v2884_v57 = vld [vmem:[%s5562_s0 + $0x1f3] sm:$0x2]   ;;  %v2874_v61 = vld [vmem:[%s5562_s0 + $0x172] sm:$0x8]  }
  0x37   :  { %530 = vrot.lane.b32.xlu0 %v529_v2, %s3405_s7  ;;  %v2878_v63 = vld [vmem:[%s5562_s0 + $0x147] sm:$0x8]   ;;  %v2881_v0 = vld [vmem:[%s5562_s0 + $0x9d] sm:$0x4]   ;;  %v769_v1 = vsel %vm5_vm0, %v2880_v55, %v2879_v54  ;;  %v789_v2 = vsel %vm5_vm0, %v2884_v57, %v2883_v56  ;;  %v2885_v3 = vld [vmem:[%s5562_s0 + $0x72] sm:$0x4]   ;;  %v735_v8 = vsel %vm13_vm2, %v2874_v61, %v731_v60 }
  0x38   :  { %592 = vrot.lane.b32.xlu1 %v591_v17, %s3408_s26  ;;  %v2887_v4 = vld [vmem:[%s5562_s0 + $0xc9] sm:$0x1]   ;;  %s3414_s22 = smov 96   ;;  %v2891_v6 = vld [vmem:[%s5562_s0 + $0x1e] sm:$0x1]   ;;  %v756_v9 = vsel %vm13_vm2, %v2878_v63, %v752_v62  ;;  %v773_v10 = vsel %vm9_vm1, %v2881_v0, %v769_v1  ;;  %v793_v12 = vsel %vm9_vm1, %v2885_v3, %v789_v2  ;;  %s3415_s10 = smov 95  }
  0x39   :  { %v2888_v5 = vld [vmem:[%s5562_s0 + $0x1c8] sm:$0x2]   ;;  %v2892_v7 = vld [vmem:[%s5562_s0 + $0x11d] sm:$0x2]   ;;  %v2882_v11 = vld [vmem:[%s5562_s0 + $0x19c] sm:$0x8]  }
  0x3a   :  { %v2886_v13 = vld [vmem:[%s5562_s0 + $0x171] sm:$0x8]   ;;  %v2889_v14 = vld [vmem:[%s5562_s0 + $0x47] sm:$0x4]   ;;  %v810_v15 = vsel %vm5_vm0, %v2888_v5, %v2887_v4  ;;  %v2893_v17 = vld [vmem:[%s5562_s0 + $0x9c] sm:$0x4]   ;;  %v777_v22 = vsel %vm13_vm2, %v2882_v11, %v773_v10 }
  0x3b   :  { %571 = vrot.lane.b32.xlu0 %v570_v16, %s3407_s25  ;;  %v831_v16 = vsel %vm5_vm0, %v2892_v7, %v2891_v6  ;;  %v2895_v18 = vld [vmem:[%s5562_s0 + $0xf3] sm:$0x1]   ;;  %s3416_s11 = smov 94   ;;  %v2899_v20 = vld [vmem:[%s5562_s0 + $0xc8] sm:$0x1]   ;;  %v797_v23 = vsel %vm13_vm2, %v2886_v13, %v793_v12  ;;  %v814_v24 = vsel %vm9_vm1, %v2889_v14, %v810_v15  ;;  %s3417_s28 = smov 93  }
  0x3c   :  { %633 = vrot.lane.b32.xlu1 %v632_v31, %s3410_s15  ;;  %v2896_v19 = vld [vmem:[%s5562_s0 + $0x1f2] sm:$0x2]   ;;  %v2900_v21 = vld [vmem:[%s5562_s0 + $0x1c7] sm:$0x2]   ;;  %v2890_v25 = vld [vmem:[%s5562_s0 + $0x146] sm:$0x8]   ;;  %v835_v26 = vsel %vm9_vm1, %v2893_v17, %v831_v16 }
  0x3d   :  { %v2894_v27 = vld [vmem:[%s5562_s0 + $0x19b] sm:$0x8]   ;;  %v2897_v28 = vld [vmem:[%s5562_s0 + $0x71] sm:$0x4]   ;;  %v851_v29 = vsel %vm5_vm0, %v2896_v19, %v2895_v18  ;;  %v2901_v31 = vld [vmem:[%s5562_s0 + $0x46] sm:$0x4]   ;;  %v818_v36 = vsel %vm13_vm2, %v2890_v25, %v814_v24 }
  0x3e   :  { %v2903_v32 = vld [vmem:[%s5562_s0 + $0x1d] sm:$0x1]   ;;  %s3418_s29 = smov 92   ;;  %v2907_v34 = vld [vmem:[%s5562_s0 + $0xf2] sm:$0x1]   ;;  %v839_v37 = vsel %vm13_vm2, %v2894_v27, %v835_v26  ;;  %v855_v38 = vsel %vm9_vm1, %v2897_v28, %v851_v29  ;;  %s3419_s17 = smov 91  }
  0x3f   :  { %612 = vrot.lane.b32.xlu0 %v611_v30, %s3409_s14  ;;  %v872_v30 = vsel %vm5_vm0, %v2900_v21, %v2899_v20  ;;  %v2904_v33 = vld [vmem:[%s5562_s0 + $0x11c] sm:$0x2]   ;;  %v2908_v35 = vld [vmem:[%s5562_s0 + $0x1f1] sm:$0x2]   ;;  %v2898_v39 = vld [vmem:[%s5562_s0 + $0x170] sm:$0x8]  }
  0x40   :  { %674 = vrot.lane.b32.xlu1 %v673_v45, %s3412_s4  ;;  %v876_v40 = vsel %vm9_vm1, %v2901_v31, %v872_v30  ;;  %v2902_v41 = vld [vmem:[%s5562_s0 + $0x145] sm:$0x8]   ;;  %v2905_v42 = vld [vmem:[%s5562_s0 + $0x9b] sm:$0x4]   ;;  %v893_v43 = vsel %vm5_vm0, %v2904_v33, %v2903_v32  ;;  %v2909_v45 = vld [vmem:[%s5562_s0 + $0x70] sm:$0x4]   ;;  %v859_v50 = vsel %vm13_vm2, %v2898_v39, %v855_v38 }
  0x41   :  { %v2911_v46 = vld [vmem:[%s5562_s0 + $0xc7] sm:$0x1]   ;;  %s3420_s18 = smov 90   ;;  %v2915_v48 = vld [vmem:[%s5562_s0 + $0x1c] sm:$0x1]   ;;  %v880_v51 = vsel %vm13_vm2, %v2902_v41, %v876_v40  ;;  %v897_v52 = vsel %vm9_vm1, %v2905_v42, %v893_v43  ;;  %s3421_s6 = smov 89  }
  0x42   :  { %v2912_v47 = vld [vmem:[%s5562_s0 + $0x1c6] sm:$0x2]   ;;  %v2916_v49 = vld [vmem:[%s5562_s0 + $0x11b] sm:$0x2]   ;;  %v2906_v53 = vld [vmem:[%s5562_s0 + $0x19a] sm:$0x8]  }
  0x43   :  { %654 = vrot.lane.b32.xlu0 %v653_v44, %s3411_s3  ;;  %v913_v44 = vsel %vm5_vm0, %v2908_v35, %v2907_v34  ;;  %v2910_v55 = vld [vmem:[%s5562_s0 + $0x16f] sm:$0x8]   ;;  %v2913_v56 = vld [vmem:[%s5562_s0 + $0x45] sm:$0x4]   ;;  %v934_v57 = vsel %vm5_vm0, %v2912_v47, %v2911_v46  ;;  %v2919_v60 = vld [vmem:[%s5562_s0 + $0xf1] sm:$0x1]   ;;  %v901_v0 = vsel %vm13_vm2, %v2906_v53, %v897_v52 }
  0x44   :  { %716 = vrot.lane.b32.xlu1 %v715_v59, %s3414_s22  ;;  %v917_v54 = vsel %vm9_vm1, %v2909_v45, %v913_v44  ;;  %v2917_v59 = vld [vmem:[%s5562_s0 + $0x9a] sm:$0x4]   ;;  %v2920_v61 = vld [vmem:[%s5562_s0 + $0x1f0] sm:$0x2]   ;;  %s3422_s7 = smov 88   ;;  %v938_v2 = vsel %vm9_vm1, %v2913_v56, %v934_v57  ;;  %s3423_s24 = smov 87  }
  0x45   :  { %v2923_v62 = vld [vmem:[%s5562_s0 + $0xc6] sm:$0x1]   ;;  %v921_v1 = vsel %vm13_vm2, %v2910_v55, %v917_v54  ;;  %v2914_v3 = vld [vmem:[%s5562_s0 + $0x144] sm:$0x8]   ;;  %v2918_v5 = vld [vmem:[%s5562_s0 + $0x199] sm:$0x8]   ;;  %v975_v7 = vsel %vm5_vm0, %v2920_v61, %v2919_v60 }
  0x46   :  { %v2924_v63 = vld [vmem:[%s5562_s0 + $0x1c5] sm:$0x2]   ;;  %v2921_v6 = vld [vmem:[%s5562_s0 + $0x6f] sm:$0x4]   ;;  %v2927_v10 = vld [vmem:[%s5562_s0 + $0x1b] sm:$0x1]   ;;  %v942_v14 = vsel %vm13_vm2, %v2914_v3, %v938_v2 }
  0x47   :  { %695 = vrot.lane.b32.xlu0 %v694_v58, %s3413_s21  ;;  %v955_v58 = vsel %vm5_vm0, %v2916_v49, %v2915_v48  ;;  %v2928_v11 = vld [vmem:[%s5562_s0 + $0x11a] sm:$0x2]   ;;  %s3424_s25 = smov 86   ;;  %v2931_v12 = vld [vmem:[%s5562_s0 + $0xf0] sm:$0x1]   ;;  %v979_v16 = vsel %vm9_vm1, %v2921_v6, %v975_v7  ;;  %s3425_s13 = smov 85  }
  0x48   :  { %757 = vrot.lane.b32.xlu1 %v756_v9, %s3416_s11  ;;  %v959_v4 = vsel %vm9_vm1, %v2917_v59, %v955_v58  ;;  %v2925_v9 = vld [vmem:[%s5562_s0 + $0x44] sm:$0x4]   ;;  %v2932_v13 = vld [vmem:[%s5562_s0 + $0x1ef] sm:$0x2]   ;;  %v2922_v17 = vld [vmem:[%s5562_s0 + $0x16e] sm:$0x8]   ;;  %v1017_v21 = vsel %vm5_vm0, %v2928_v11, %v2927_v10 }
  0x49   :  { %v963_v15 = vsel %vm13_vm2, %v2918_v5, %v959_v4  ;;  %v2926_v19 = vld [vmem:[%s5562_s0 + $0x143] sm:$0x8]   ;;  %v2929_v20 = vld [vmem:[%s5562_s0 + $0x99] sm:$0x4]   ;;  %v2935_v24 = vld [vmem:[%s5562_s0 + $0xc5] sm:$0x1]   ;;  %v983_v28 = vsel %vm13_vm2, %v2922_v17, %v979_v16 }
  0x4a   :  { %v2936_v25 = vld [vmem:[%s5562_s0 + $0x1c4] sm:$0x2]   ;;  %s3426_s14 = smov 84   ;;  %v2939_v26 = vld [vmem:[%s5562_s0 + $0x1a] sm:$0x1]   ;;  %v1021_v32 = vsel %vm9_vm1, %v2929_v20, %v1017_v21  ;;  %vm15_vm5 = vcmask 23552  }
  0x4b   :  { %736 = vrot.lane.b32.xlu0 %v735_v8, %s3415_s10  ;;  %v996_v8 = vsel %vm5_vm0, %v2924_v63, %v2923_v62  ;;  %v2940_v27 = vld [vmem:[%s5562_s0 + $0x119] sm:$0x2]   ;;  %v2930_v30 = vld [vmem:[%s5562_s0 + $0x198] sm:$0x8]   ;;  %v2934_v31 = vld [vmem:[%s5562_s0 + $0x16d] sm:$0x8]  }
  0x4c   :  { %798 = vrot.lane.b32.xlu1 %v797_v23, %s3418_s29  ;;  %v1000_v18 = vsel %vm9_vm1, %v2925_v9, %v996_v8  ;;  %v2933_v23 = vld [vmem:[%s5562_s0 + $0x6e] sm:$0x4]   ;;  %v2937_v34 = vld [vmem:[%s5562_s0 + $0x43] sm:$0x4]   ;;  %v2941_v35 = vld [vmem:[%s5562_s0 + $0x98] sm:$0x4]   ;;  %v1079_v38 = vsel %vm5_vm0, %v2940_v27, %v2939_v26  ;;  %v1025_v44 = vsel %vm13_vm2, %v2930_v30, %v1021_v32 }
  0x4d   :  { %v1004_v29 = vsel %vm13_vm2, %v2926_v19, %v1000_v18  ;;  %v2944_v39 = vld [vmem:[%s5562_s0 + $0x1ee] sm:$0x2]   ;;  %v2947_v40 = vld [vmem:[%s5562_s0 + $0xc4] sm:$0x1]   ;;  %v2733_v42 = vld [vmem:[%s5562_s0 + $0xfe] sm:$0x4]  }
  0x4e   :  { %v2948_v41 = vld [vmem:[%s5562_s0 + $0x1c3] sm:$0x2]   ;;  %v2_v43 = vld [vmem:[%s5562_s0] sm:$0x1]   ;;  %v2938_v46 = vld [vmem:[%s5562_s0 + $0x142] sm:$0x8]  }
  0x4f   :  { %778 = vrot.lane.b32.xlu0 %v777_v22, %s3417_s28  ;;  %v1037_v22 = vsel %vm5_vm0, %v2932_v13, %v2931_v12  ;;  %v2734_v47 = vld [vmem:[%s5562_s0 + $0x17d] sm:$0x8]   ;;  %v2945_v52 = vld [vmem:[%s5562_s0 + $0x6d] sm:$0x4]   ;;  %v1120_v55 = vsel %vm5_vm0, %v2948_v41, %v2947_v40  ;;  %v2949_v56 = vld [vmem:[%s5562_s0 + $0x42] sm:$0x4]  }
  0x50   :  { %840 = vrot.lane.b32.xlu1 %v839_v37, %s3420_s18  ;;  %v1041_v33 = vsel %vm9_vm1, %v2933_v23, %v1037_v22  ;;  %v1058_v37 = vsel %vm5_vm0, %v2936_v25, %v2935_v24  ;;  %v2732_v48 = vld [vmem:[%s5562_s0 + $0x7f] sm:$0x2]   ;;  %v2951_v57 = vld [vmem:[%s5562_s0 + $0x19] sm:$0x1]   ;;  %s3429_s28 = smov 81   ;;  %s3430_s29 = smov 80   ;;  %v1124_v3 = vsel %vm9_vm1, %v2949_v56, %v1120_v55 }
  0x51   :  { %v1045_v45 = vsel %vm13_vm2, %v2934_v31, %v1041_v33  ;;  %v1062_v49 = vsel %vm9_vm1, %v2937_v34, %v1058_v37  ;;  %v6_v53 = vsel %vm5_vm0, %v2732_v48, %v2_v43  ;;  %v2952_v58 = vld [vmem:[%s5562_s0 + $0x118] sm:$0x2]   ;;  %v2955_v60 = vld [vmem:[%s5562_s0 + $0xee] sm:$0x1]   ;;  %v2946_v2 = vld [vmem:[%s5562_s0 + $0x16c] sm:$0x8]  }
  0x52   :  { %v10_v59 = vsel %vm9_vm1, %v2733_v42, %v6_v53  ;;  %v2956_v61 = vld [vmem:[%s5562_s0 + $0x1ed] sm:$0x2]   ;;  %v1066_v63 = vsel %vm13_vm2, %v2938_v46, %v1062_v49  ;;  %v2950_v4 = vld [vmem:[%s5562_s0 + $0x141] sm:$0x8]   ;;  %v2953_v5 = vld [vmem:[%s5562_s0 + $0x97] sm:$0x4]   ;;  %v1141_v6 = vsel %vm5_vm0, %v2952_v58, %v2951_v57 }
  0x53   :  { %819 = vrot.lane.b32.xlu0 %v818_v36, %s3419_s17  ;;  %v2943_v36 = vld [vmem:[%s5562_s0 + $0xef] sm:$0x1]   ;;  %v14_v62 = vsel %vm13_vm2, %v2734_v47, %v10_v59  ;;  %v1161_v7 = vsel %vm5_vm0, %v2956_v61, %v2955_v60  ;;  %v2957_v8 = vld [vmem:[%s5562_s0 + $0x6c] sm:$0x4]   ;;  %v2959_v9 = vld [vmem:[%s5562_s0 + $0xc3] sm:$0x1]  }
  0x54   :  { %881 = vrot.lane.b32.xlu1 %v880_v51, %s3422_s7  ;;  %s3428_s7 = smov 82   ;;  %v2942_v51 = vld [vmem:[%s5562_s0 + $0x197] sm:$0x8]   ;;  %v1099_v54 = vsel %vm5_vm0, %v2944_v39, %v2943_v36  ;;  %16 = vst.msk [vmem:[#allocation0] ss:$24 sm:$0x3] %vm15_vm5, %v14_v62   ;;  %v1165_v17 = vsel %vm9_vm1, %v2957_v8, %v1161_v7 }
  0x55   :  { %18 = vst.msk [vmem:[#allocation0 - $0x2f] ss:$24 sm:$0xc] %vm15_vm5, %v14_v62   ;;  %v2960_v10 = vld [vmem:[%s5562_s0 + $0x1c2] sm:$0x2]   ;;  %s3431_s17 = smov 79  }
  0x56   :  { %s3432_s18 = smov 78   ;;  %v2963_v11 = vld [vmem:[%s5562_s0 + $0x18] sm:$0x1]   ;;  %v2954_v16 = vld [vmem:[%s5562_s0 + $0x196] sm:$0x8]   ;;  %v1182_v20 = vsel %vm5_vm0, %v2960_v10, %v2959_v9  ;;  %vm56_vm6 = vcmask 1048568  }
  0x57   :  { %860 = vrot.lane.b32.xlu0 %v859_v50, %s3421_s6  ;;  %s3427_s6 = smov 83   ;;  %v1083_v50 = vsel %vm9_vm1, %v2941_v35, %v1079_v38  ;;  %v2964_v12 = vld [vmem:[%s5562_s0 + $0x117] sm:$0x2]   ;;  %v2958_v18 = vld [vmem:[%s5562_s0 + $0x16b] sm:$0x8]   ;;  %s3439_s2 = smov 71  }
  0x58   :  { %922 = vrot.lane.b32.xlu1 %v921_v1, %s3424_s25  ;;  %v1103_v1 = vsel %vm9_vm1, %v2945_v52, %v1099_v54  ;;  %v2961_v19 = vld [vmem:[%s5562_s0 + $0x41] sm:$0x4]   ;;  %v1203_v21 = vsel %vm5_vm0, %v2964_v12, %v2963_v11  ;;  %v2965_v22 = vld [vmem:[%s5562_s0 + $0x96] sm:$0x4]   ;;  %v2967_v23 = vld [vmem:[%s5562_s0 + $0xed] sm:$0x1]  }
  0x59   :  { %v1107_v13 = vsel %vm13_vm2, %v2946_v2, %v1103_v1  ;;  %v2968_v24 = vld [vmem:[%s5562_s0 + $0x1ec] sm:$0x2]   ;;  %v2971_v25 = vld [vmem:[%s5562_s0 + $0xc2] sm:$0x1]   ;;  %v2962_v30 = vld [vmem:[%s5562_s0 + $0x140] sm:$0x8]   ;;  %v1207_v31 = vsel %vm9_vm1, %v2965_v22, %v1203_v21 }
  0x5a   :  { %v2972_v26 = vld [vmem:[%s5562_s0 + $0x1c1] sm:$0x2]   ;;  %v2966_v32 = vld [vmem:[%s5562_s0 + $0x195] sm:$0x8]   ;;  %v2969_v33 = vld [vmem:[%s5562_s0 + $0x6b] sm:$0x4]   ;;  %v1223_v34 = vsel %vm5_vm0, %v2968_v24, %v2967_v23 }
  0x5b   :  { %902 = vrot.lane.b32.xlu0 %v901_v0, %s3423_s24  ;;  %v1087_v0 = vsel %vm13_vm2, %v2942_v51, %v1083_v50  ;;  %v1244_v35 = vsel %vm5_vm0, %v2972_v26, %v2971_v25  ;;  %v2973_v36 = vld [vmem:[%s5562_s0 + $0x40] sm:$0x4]   ;;  %v2975_v37 = vld [vmem:[%s5562_s0 + $0x17] sm:$0x1]   ;;  %s3435_s24 = smov 75   ;;  %s3436_s25 = smov 74   ;;  %v1211_v42 = vsel %vm13_vm2, %v2966_v32, %v1207_v31  ;;  %v1227_v43 = vsel %vm9_vm1, %v2969_v33, %v1223_v34 }
  0x5c   :  { %964 = vrot.lane.b32.xlu1 %v963_v15, %s3426_s14  ;;  %v1145_v15 = vsel %vm9_vm1, %v2953_v5, %v1141_v6  ;;  %v2976_v38 = vld [vmem:[%s5562_s0 + $0x116] sm:$0x2]   ;;  %v2979_v39 = vld [vmem:[%s5562_s0 + $0xec] sm:$0x1]   ;;  %v2974_v46 = vld [vmem:[%s5562_s0 + $0x13f] sm:$0x8]  }
  0x5d   :  { %v1149_v27 = vsel %vm13_vm2, %v2954_v16, %v1145_v15  ;;  %v2980_v40 = vld [vmem:[%s5562_s0 + $0x1eb] sm:$0x2]   ;;  %v2977_v47 = vld [vmem:[%s5562_s0 + $0x95] sm:$0x4]   ;;  %v1265_v48 = vsel %vm5_vm0, %v2976_v38, %v2975_v37  ;;  %v2983_v51 = vld [vmem:[%s5562_s0 + $0xc1] sm:$0x1]  }
  0x5e   :  { %v1285_v49 = vsel %vm5_vm0, %v2980_v40, %v2979_v39  ;;  %v2981_v50 = vld [vmem:[%s5562_s0 + $0x6a] sm:$0x4]   ;;  %v2984_v52 = vld [vmem:[%s5562_s0 + $0x1c0] sm:$0x2]   ;;  %s3438_s14 = smov 72   ;;  %v1269_v57 = vsel %vm9_vm1, %v2977_v47, %v1265_v48  ;;  %s3440_s3 = smov 70  }
  0x5f   :  { %943 = vrot.lane.b32.xlu0 %v942_v14, %s3425_s13  ;;  %v1128_v14 = vsel %vm13_vm2, %v2950_v4, %v1124_v3  ;;  %s3437_s13 = smov 73   ;;  %v2987_v53 = vld [vmem:[%s5562_s0 + $0x16] sm:$0x1]   ;;  %v2978_v58 = vld [vmem:[%s5562_s0 + $0x194] sm:$0x8]   ;;  %v1289_v59 = vsel %vm9_vm1, %v2981_v50, %v1285_v49  ;;  %v1306_v62 = vsel %vm5_vm0, %v2984_v52, %v2983_v51  ;;  %vm118_vm7 = vcmask 1048552  }
  0x60   :  { %1005 = vrot.lane.b32.xlu1 %v1004_v29, %s3428_s7  ;;  %s3434_s7 = smov 76   ;;  %v1186_v29 = vsel %vm9_vm1, %v2961_v19, %v1182_v20  ;;  %v2988_v54 = vld [vmem:[%s5562_s0 + $0x115] sm:$0x2]   ;;  %v2982_v60 = vld [vmem:[%s5562_s0 + $0x169] sm:$0x8]   ;;  %v1273_v6 = vsel %vm13_vm2, %v2978_v58, %v1269_v57  ;;  %s3441_s20 = smov 69  }
  0x61   :  { %v1190_v41 = vsel %vm13_vm2, %v2962_v30, %v1186_v29  ;;  %v2985_v61 = vld [vmem:[%s5562_s0 + $0x3f] sm:$0x4]   ;;  %v2991_v1 = vld [vmem:[%s5562_s0 + $0xeb] sm:$0x1]   ;;  %v2995_v3 = vld [vmem:[%s5562_s0 + $0xc0] sm:$0x1]   ;;  %v1293_v7 = vsel %vm13_vm2, %v2982_v60, %v1289_v59 }
  0x62   :  { %v2992_v2 = vld [vmem:[%s5562_s0 + $0x1ea] sm:$0x2]   ;;  %v2996_v4 = vld [vmem:[%s5562_s0 + $0x1bf] sm:$0x2]   ;;  %v1310_v9 = vsel %vm9_vm1, %v2985_v61, %v1306_v62  ;;  %v2986_v10 = vld [vmem:[%s5562_s0 + $0x13e] sm:$0x8]  }
  0x63   :  { %984 = vrot.lane.b32.xlu0 %v983_v28, %s3427_s6  ;;  %s3433_s6 = smov 77   ;;  %v1169_v28 = vsel %vm13_vm2, %v2958_v18, %v1165_v17  ;;  %v2990_v12 = vld [vmem:[%s5562_s0 + $0x193] sm:$0x8]   ;;  %v1368_v15 = vsel %vm5_vm0, %v2996_v4, %v2995_v3  ;;  %v2997_v16 = vld [vmem:[%s5562_s0 + $0x3e] sm:$0x4]   ;;  %s3442_s21 = smov 68   ;;  %v1314_v21 = vsel %vm13_vm2, %v2986_v10, %v1310_v9 }
  0x64   :  { %1046 = vrot.lane.b32.xlu1 %v1045_v45, %s3430_s29  ;;  %v1248_v45 = vsel %vm9_vm1, %v2973_v36, %v1244_v35  ;;  %v2999_v17 = vld [vmem:[%s5562_s0 + $0x15] sm:$0x1]   ;;  %vm98_vm8 = vcmask 1048560   ;;  %v3003_v19 = vld [vmem:[%s5562_s0 + $0xea] sm:$0x1]   ;;  %vm139_vm9 = vcmask 1040352  }
  0x65   :  { %v1252_v56 = vsel %vm13_vm2, %v2974_v46, %v1248_v45  ;;  %v3000_v18 = vld [vmem:[%s5562_s0 + $0x114] sm:$0x2]   ;;  %v3004_v20 = vld [vmem:[%s5562_s0 + $0x1e9] sm:$0x2]   ;;  %v2994_v26 = vld [vmem:[%s5562_s0 + $0x168] sm:$0x8]  }
  0x66   :  { %v3001_v29 = vld [vmem:[%s5562_s0 + $0x93] sm:$0x4]   ;;  %v1389_v30 = vsel %vm5_vm0, %v3000_v18, %v2999_v17  ;;  %v1409_v31 = vsel %vm5_vm0, %v3004_v20, %v3003_v19  ;;  %v3005_v32 = vld [vmem:[%s5562_s0 + $0x68] sm:$0x4]   ;;  %v3007_v33 = vld [vmem:[%s5562_s0 + $0xbf] sm:$0x1]  }
  0x67   :  { %1026 = vrot.lane.b32.xlu0 %v1025_v44, %s3429_s28  ;;  %v2970_v44 = vld [vmem:[%s5562_s0 + $0x16a] sm:$0x8]   ;;  %v3008_v34 = vld [vmem:[%s5562_s0 + $0x1be] sm:$0x2]   ;;  %s3443_s9 = smov 67   ;;  %vm160_vm10 = vcmask 1032152  }
  0x68   :  { %1088 = vrot.lane.b32.xlu1 %v1087_v0, %s3432_s18  ;;  %v1231_v55 = vsel %vm13_vm2, %v2970_v44, %v1227_v43  ;;  %v2989_v0 = vld [vmem:[%s5562_s0 + $0x94] sm:$0x4]   ;;  %s3444_s10 = smov 66   ;;  %vm180_vm11 = vcmask 1023952   ;;  %v3011_v35 = vld [vmem:[%s5562_s0 + $0x14] sm:$0x1]   ;;  %v1413_v43 = vsel %vm9_vm1, %v3005_v32, %v1409_v31  ;;  %v1430_v46 = vsel %vm5_vm0, %v3008_v34, %v3007_v33 }
  0x69   :  { %v3012_v36 = vld [vmem:[%s5562_s0 + $0x113] sm:$0x2]   ;;  %v3006_v44 = vld [vmem:[%s5562_s0 + $0x167] sm:$0x8]   ;;  %v3009_v45 = vld [vmem:[%s5562_s0 + $0x3d] sm:$0x4]  }
  0x6a   :  { %v1451_v47 = vsel %vm5_vm0, %v3012_v36, %v3011_v35  ;;  %v3013_v48 = vld [vmem:[%s5562_s0 + $0x92] sm:$0x4]   ;;  %v3015_v49 = vld [vmem:[%s5562_s0 + $0xe9] sm:$0x1]   ;;  %s3445_s27 = smov 65   ;;  %vm201_vm12 = vcmask 1015752   ;;  %v1434_v57 = vsel %vm9_vm1, %v3009_v45, %v1430_v46 }
  0x6b   :  { %1067 = vrot.lane.b32.xlu0 %v1066_v63, %s3431_s17  ;;  %v1327_v63 = vsel %vm5_vm0, %v2988_v54, %v2987_v53  ;;  %v3016_v50 = vld [vmem:[%s5562_s0 + $0x1e8] sm:$0x2]   ;;  %s3446_s28 = smov 64   ;;  %vm222_vm13 = vcmask 1007552   ;;  %v3019_v51 = vld [vmem:[%s5562_s0 + $0xbe] sm:$0x1]   ;;  %v1417_v54 = vsel %vm13_vm2, %v3006_v44, %v1413_v43  ;;  %v1455_v59 = vsel %vm9_vm1, %v3013_v48, %v1451_v47 }
  0x6c   :  { %1129 = vrot.lane.b32.xlu1 %v1128_v14, %s3434_s7  ;;  %v1331_v11 = vsel %vm9_vm1, %v2989_v0, %v1327_v63  ;;  %v1347_v14 = vsel %vm5_vm0, %v2992_v2, %v2991_v1  ;;  %v3020_v52 = vld [vmem:[%s5562_s0 + $0x1bd] sm:$0x2]   ;;  %v3010_v58 = vld [vmem:[%s5562_s0 + $0x13c] sm:$0x8]   ;;  %v3014_v60 = vld [vmem:[%s5562_s0 + $0x191] sm:$0x8]   ;;  %v1471_v62 = vsel %vm5_vm0, %v3016_v50, %v3015_v49 }
  0x6d   :  { %v1335_v22 = vsel %vm13_vm2, %v2990_v12, %v1331_v11  ;;  %v3017_v61 = vld [vmem:[%s5562_s0 + $0x67] sm:$0x4]   ;;  %v1492_v63 = vsel %vm5_vm0, %v3020_v52, %v3019_v51  ;;  %v3021_v0 = vld [vmem:[%s5562_s0 + $0x3c] sm:$0x4]   ;;  %v3023_v1 = vld [vmem:[%s5562_s0 + $0x13] sm:$0x1]  }
  0x6e   :  { %v3024_v2 = vld [vmem:[%s5562_s0 + $0x112] sm:$0x2]   ;;  %s3447_s16 = smov 63   ;;  %vm242_vm14 = vcmask 999352   ;;  %s3448_s17 = smov 62   ;;  %vm263_vm15 = vcmask 991152   ;;  %v1475_v9 = vsel %vm9_vm1, %v3017_v61, %v1471_v62  ;;  %v1496_v11 = vsel %vm9_vm1, %v3021_v0, %v1492_v63 }
  0x6f   :  { %1108 = vrot.lane.b32.xlu0 %v1107_v13, %s3433_s6  ;;  %v2993_v13 = vld [vmem:[%s5562_s0 + $0x69] sm:$0x4]   ;;  %v3027_v3 = vld [vmem:[%s5562_s0 + $0xe8] sm:$0x1]   ;;  %v3018_v10 = vld [vmem:[%s5562_s0 + $0x166] sm:$0x8]  }
  0x70   :  { %1170 = vrot.lane.b32.xlu1 %v1169_v28, %s3436_s25  ;;  %v1351_v25 = vsel %vm9_vm1, %v2993_v13, %v1347_v14  ;;  %v2998_v28 = vld [vmem:[%s5562_s0 + $0x13d] sm:$0x8]   ;;  %v3028_v4 = vld [vmem:[%s5562_s0 + $0x1e7] sm:$0x2]   ;;  %v3022_v12 = vld [vmem:[%s5562_s0 + $0x13b] sm:$0x8]   ;;  %v1513_v14 = vsel %vm5_vm0, %v3024_v2, %v3023_v1 }
  0x71   :  { %v1355_v37 = vsel %vm13_vm2, %v2994_v26, %v1351_v25  ;;  %v3025_v13 = vld [vmem:[%s5562_s0 + $0x91] sm:$0x4]   ;;  %v3031_v17 = vld [vmem:[%s5562_s0 + $0xbd] sm:$0x1]   ;;  %s3449_s5 = smov 61   ;;  %s3450_s6 = smov 60  }
  0x72   :  { %v3032_v18 = vld [vmem:[%s5562_s0 + $0x1bc] sm:$0x2]   ;;  %v3035_v19 = vld [vmem:[%s5562_s0 + $0x12] sm:$0x1]   ;;  %v1517_v25 = vsel %vm9_vm1, %v3025_v13, %v1513_v14  ;;  %v3026_v26 = vld [vmem:[%s5562_s0 + $0x190] sm:$0x8]  }
  0x73   :  { %1150 = vrot.lane.b32.xlu0 %v1149_v27, %s3435_s24  ;;  %v1372_v27 = vsel %vm9_vm1, %v2997_v16, %v1368_v15  ;;  %v1533_v15 = vsel %vm5_vm0, %v3028_v4, %v3027_v3  ;;  %v3029_v16 = vld [vmem:[%s5562_s0 + $0x66] sm:$0x4]   ;;  %v3036_v20 = vld [vmem:[%s5562_s0 + $0x111] sm:$0x2]   ;;  %v3039_v33 = vld [vmem:[%s5562_s0 + $0xe7] sm:$0x1]  }
  0x74   :  { %1212 = vrot.lane.b32.xlu1 %v1211_v42, %s3438_s14  ;;  %v1376_v38 = vsel %vm13_vm2, %v2998_v28, %v1372_v27  ;;  %v3002_v42 = vld [vmem:[%s5562_s0 + $0x192] sm:$0x8]   ;;  %v1537_v27 = vsel %vm9_vm1, %v3029_v16, %v1533_v15  ;;  %v3030_v28 = vld [vmem:[%s5562_s0 + $0x165] sm:$0x8]   ;;  %v1575_v31 = vsel %vm5_vm0, %v3036_v20, %v3035_v19  ;;  %v3037_v32 = vld [vmem:[%s5562_s0 + $0x90] sm:$0x4]  }
  0x75   :  { %v3040_v34 = vld [vmem:[%s5562_s0 + $0x1e6] sm:$0x2]   ;;  %s3451_s23 = smov 59   ;;  %vm325_vm5 = vcmask 966552   ;;  %s3452_s24 = smov 58   ;;  %v1579_v43 = vsel %vm9_vm1, %v3037_v32, %v1575_v31 }
  0x76   :  { %v3043_v35 = vld [vmem:[%s5562_s0 + $0xbc] sm:$0x1]   ;;  %v3038_v44 = vld [vmem:[%s5562_s0 + $0x18f] sm:$0x8]   ;;  %v3041_v45 = vld [vmem:[%s5562_s0 + $0x65] sm:$0x4]   ;;  %v1595_v46 = vsel %vm5_vm0, %v3040_v34, %v3039_v33 }
  0x77   :  { %1191 = vrot.lane.b32.xlu0 %v1190_v41, %s3437_s13  ;;  %v1393_v41 = vsel %vm9_vm1, %v3001_v29, %v1389_v30  ;;  %v3033_v29 = vld [vmem:[%s5562_s0 + $0x3b] sm:$0x4]   ;;  %v1554_v30 = vsel %vm5_vm0, %v3032_v18, %v3031_v17  ;;  %v3044_v36 = vld [vmem:[%s5562_s0 + $0x1bb] sm:$0x2]   ;;  %v3047_v49 = vld [vmem:[%s5562_s0 + $0x11] sm:$0x1]  }
  0x78   :  { %1253 = vrot.lane.b32.xlu1 %v1252_v56, %s3440_s3  ;;  %v117_v8 = vpop.permute.xlu1 %116   ;;  %v1397_v53 = vsel %vm13_vm2, %v3002_v42, %v1393_v41  ;;  %v1558_v41 = vsel %vm9_vm1, %v3033_v29, %v1554_v30  ;;  %v3034_v42 = vld [vmem:[%s5562_s0 + $0x13a] sm:$0x8]   ;;  %v1616_v47 = vsel %vm5_vm0, %v3044_v36, %v3043_v35  ;;  %v3045_v48 = vld [vmem:[%s5562_s0 + $0x3a] sm:$0x4]   ;;  %v3048_v50 = vld [vmem:[%s5562_s0 + $0x110] sm:$0x2]  }
  0x79   :  { %s3453_s12 = smov 57   ;;  %s3454_s13 = smov 56   ;;  %v3051_v51 = vld [vmem:[%s5562_s0 + $0xe6] sm:$0x1]   ;;  %v3049_v61 = vld [vmem:[%s5562_s0 + $0x8f] sm:$0x4]   ;;  %v1637_v62 = vsel %vm5_vm0, %v3048_v50, %v3047_v49 }
  0x7a   :  { %v3052_v52 = vld [vmem:[%s5562_s0 + $0x1e5] sm:$0x2]   ;;  %v3055_v1 = vld [vmem:[%s5562_s0 + $0xbb] sm:$0x1]   ;;  %s3455_s30 = smov 55   ;;  %s3457_s19 = smov 53  }
  0x7b   :  { %1232 = vrot.lane.b32.xlu0 %v1231_v55, %s3439_s2  ;;  %v1657_v63 = vsel %vm5_vm0, %v3052_v52, %v3051_v51  ;;  %v3053_v0 = vld [vmem:[%s5562_s0 + $0x64] sm:$0x4]   ;;  %v3056_v2 = vld [vmem:[%s5562_s0 + $0x1ba] sm:$0x2]   ;;  %s3456_s2 = smov 54   ;;  %s3459_s8 = smov 51  }
  0x7c   :  { %1294 = vrot.lane.b32.xlu1 %v1293_v7, %s3442_s21  ;;  %v3059_v3 = vld [vmem:[%s5562_s0 + $0x10] sm:$0x1]   ;;  %v3057_v13 = vld [vmem:[%s5562_s0 + $0x39] sm:$0x4]   ;;  %v1678_v14 = vsel %vm5_vm0, %v3056_v2, %v3055_v1  ;;  %v3063_v17 = vld [vmem:[%s5562_s0 + $0xe5] sm:$0x1]  }
  0x7d   :  { %v50_v5 = vpop.permute.xlu0 %49   ;;  %v3060_v4 = vld [vmem:[%s5562_s0 + $0x10f] sm:$0x2]   ;;  %v3064_v18 = vld [vmem:[%s5562_s0 + $0x1e4] sm:$0x2]   ;;  %v3067_v19 = vld [vmem:[%s5562_s0 + $0xba] sm:$0x1]  }
  0x7e   :  { %53 = vst.msk [vmem:[#allocation0 + $0x28] sm:$0x3] %vm51_vm4, %v50_v5   ;;  %55 = vst.msk [vmem:[#allocation0 + $0xe] sm:$0xc] %vm51_vm4, %v50_v5   ;;  %v138_v24 = vpop.permute.xlu1 %137   ;;  %vm304_vm4 = vcmask 974752   ;;  %v1699_v15 = vsel %vm5_vm0, %v3060_v4, %v3059_v3  ;;  %v1719_v30 = vsel %vm5_vm0, %v3064_v18, %v3063_v17  ;;  %s3461_s26 = smov 49  }
  0x7f   :  { %58 = vst.msk [vmem:[#allocation0 + $0x20] sm:$0x3] %vm56_vm6, %v50_v5   ;;  %60 = vst.msk [vmem:[#allocation0 + $0x6] sm:$0xc] %vm56_vm6, %v50_v5   ;;  %1274 = vrot.lane.b32.xlu0 %v1273_v6, %s3441_s20  ;;  %v1438_v5 = vsel %vm13_vm2, %v3010_v58, %v1434_v57  ;;  %v1459_v6 = vsel %vm13_vm2, %v3014_v60, %v1455_v59  ;;  %vm346_vm6 = vcmask 958352   ;;  %v1599_v57 = vsel %vm9_vm1, %v3041_v45, %v1595_v46  ;;  %s3458_s20 = smov 52  }
  0x80   :  { %120 = vst.msk [vmem:[#allocation0 + $0x28] sm:$0x3] %vm118_vm7, %v117_v8   ;;  %122 = vst.msk [vmem:[#allocation0 + $0xe] sm:$0xc] %vm118_vm7, %v117_v8   ;;  %1336 = vrot.lane.b32.xlu1 %v1335_v22, %s3444_s10  ;;  %v1500_v22 = vsel %vm13_vm2, %v3022_v12, %v1496_v11  ;;  %vm366_vm7 = vcmask 950152   ;;  %v1620_v59 = vsel %vm9_vm1, %v3045_v48, %v1616_v47  ;;  %v1661_v11 = vsel %vm9_vm1, %v3053_v0, %v1657_v63  ;;  %s3463_s15 = smov 47  }
  0x81   :  { %v92_v23 = vpop.permute.xlu0 %91   ;;  %v3042_v58 = vld [vmem:[%s5562_s0 + $0x164] sm:$0x8]   ;;  %v3046_v60 = vld [vmem:[%s5562_s0 + $0x139] sm:$0x8]   ;;  %v3054_v12 = vld [vmem:[%s5562_s0 + $0x163] sm:$0x8]  }
  0x82   :  { %95 = vst.msk [vmem:[#allocation0 + $0x20] sm:$0x3] %vm47_vm3, %v92_v23   ;;  %97 = vst.msk [vmem:[#allocation0 + $0x6] sm:$0xc] %vm47_vm3, %v92_v23   ;;  %v179_v40 = vpop.permute.xlu1 %178   ;;  %vm284_vm3 = vcmask 982952   ;;  %s3465_s4 = smov 45  }
  0x83   :  { %99 = vst.msk [vmem:[#allocation0] sm:$0x3] %vm98_vm8, %v92_v23   ;;  %101 = vst.msk [vmem:[#allocation0 + $0x16] sm:$0xc] %vm98_vm8, %v92_v23   ;;  %1315 = vrot.lane.b32.xlu0 %v1314_v21, %s3443_s9  ;;  %v1479_v21 = vsel %vm13_vm2, %v3018_v10, %v1475_v9  ;;  %vm387_vm8 = vcmask 941952   ;;  %v1641_v9 = vsel %vm9_vm1, %v3049_v61, %v1637_v62  ;;  %s3460_s9 = smov 50  }
  0x84   :  { %141 = vst.msk [vmem:[#allocation0 + $0x20] sm:$0x3] %vm139_vm9, %v138_v24   ;;  %143 = vst.msk [vmem:[#allocation0 + $0x6] sm:$0xc] %vm139_vm9, %v138_v24   ;;  %1377 = vrot.lane.b32.xlu1 %v1376_v38, %s3446_s28  ;;  %v1541_v38 = vsel %vm13_vm2, %v3030_v28, %v1537_v27  ;;  %vm408_vm9 = vcmask 933752   ;;  %s3467_s22 = smov 43  }
  0x85   :  { %v159_v39 = vpop.permute.xlu0 %158   ;;  %182 = vst.msk [vmem:[#allocation0 + $0x28] sm:$0x3] %vm180_vm11, %v179_v40   ;;  %184 = vst.msk [vmem:[#allocation0 + $0xe] sm:$0xc] %vm180_vm11, %v179_v40   ;;  %v3050_v10 = vld [vmem:[%s5562_s0 + $0x18e] sm:$0x8]  }
  0x86   :  { %161 = vst.msk [vmem:[#allocation0] sm:$0x3] %vm160_vm10, %v159_v39   ;;  %163 = vst.msk [vmem:[#allocation0 + $0x16] sm:$0xc] %vm160_vm10, %v159_v39   ;;  %v221_v56 = vpop.permute.xlu1 %220   ;;  %vm428_vm10 = vcmask 925552   ;;  %vm449_vm11 = vcmask 917352  }
  0x87   :  { %1356 = vrot.lane.b32.xlu0 %v1355_v37, %s3445_s27  ;;  %223 = vst.msk [vmem:[#allocation0] sm:$0x3] %vm222_vm13, %v221_v56   ;;  %225 = vst.msk [vmem:[#allocation0 + $0x16] sm:$0xc] %vm222_vm13, %v221_v56   ;;  %v1521_v37 = vsel %vm13_vm2, %v3026_v26, %v1517_v25  ;;  %v3061_v16 = vld [vmem:[%s5562_s0 + $0x8e] sm:$0x4]   ;;  %v1682_v25 = vsel %vm9_vm1, %v3057_v13, %v1678_v14 }
  0x88   :  { %1418 = vrot.lane.b32.xlu1 %v1417_v54, %s3448_s17  ;;  %v1583_v54 = vsel %vm13_vm2, %v3038_v44, %v1579_v43  ;;  %v3068_v20 = vld [vmem:[%s5562_s0 + $0x1b9] sm:$0x2]   ;;  %v3058_v26 = vld [vmem:[%s5562_s0 + $0x138] sm:$0x8]   ;;  %v1703_v27 = vsel %vm9_vm1, %v3061_v16, %v1699_v15  ;;  %v3062_v28 = vld [vmem:[%s5562_s0 + $0x18d] sm:$0x8]  }
  0x89   :  { %v200_v55 = vpop.permute.xlu0 %199   ;;  %v3065_v29 = vld [vmem:[%s5562_s0 + $0x63] sm:$0x4]   ;;  %v1740_v31 = vsel %vm5_vm0, %v3068_v20, %v3067_v19  ;;  %v3069_v32 = vld [vmem:[%s5562_s0 + $0x38] sm:$0x4]   ;;  %v3071_v33 = vld [vmem:[%s5562_s0 + $0xf] sm:$0x1]  }
  0x8a   :  { %203 = vst.msk [vmem:[#allocation0 + $0x20] sm:$0x3] %vm201_vm12, %v200_v55   ;;  %205 = vst.msk [vmem:[#allocation0 + $0x6] sm:$0xc] %vm201_vm12, %v200_v55   ;;  %v262_v8 = vpop.permute.xlu1 %261   ;;  %vm470_vm12 = vcmask 909152   ;;  %vm490_vm13 = vcmask 900952   ;;  %v1744_v43 = vsel %vm9_vm1, %v3069_v32, %v1740_v31 }
  0x8b   :  { %1398 = vrot.lane.b32.xlu0 %v1397_v53, %s3447_s16  ;;  %265 = vst.msk [vmem:[#allocation0 + $0x20] sm:$0x3] %vm263_vm15, %v262_v8   ;;  %267 = vst.msk [vmem:[#allocation0 + $0x6] sm:$0xc] %vm263_vm15, %v262_v8   ;;  %v1562_v53 = vsel %vm13_vm2, %v3034_v42, %v1558_v41  ;;  %v3072_v34 = vld [vmem:[%s5562_s0 + $0x10e] sm:$0x2]   ;;  %v1723_v41 = vsel %vm9_vm1, %v3065_v29, %v1719_v30 }
  0x8c   :  { %1460 = vrot.lane.b32.xlu1 %v1459_v6, %s3450_s6  ;;  %v1624_v6 = vsel %vm13_vm2, %v3046_v60, %v1620_v59  ;;  %v3075_v35 = vld [vmem:[%s5562_s0 + $0xe4] sm:$0x1]   ;;  %v3066_v42 = vld [vmem:[%s5562_s0 + $0x162] sm:$0x8]   ;;  %v3070_v44 = vld [vmem:[%s5562_s0 + $0x137] sm:$0x8]   ;;  %v1761_v46 = vsel %vm5_vm0, %v3072_v34, %v3071_v33 }
  0x8d   :  { %v241_v7 = vpop.permute.xlu0 %240   ;;  %v3076_v36 = vld [vmem:[%s5562_s0 + $0x1e3] sm:$0x2]   ;;  %v3073_v45 = vld [vmem:[%s5562_s0 + $0x8d] sm:$0x4]   ;;  %v3079_v49 = vld [vmem:[%s5562_s0 + $0xb9] sm:$0x1]  }
  0x8e   :  { %244 = vst.msk [vmem:[#allocation0 + $0x28] sm:$0x3] %vm242_vm14, %v241_v7   ;;  %246 = vst.msk [vmem:[#allocation0 + $0xe] sm:$0xc] %vm242_vm14, %v241_v7   ;;  %v303_v24 = vpop.permute.xlu1 %302   ;;  %vm511_vm14 = vcmask 892752   ;;  %v1781_v47 = vsel %vm5_vm0, %v3076_v36, %v3075_v35  ;;  %vm532_vm15 = vcmask 884552  }
  0x8f   :  { %1439 = vrot.lane.b32.xlu0 %v1438_v5, %s3449_s5  ;;  %306 = vst.msk [vmem:[#allocation0 + $0x28] sm:$0x3] %vm304_vm4, %v303_v24   ;;  %308 = vst.msk [vmem:[#allocation0 + $0xe] sm:$0xc] %vm304_vm4, %v303_v24   ;;  %v1603_v5 = vsel %vm13_vm2, %v3042_v58, %v1599_v57  ;;  %v3077_v48 = vld [vmem:[%s5562_s0 + $0x62] sm:$0x4]   ;;  %v1765_v57 = vsel %vm9_vm1, %v3073_v45, %v1761_v46 }
  0x90   :  { %1501 = vrot.lane.b32.xlu1 %v1500_v22, %s3452_s24  ;;  %v1665_v22 = vsel %vm13_vm2, %v3054_v12, %v1661_v11  ;;  %v3080_v50 = vld [vmem:[%s5562_s0 + $0x1b8] sm:$0x2]   ;;  %s3462_s27 = smov 48   ;;  %v3083_v51 = vld [vmem:[%s5562_s0 + $0xe] sm:$0x1]   ;;  %v1785_v59 = vsel %vm9_vm1, %v3077_v48, %v1781_v47  ;;  %vm573_vm4 = vcmask 868152  }
  0x91   :  { %v283_v23 = vpop.permute.xlu0 %282   ;;  %v3084_v52 = vld [vmem:[%s5562_s0 + $0x10d] sm:$0x2]   ;;  %v3074_v58 = vld [vmem:[%s5562_s0 + $0x18c] sm:$0x8]   ;;  %v3078_v60 = vld [vmem:[%s5562_s0 + $0x161] sm:$0x8]   ;;  %v1802_v62 = vsel %vm5_vm0, %v3080_v50, %v3079_v49 }
  0x92   :  { %285 = vst.msk [vmem:[#allocation0] sm:$0x3] %vm284_vm3, %v283_v23   ;;  %287 = vst.msk [vmem:[#allocation0 + $0x16] sm:$0xc] %vm284_vm3, %v283_v23   ;;  %v345_v40 = vpop.permute.xlu1 %344   ;;  %vm552_vm3 = vcmask 876352   ;;  %v1823_v63 = vsel %vm5_vm0, %v3084_v52, %v3083_v51  ;;  %s3464_s16 = smov 46  }
  0x93   :  { %1480 = vrot.lane.b32.xlu0 %v1479_v21, %s3451_s23  ;;  %347 = vst.msk [vmem:[#allocation0] sm:$0x3] %vm346_vm6, %v345_v40   ;;  %349 = vst.msk [vmem:[#allocation0 + $0x16] sm:$0xc] %vm346_vm6, %v345_v40   ;;  %v1645_v21 = vsel %vm13_vm2, %v3050_v10, %v1641_v9  ;;  %v3081_v61 = vld [vmem:[%s5562_s0 + $0x37] sm:$0x4]  }
  0x94   :  { %1542 = vrot.lane.b32.xlu1 %v1541_v38, %s3454_s13  ;;  %v1707_v38 = vsel %vm13_vm2, %v3062_v28, %v1703_v27  ;;  %v3085_v0 = vld [vmem:[%s5562_s0 + $0x8c] sm:$0x4]   ;;  %v3087_v1 = vld [vmem:[%s5562_s0 + $0xe3] sm:$0x1]   ;;  %v3091_v3 = vld [vmem:[%s5562_s0 + $0xb8] sm:$0x1]   ;;  %v1806_v9 = vsel %vm9_vm1, %v3081_v61, %v1802_v62 }
  0x95   :  { %v324_v39 = vpop.permute.xlu0 %323   ;;  %v3088_v2 = vld [vmem:[%s5562_s0 + $0x1e2] sm:$0x2]   ;;  %v3092_v4 = vld [vmem:[%s5562_s0 + $0x1b7] sm:$0x2]   ;;  %v3082_v10 = vld [vmem:[%s5562_s0 + $0x136] sm:$0x8]   ;;  %v1827_v11 = vsel %vm9_vm1, %v3085_v0, %v1823_v63 }
  0x96   :  { %327 = vst.msk [vmem:[#allocation0 + $0x20] sm:$0x3] %vm325_vm5, %v324_v39   ;;  %329 = vst.msk [vmem:[#allocation0 + $0x6] sm:$0xc] %vm325_vm5, %v324_v39   ;;  %v386_v56 = vpop.permute.xlu1 %385   ;;  %vm594_vm5 = vcmask 859952   ;;  %v1843_v14 = vsel %vm5_vm0, %v3088_v2, %v3087_v1  ;;  %v1864_v15 = vsel %vm5_vm0, %v3092_v4, %v3091_v3  ;;  %vm614_vm6 = vcmask 851752  }
  0x97   :  { %1522 = vrot.lane.b32.xlu0 %v1521_v37, %s3453_s12  ;;  %389 = vst.msk [vmem:[#allocation0 + $0x20] sm:$0x3] %vm387_vm8, %v386_v56   ;;  %391 = vst.msk [vmem:[#allocation0 + $0x6] sm:$0xc] %vm387_vm8, %v386_v56   ;;  %v1686_v37 = vsel %vm13_vm2, %v3058_v26, %v1682_v25  ;;  %v3086_v12 = vld [vmem:[%s5562_s0 + $0x18b] sm:$0x8]  }
  0x98   :  { %1584 = vrot.lane.b32.xlu1 %v1583_v54, %s3456_s2  ;;  %v1748_v54 = vsel %vm13_vm2, %v3070_v44, %v1744_v43  ;;  %v3089_v13 = vld [vmem:[%s5562_s0 + $0x61] sm:$0x4]   ;;  %v3093_v16 = vld [vmem:[%s5562_s0 + $0x36] sm:$0x4]   ;;  %v3095_v17 = vld [vmem:[%s5562_s0 + $0xd] sm:$0x1]  }
  0x99   :  { %v365_v55 = vpop.permute.xlu0 %364   ;;  %v3096_v18 = vld [vmem:[%s5562_s0 + $0x10c] sm:$0x2]   ;;  %s3466_s5 = smov 44   ;;  %v3099_v19 = vld [vmem:[%s5562_s0 + $0xe2] sm:$0x1]   ;;  %v1847_v25 = vsel %vm9_vm1, %v3089_v13, %v1843_v14  ;;  %v1868_v27 = vsel %vm9_vm1, %v3093_v16, %v1864_v15  ;;  %vm656_vm8 = vcmask 835352  }
  0x9a   :  { %368 = vst.msk [vmem:[#allocation0 + $0x28] sm:$0x3] %vm366_vm7, %v365_v55   ;;  %370 = vst.msk [vmem:[#allocation0 + $0xe] sm:$0xc] %vm366_vm7, %v365_v55   ;;  %v427_v8 = vpop.permute.xlu1 %426   ;;  %vm635_vm7 = vcmask 843552   ;;  %v1885_v30 = vsel %vm5_vm0, %v3096_v18, %v3095_v17  ;;  %s3468_s23 = smov 42  }
  0x9b   :  { %1563 = vrot.lane.b32.xlu0 %v1562_v53, %s3455_s30  ;;  %430 = vst.msk [vmem:[#allocation0 + $0x28] sm:$0x3] %vm428_vm10, %v427_v8   ;;  %432 = vst.msk [vmem:[#allocation0 + $0xe] sm:$0xc] %vm428_vm10, %v427_v8   ;;  %v1727_v53 = vsel %vm13_vm2, %v3066_v42, %v1723_v41  ;;  %v3100_v20 = vld [vmem:[%s5562_s0 + $0x1e1] sm:$0x2]  }
  0x9c   :  { %1625 = vrot.lane.b32.xlu1 %v1624_v6, %s3458_s20  ;;  %v1789_v6 = vsel %vm13_vm2, %v3078_v60, %v1785_v59  ;;  %v3090_v26 = vld [vmem:[%s5562_s0 + $0x160] sm:$0x8]   ;;  %v3094_v28 = vld [vmem:[%s5562_s0 + $0x135] sm:$0x8]   ;;  %v3097_v29 = vld [vmem:[%s5562_s0 + $0x8b] sm:$0x4]   ;;  %v1905_v31 = vsel %vm5_vm0, %v3100_v20, %v3099_v19 }
  0x9d   :  { %v407_v7 = vpop.permute.xlu0 %406   ;;  %v3101_v32 = vld [vmem:[%s5562_s0 + $0x60] sm:$0x4]   ;;  %v3103_v33 = vld [vmem:[%s5562_s0 + $0xb7] sm:$0x1]   ;;  %v3107_v35 = vld [vmem:[%s5562_s0 + $0xc] sm:$0x1]   ;;  %v1889_v41 = vsel %vm9_vm1, %v3097_v29, %v1885_v30 }
  0x9e   :  { %409 = vst.msk [vmem:[#allocation0] sm:$0x3] %vm408_vm9, %v407_v7   ;;  %411 = vst.msk [vmem:[#allocation0 + $0x16] sm:$0xc] %vm408_vm9, %v407_v7   ;;  %v469_v24 = vpop.permute.xlu1 %468   ;;  %v3104_v34 = vld [vmem:[%s5562_s0 + $0x1b6] sm:$0x2]   ;;  %v1909_v43 = vsel %vm9_vm1, %v3101_v32, %v1905_v31 }
  0x9f   :  { %1604 = vrot.lane.b32.xlu0 %v1603_v5, %s3457_s19  ;;  %471 = vst.msk [vmem:[#allocation0] sm:$0x3] %vm470_vm12, %v469_v24   ;;  %473 = vst.msk [vmem:[#allocation0 + $0x16] sm:$0xc] %vm470_vm12, %v469_v24   ;;  %v1769_v5 = vsel %vm13_vm2, %v3074_v58, %v1765_v57  ;;  %vm676_vm9 = vcmask 827152   ;;  %v1926_v46 = vsel %vm5_vm0, %v3104_v34, %v3103_v33  ;;  %s3469_s11 = smov 41  }
  0xa0   :  { %1666 = vrot.lane.b32.xlu1 %v1665_v22, %s3460_s9  ;;  %v1831_v22 = vsel %vm13_vm2, %v3086_v12, %v1827_v11  ;;  %v3108_v36 = vld [vmem:[%s5562_s0 + $0x10b] sm:$0x2]   ;;  %v3098_v42 = vld [vmem:[%s5562_s0 + $0x18a] sm:$0x8]   ;;  %v3102_v44 = vld [vmem:[%s5562_s0 + $0x15f] sm:$0x8]  }
  0xa1   :  { %v448_v23 = vpop.permute.xlu0 %447   ;;  %v3105_v45 = vld [vmem:[%s5562_s0 + $0x35] sm:$0x4]   ;;  %v1947_v47 = vsel %vm5_vm0, %v3108_v36, %v3107_v35  ;;  %v3109_v48 = vld [vmem:[%s5562_s0 + $0x8a] sm:$0x4]   ;;  %v3111_v49 = vld [vmem:[%s5562_s0 + $0xe1] sm:$0x1]  }
  0xa2   :  { %451 = vst.msk [vmem:[#allocation0 + $0x20] sm:$0x3] %vm449_vm11, %v448_v23   ;;  %453 = vst.msk [vmem:[#allocation0 + $0x6] sm:$0xc] %vm449_vm11, %v448_v23   ;;  %v510_v40 = vpop.permute.xlu1 %509   ;;  %v3112_v50 = vld [vmem:[%s5562_s0 + $0x1e0] sm:$0x2]   ;;  %v1930_v57 = vsel %vm9_vm1, %v3105_v45, %v1926_v46  ;;  %v1951_v59 = vsel %vm9_vm1, %v3109_v48, %v1947_v47 }
  0xa3   :  { %1646 = vrot.lane.b32.xlu0 %v1645_v21, %s3459_s8  ;;  %513 = vst.msk [vmem:[#allocation0 + $0x20] sm:$0x3] %vm511_vm14, %v510_v40   ;;  %515 = vst.msk [vmem:[#allocation0 + $0x6] sm:$0xc] %vm511_vm14, %v510_v40   ;;  %v1810_v21 = vsel %vm13_vm2, %v3082_v10, %v1806_v9  ;;  %vm697_vm10 = vcmask 818952   ;;  %s3470_s12 = smov 40   ;;  %v1967_v62 = vsel %vm5_vm0, %v3112_v50, %v3111_v49 }
  0xa4   :  { %1708 = vrot.lane.b32.xlu1 %v1707_v38, %s3462_s27  ;;  %v1872_v38 = vsel %vm13_vm2, %v3094_v28, %v1868_v27  ;;  %vm718_vm11 = vcmask 810752   ;;  %v3115_v51 = vld [vmem:[%s5562_s0 + $0xb6] sm:$0x1]   ;;  %v3106_v58 = vld [vmem:[%s5562_s0 + $0x134] sm:$0x8]   ;;  %s3471_s29 = smov 39  }
  0xa5   :  { %v489_v39 = vpop.permute.xlu0 %488   ;;  %v3116_v52 = vld [vmem:[%s5562_s0 + $0x1b5] sm:$0x2]   ;;  %v3110_v60 = vld [vmem:[%s5562_s0 + $0x189] sm:$0x8]   ;;  %v3113_v61 = vld [vmem:[%s5562_s0 + $0x5f] sm:$0x4]  }
  0xa6   :  { %492 = vst.msk [vmem:[#allocation0 + $0x28] sm:$0x3] %vm490_vm13, %v489_v39   ;;  %494 = vst.msk [vmem:[#allocation0 + $0xe] sm:$0xc] %vm490_vm13, %v489_v39   ;;  %v551_v56 = vpop.permute.xlu1 %550   ;;  %v1988_v63 = vsel %vm5_vm0, %v3116_v52, %v3115_v51  ;;  %v3117_v0 = vld [vmem:[%s5562_s0 + $0x34] sm:$0x4]   ;;  %v1971_v9 = vsel %vm9_vm1, %v3113_v61, %v1967_v62 }
  0xa7   :  { %1687 = vrot.lane.b32.xlu0 %v1686_v37, %s3461_s26  ;;  %554 = vst.msk [vmem:[#allocation0 + $0x28] sm:$0x3] %vm552_vm3, %v551_v56   ;;  %556 = vst.msk [vmem:[#allocation0 + $0xe] sm:$0xc] %vm552_vm3, %v551_v56   ;;  %v1851_v37 = vsel %vm13_vm2, %v3090_v26, %v1847_v25  ;;  %v3119_v1 = vld [vmem:[%s5562_s0 + $0xb] sm:$0x1]   ;;  %v1992_v11 = vsel %vm9_vm1, %v3117_v0, %v1988_v63 }
  0xa8   :  { %1749 = vrot.lane.b32.xlu1 %v1748_v54, %s3464_s16  ;;  %v1913_v54 = vsel %vm13_vm2, %v3102_v44, %v1909_v43  ;;  %v3120_v2 = vld [vmem:[%s5562_s0 + $0x10a] sm:$0x2]   ;;  %vm738_vm12 = vcmask 802552   ;;  %s3472_s30 = smov 38   ;;  %vm759_vm13 = vcmask 794352   ;;  %s3473_s18 = smov 37  }
  0xa9   :  { %v531_v55 = vpop.permute.xlu0 %530   ;;  %v3123_v3 = vld [vmem:[%s5562_s0 + $0xe0] sm:$0x1]   ;;  %v3114_v10 = vld [vmem:[%s5562_s0 + $0x15e] sm:$0x8]   ;;  %v3118_v12 = vld [vmem:[%s5562_s0 + $0x133] sm:$0x8]   ;;  %v2009_v14 = vsel %vm5_vm0, %v3120_v2, %v3119_v1 }
  0xaa   :  { %533 = vst.msk [vmem:[#allocation0] sm:$0x3] %vm532_vm15, %v531_v55   ;;  %535 = vst.msk [vmem:[#allocation0 + $0x16] sm:$0xc] %vm532_vm15, %v531_v55   ;;  %v593_v8 = vpop.permute.xlu1 %592   ;;  %v3124_v4 = vld [vmem:[%s5562_s0 + $0x1df] sm:$0x2]  }
  0xab   :  { %1728 = vrot.lane.b32.xlu0 %v1727_v53, %s3463_s15  ;;  %595 = vst.msk [vmem:[#allocation0] sm:$0x3] %vm594_vm5, %v593_v8   ;;  %597 = vst.msk [vmem:[#allocation0 + $0x16] sm:$0xc] %vm594_vm5, %v593_v8   ;;  %v1893_v53 = vsel %vm13_vm2, %v3098_v42, %v1889_v41  ;;  %v3121_v13 = vld [vmem:[%s5562_s0 + $0x89] sm:$0x4]   ;;  %v2029_v15 = vsel %vm5_vm0, %v3124_v4, %v3123_v3 }
  0xac   :  { %1790 = vrot.lane.b32.xlu1 %v1789_v6, %s3466_s5  ;;  %v1955_v6 = vsel %vm13_vm2, %v3110_v60, %v1951_v59  ;;  %v3125_v16 = vld [vmem:[%s5562_s0 + $0x5e] sm:$0x4]   ;;  %v3127_v17 = vld [vmem:[%s5562_s0 + $0xb5] sm:$0x1]   ;;  %vm780_vm14 = vcmask 786152   ;;  %s3474_s19 = smov 36   ;;  %v2013_v25 = vsel %vm9_vm1, %v3121_v13, %v2009_v14 }
  0xad   :  { %v572_v7 = vpop.permute.xlu0 %571   ;;  %v3128_v18 = vld [vmem:[%s5562_s0 + $0x1b4] sm:$0x2]   ;;  %vm800_vm15 = vcmask 777952   ;;  %v3131_v19 = vld [vmem:[%s5562_s0 + $0xa] sm:$0x1]   ;;  %v2033_v27 = vsel %vm9_vm1, %v3125_v16, %v2029_v15  ;;  %s3475_s7 = smov 35  }
  0xae   :  { %575 = vst.msk [vmem:[#allocation0 + $0x20] sm:$0x3] %vm573_vm4, %v572_v7   ;;  %577 = vst.msk [vmem:[#allocation0 + $0x6] sm:$0xc] %vm573_vm4, %v572_v7   ;;  %v634_v24 = vpop.permute.xlu1 %633   ;;  %v3132_v20 = vld [vmem:[%s5562_s0 + $0x109] sm:$0x2]   ;;  %v2050_v30 = vsel %vm5_vm0, %v3128_v18, %v3127_v17 }
  0xaf   :  { %1770 = vrot.lane.b32.xlu0 %v1769_v5, %s3465_s4  ;;  %637 = vst.msk [vmem:[#allocation0 + $0x20] sm:$0x3] %vm635_vm7, %v634_v24   ;;  %639 = vst.msk [vmem:[#allocation0 + $0x6] sm:$0xc] %vm635_vm7, %v634_v24   ;;  %v1934_v5 = vsel %vm13_vm2, %v3106_v58, %v1930_v57  ;;  %v3122_v26 = vld [vmem:[%s5562_s0 + $0x188] sm:$0x8]   ;;  %v2071_v31 = vsel %vm5_vm0, %v3132_v20, %v3131_v19 }
  0xb0   :  { %1832 = vrot.lane.b32.xlu1 %v1831_v22, %s3468_s23  ;;  %v1996_v22 = vsel %vm13_vm2, %v3118_v12, %v1992_v11  ;;  %v3126_v28 = vld [vmem:[%s5562_s0 + $0x15d] sm:$0x8]   ;;  %v3129_v29 = vld [vmem:[%s5562_s0 + $0x33] sm:$0x4]   ;;  %v3133_v32 = vld [vmem:[%s5562_s0 + $0x88] sm:$0x4]  }
  0xb1   :  { %v613_v23 = vpop.permute.xlu0 %612   ;;  %v3135_v33 = vld [vmem:[%s5562_s0 + $0xdf] sm:$0x1]   ;;  %vm821_vm3 = vcmask 769752   ;;  %s3476_s8 = smov 34   ;;  %vm842_vm4 = vcmask 761552   ;;  %v2054_v41 = vsel %vm9_vm1, %v3129_v29, %v2050_v30  ;;  %v2075_v43 = vsel %vm9_vm1, %v3133_v32, %v2071_v31  ;;  %s3477_s25 = smov 33  }
  0xb2   :  { %616 = vst.msk [vmem:[#allocation0 + $0x28] sm:$0x3] %vm614_vm6, %v613_v23   ;;  %618 = vst.msk [vmem:[#allocation0 + $0xe] sm:$0xc] %vm614_vm6, %v613_v23   ;;  %v675_v40 = vpop.permute.xlu1 %674   ;;  %v3136_v34 = vld [vmem:[%s5562_s0 + $0x1de] sm:$0x2]  }
  0xb3   :  { %1811 = vrot.lane.b32.xlu0 %v1810_v21, %s3467_s22  ;;  %678 = vst.msk [vmem:[#allocation0 + $0x28] sm:$0x3] %vm676_vm9, %v675_v40   ;;  %680 = vst.msk [vmem:[#allocation0 + $0xe] sm:$0xc] %vm676_vm9, %v675_v40   ;;  %v1975_v21 = vsel %vm13_vm2, %v3114_v10, %v1971_v9  ;;  %v3139_v35 = vld [vmem:[%s5562_s0 + $0xb4] sm:$0x1]   ;;  %v2091_v46 = vsel %vm5_vm0, %v3136_v34, %v3135_v33 }
  0xb4   :  { %1873 = vrot.lane.b32.xlu1 %v1872_v38, %s3470_s12  ;;  %v3140_v36 = vld [vmem:[%s5562_s0 + $0x1b3] sm:$0x2]   ;;  %v2037_v38 = vsel %vm13_vm2, %v3126_v28, %v2033_v27  ;;  %v3130_v42 = vld [vmem:[%s5562_s0 + $0x132] sm:$0x8]   ;;  %v3134_v44 = vld [vmem:[%s5562_s0 + $0x187] sm:$0x8]  }
  0xb5   :  { %v655_v39 = vpop.permute.xlu0 %654   ;;  %v3137_v45 = vld [vmem:[%s5562_s0 + $0x5d] sm:$0x4]   ;;  %v2112_v47 = vsel %vm5_vm0, %v3140_v36, %v3139_v35  ;;  %v3141_v48 = vld [vmem:[%s5562_s0 + $0x32] sm:$0x4]   ;;  %v3143_v49 = vld [vmem:[%s5562_s0 + $0x9] sm:$0x1]  }
  0xb6   :  { %657 = vst.msk [vmem:[#allocation0] sm:$0x3] %vm656_vm8, %v655_v39   ;;  %659 = vst.msk [vmem:[#allocation0 + $0x16] sm:$0xc] %vm656_vm8, %v655_v39   ;;  %v717_v56 = vpop.permute.xlu1 %716   ;;  %v3144_v50 = vld [vmem:[%s5562_s0 + $0x108] sm:$0x2]   ;;  %v2095_v57 = vsel %vm9_vm1, %v3137_v45, %v2091_v46  ;;  %v2116_v59 = vsel %vm9_vm1, %v3141_v48, %v2112_v47 }
  0xb7   :  { %1852 = vrot.lane.b32.xlu0 %v1851_v37, %s3469_s11  ;;  %719 = vst.msk [vmem:[#allocation0] sm:$0x3] %vm718_vm11, %v717_v56   ;;  %721 = vst.msk [vmem:[#allocation0 + $0x16] sm:$0xc] %vm718_vm11, %v717_v56   ;;  %v2017_v37 = vsel %vm13_vm2, %v3122_v26, %v2013_v25  ;;  %vm862_vm5 = vcmask 753352   ;;  %s3478_s26 = smov 32   ;;  %v2133_v62 = vsel %vm5_vm0, %v3144_v50, %v3143_v49 }
  0xb8   :  { %1914 = vrot.lane.b32.xlu1 %v1913_v54, %s3472_s30  ;;  %vm883_vm6 = vcmask 745152   ;;  %v3147_v51 = vld [vmem:[%s5562_s0 + $0xde] sm:$0x1]   ;;  %v2079_v54 = vsel %vm13_vm2, %v3134_v44, %v2075_v43  ;;  %v3138_v58 = vld [vmem:[%s5562_s0 + $0x15c] sm:$0x8]   ;;  %s3479_s14 = smov 31  }
  0xb9   :  { %v696_v55 = vpop.permute.xlu0 %695   ;;  %v3148_v52 = vld [vmem:[%s5562_s0 + $0x1dd] sm:$0x2]   ;;  %v3142_v60 = vld [vmem:[%s5562_s0 + $0x131] sm:$0x8]   ;;  %v3145_v61 = vld [vmem:[%s5562_s0 + $0x87] sm:$0x4]  }
  0xba   :  { %699 = vst.msk [vmem:[#allocation0 + $0x20] sm:$0x3] %vm697_vm10, %v696_v55   ;;  %701 = vst.msk [vmem:[#allocation0 + $0x6] sm:$0xc] %vm697_vm10, %v696_v55   ;;  %v758_v8 = vpop.permute.xlu1 %757   ;;  %v2153_v63 = vsel %vm5_vm0, %v3148_v52, %v3147_v51  ;;  %v3149_v0 = vld [vmem:[%s5562_s0 + $0x5c] sm:$0x4]   ;;  %v2137_v9 = vsel %vm9_vm1, %v3145_v61, %v2133_v62 }
  0xbb   :  { %1894 = vrot.lane.b32.xlu0 %v1893_v53, %s3471_s29  ;;  %761 = vst.msk [vmem:[#allocation0 + $0x20] sm:$0x3] %vm759_vm13, %v758_v8   ;;  %763 = vst.msk [vmem:[#allocation0 + $0x6] sm:$0xc] %vm759_vm13, %v758_v8   ;;  %v2058_v53 = vsel %vm13_vm2, %v3130_v42, %v2054_v41  ;;  %v3151_v1 = vld [vmem:[%s5562_s0 + $0xb3] sm:$0x1]   ;;  %v2157_v11 = vsel %vm9_vm1, %v3149_v0, %v2153_v63 }
  0xbc   :  { %1956 = vrot.lane.b32.xlu1 %v1955_v6, %s3474_s19  ;;  %v3152_v2 = vld [vmem:[%s5562_s0 + $0x1b2] sm:$0x2]   ;;  %vm904_vm7 = vcmask 736952   ;;  %s3480_s15 = smov 30   ;;  %vm924_vm8 = vcmask 728752   ;;  %v2120_v6 = vsel %vm13_vm2, %v3142_v60, %v2116_v59  ;;  %s3481_s3 = smov 29  }
  0xbd   :  { %v737_v7 = vpop.permute.xlu0 %736   ;;  %v3155_v3 = vld [vmem:[%s5562_s0 + $0x8] sm:$0x1]   ;;  %v3146_v10 = vld [vmem:[%s5562_s0 + $0x186] sm:$0x8]   ;;  %v3150_v12 = vld [vmem:[%s5562_s0 + $0x15b] sm:$0x8]   ;;  %v2174_v14 = vsel %vm5_vm0, %v3152_v2, %v3151_v1 }
  0xbe   :  { %740 = vst.msk [vmem:[#allocation0 + $0x28] sm:$0x3] %vm738_vm12, %v737_v7   ;;  %742 = vst.msk [vmem:[#allocation0 + $0xe] sm:$0xc] %vm738_vm12, %v737_v7   ;;  %v799_v24 = vpop.permute.xlu1 %798   ;;  %v3156_v4 = vld [vmem:[%s5562_s0 + $0x107] sm:$0x2]  }
  0xbf   :  { %1935 = vrot.lane.b32.xlu0 %v1934_v5, %s3473_s18  ;;  %802 = vst.msk [vmem:[#allocation0 + $0x28] sm:$0x3] %vm800_vm15, %v799_v24   ;;  %804 = vst.msk [vmem:[#allocation0 + $0xe] sm:$0xc] %vm800_vm15, %v799_v24   ;;  %v2099_v5 = vsel %vm13_vm2, %v3138_v58, %v2095_v57  ;;  %v3153_v13 = vld [vmem:[%s5562_s0 + $0x31] sm:$0x4]   ;;  %v2195_v15 = vsel %vm5_vm0, %v3156_v4, %v3155_v3 }
  0xc0   :  { %1997 = vrot.lane.b32.xlu1 %v1996_v22, %s3476_s8  ;;  %v3157_v16 = vld [vmem:[%s5562_s0 + $0x86] sm:$0x4]   ;;  %v3159_v17 = vld [vmem:[%s5562_s0 + $0xdd] sm:$0x1]   ;;  %vm945_vm9 = vcmask 720552   ;;  %s3482_s4 = smov 28   ;;  %v2161_v22 = vsel %vm13_vm2, %v3150_v12, %v2157_v11  ;;  %v2178_v25 = vsel %vm9_vm1, %v3153_v13, %v2174_v14 }
  0xc1   :  { %v779_v23 = vpop.permute.xlu0 %778   ;;  %v3160_v18 = vld [vmem:[%s5562_s0 + $0x1dc] sm:$0x2]   ;;  %vm966_vm10 = vcmask 712352   ;;  %v3163_v19 = vld [vmem:[%s5562_s0 + $0xb2] sm:$0x1]   ;;  %v2199_v27 = vsel %vm9_vm1, %v3157_v16, %v2195_v15  ;;  %s3483_s21 = smov 27  }
  0xc2   :  { %781 = vst.msk [vmem:[#allocation0] sm:$0x3] %vm780_vm14, %v779_v23   ;;  %783 = vst.msk [vmem:[#allocation0 + $0x16] sm:$0xc] %vm780_vm14, %v779_v23   ;;  %v841_v40 = vpop.permute.xlu1 %840   ;;  %v3164_v20 = vld [vmem:[%s5562_s0 + $0x1b1] sm:$0x2]   ;;  %v2215_v30 = vsel %vm5_vm0, %v3160_v18, %v3159_v17 }
  0xc3   :  { %1976 = vrot.lane.b32.xlu0 %v1975_v21, %s3475_s7  ;;  %843 = vst.msk [vmem:[#allocation0] sm:$0x3] %vm842_vm4, %v841_v40   ;;  %845 = vst.msk [vmem:[#allocation0 + $0x16] sm:$0xc] %vm842_vm4, %v841_v40   ;;  %v2141_v21 = vsel %vm13_vm2, %v3146_v10, %v2137_v9  ;;  %v3154_v26 = vld [vmem:[%s5562_s0 + $0x130] sm:$0x8]   ;;  %v2236_v31 = vsel %vm5_vm0, %v3164_v20, %v3163_v19 }
  0xc4   :  { %2038 = vrot.lane.b32.xlu1 %v2037_v38, %s3478_s26  ;;  %v3158_v28 = vld [vmem:[%s5562_s0 + $0x185] sm:$0x8]   ;;  %v3161_v29 = vld [vmem:[%s5562_s0 + $0x5b] sm:$0x4]   ;;  %v3165_v32 = vld [vmem:[%s5562_s0 + $0x30] sm:$0x4]  }
  0xc5   :  { %v820_v39 = vpop.permute.xlu0 %819   ;;  %v3167_v33 = vld [vmem:[%s5562_s0 + $0x7] sm:$0x1]   ;;  %vm986_vm11 = vcmask 704152   ;;  %s3484_s22 = smov 26   ;;  %vm1007_vm12 = vcmask 695952   ;;  %v2203_v38 = vsel %vm13_vm2, %v3158_v28, %v2199_v27  ;;  %v2219_v41 = vsel %vm9_vm1, %v3161_v29, %v2215_v30  ;;  %s3485_s10 = smov 25  }
  0xc6   :  { %823 = vst.msk [vmem:[#allocation0 + $0x20] sm:$0x3] %vm821_vm3, %v820_v39   ;;  %825 = vst.msk [vmem:[#allocation0 + $0x6] sm:$0xc] %vm821_vm3, %v820_v39   ;;  %v882_v56 = vpop.permute.xlu1 %881   ;;  %v3168_v34 = vld [vmem:[%s5562_s0 + $0x106] sm:$0x2]   ;;  %v2240_v43 = vsel %vm9_vm1, %v3165_v32, %v2236_v31 }
  0xc7   :  { %2018 = vrot.lane.b32.xlu0 %v2017_v37, %s3477_s25  ;;  %885 = vst.msk [vmem:[#allocation0 + $0x20] sm:$0x3] %vm883_vm6, %v882_v56   ;;  %887 = vst.msk [vmem:[#allocation0 + $0x6] sm:$0xc] %vm883_vm6, %v882_v56   ;;  %v3171_v35 = vld [vmem:[%s5562_s0 + $0xdc] sm:$0x1]   ;;  %v2182_v37 = vsel %vm13_vm2, %v3154_v26, %v2178_v25  ;;  %v2257_v46 = vsel %vm5_vm0, %v3168_v34, %v3167_v33 }
  0xc8   :  { %2080 = vrot.lane.b32.xlu1 %v2079_v54, %s3480_s15  ;;  %v3172_v36 = vld [vmem:[%s5562_s0 + $0x1db] sm:$0x2]   ;;  %v3162_v42 = vld [vmem:[%s5562_s0 + $0x15a] sm:$0x8]   ;;  %v3166_v44 = vld [vmem:[%s5562_s0 + $0x12f] sm:$0x8]  }
  0xc9   :  { %v861_v55 = vpop.permute.xlu0 %860   ;;  %v3169_v45 = vld [vmem:[%s5562_s0 + $0x85] sm:$0x4]   ;;  %v2277_v47 = vsel %vm5_vm0, %v3172_v36, %v3171_v35  ;;  %v3173_v48 = vld [vmem:[%s5562_s0 + $0x5a] sm:$0x4]   ;;  %v3175_v49 = vld [vmem:[%s5562_s0 + $0xb1] sm:$0x1]   ;;  %v2244_v54 = vsel %vm13_vm2, %v3166_v44, %v2240_v43 }
  0xca   :  { %864 = vst.msk [vmem:[#allocation0 + $0x28] sm:$0x3] %vm862_vm5, %v861_v55   ;;  %866 = vst.msk [vmem:[#allocation0 + $0xe] sm:$0xc] %vm862_vm5, %v861_v55   ;;  %v923_v8 = vpop.permute.xlu1 %922   ;;  %v3176_v50 = vld [vmem:[%s5562_s0 + $0x1b0] sm:$0x2]   ;;  %v2261_v57 = vsel %vm9_vm1, %v3169_v45, %v2257_v46  ;;  %v2281_v59 = vsel %vm9_vm1, %v3173_v48, %v2277_v47 }
  0xcb   :  { %2059 = vrot.lane.b32.xlu0 %v2058_v53, %s3479_s14  ;;  %926 = vst.msk [vmem:[#allocation0 + $0x28] sm:$0x3] %vm924_vm8, %v923_v8   ;;  %928 = vst.msk [vmem:[#allocation0 + $0xe] sm:$0xc] %vm924_vm8, %v923_v8   ;;  %vm1028_vm13 = vcmask 687752   ;;  %s3486_s11 = smov 24   ;;  %v2223_v53 = vsel %vm13_vm2, %v3162_v42, %v2219_v41  ;;  %v2298_v62 = vsel %vm5_vm0, %v3176_v50, %v3175_v49 }
  0xcc   :  { %2121 = vrot.lane.b32.xlu1 %v2120_v6, %s3482_s4  ;;  %vm1048_vm14 = vcmask 679552   ;;  %v3179_v51 = vld [vmem:[%s5562_s0 + $0x6] sm:$0x1]   ;;  %v3170_v58 = vld [vmem:[%s5562_s0 + $0x184] sm:$0x8]   ;;  %s3487_s28 = smov 23  }
  0xcd   :  { %v903_v7 = vpop.permute.xlu0 %902   ;;  %v3180_v52 = vld [vmem:[%s5562_s0 + $0x105] sm:$0x2]   ;;  %v3174_v60 = vld [vmem:[%s5562_s0 + $0x159] sm:$0x8]   ;;  %v3177_v61 = vld [vmem:[%s5562_s0 + $0x2f] sm:$0x4]  }
  0xce   :  { %905 = vst.msk [vmem:[#allocation0] sm:$0x3] %vm904_vm7, %v903_v7   ;;  %907 = vst.msk [vmem:[#allocation0 + $0x16] sm:$0xc] %vm904_vm7, %v903_v7   ;;  %v965_v24 = vpop.permute.xlu1 %964   ;;  %v2319_v63 = vsel %vm5_vm0, %v3180_v52, %v3179_v51  ;;  %v3181_v0 = vld [vmem:[%s5562_s0 + $0x84] sm:$0x4]   ;;  %v2285_v6 = vsel %vm13_vm2, %v3174_v60, %v2281_v59  ;;  %v2302_v9 = vsel %vm9_vm1, %v3177_v61, %v2298_v62 }
  0xcf   :  { %2100 = vrot.lane.b32.xlu0 %v2099_v5, %s3481_s3  ;;  %967 = vst.msk [vmem:[#allocation0] sm:$0x3] %vm966_vm10, %v965_v24   ;;  %969 = vst.msk [vmem:[#allocation0 + $0x16] sm:$0xc] %vm966_vm10, %v965_v24   ;;  %v3183_v1 = vld [vmem:[%s5562_s0 + $0xdb] sm:$0x1]   ;;  %v2265_v5 = vsel %vm13_vm2, %v3170_v58, %v2261_v57  ;;  %v2323_v11 = vsel %vm9_vm1, %v3181_v0, %v2319_v63 }
  0xd0   :  { %2162 = vrot.lane.b32.xlu1 %v2161_v22, %s3484_s22  ;;  %v3184_v2 = vld [vmem:[%s5562_s0 + $0x1da] sm:$0x2]   ;;  %vm1069_vm15 = vcmask 671352   ;;  %s3488_s29 = smov 22   ;;  %vm1090_vm3 = vcmask 663152   ;;  %s3489_s17 = smov 21  }
  0xd1   :  { %v944_v23 = vpop.permute.xlu0 %943   ;;  %v3187_v3 = vld [vmem:[%s5562_s0 + $0xb0] sm:$0x1]   ;;  %v3178_v10 = vld [vmem:[%s5562_s0 + $0x12e] sm:$0x8]   ;;  %v3182_v12 = vld [vmem:[%s5562_s0 + $0x183] sm:$0x8]   ;;  %v2339_v14 = vsel %vm5_vm0, %v3184_v2, %v3183_v1 }
  0xd2   :  { %947 = vst.msk [vmem:[#allocation0 + $0x20] sm:$0x3] %vm945_vm9, %v944_v23   ;;  %949 = vst.msk [vmem:[#allocation0 + $0x6] sm:$0xc] %vm945_vm9, %v944_v23   ;;  %v1006_v40 = vpop.permute.xlu1 %1005   ;;  %v3188_v4 = vld [vmem:[%s5562_s0 + $0x1af] sm:$0x2]   ;;  %v2327_v22 = vsel %vm13_vm2, %v3182_v12, %v2323_v11 }
  0xd3   :  { %2142 = vrot.lane.b32.xlu0 %v2141_v21, %s3483_s21  ;;  %1009 = vst.msk [vmem:[#allocation0 + $0x20] sm:$0x3] %vm1007_vm12, %v1006_v40   ;;  %1011 = vst.msk [vmem:[#allocation0 + $0x6] sm:$0xc] %vm1007_vm12, %v1006_v40   ;;  %v3185_v13 = vld [vmem:[%s5562_s0 + $0x59] sm:$0x4]   ;;  %v2360_v15 = vsel %vm5_vm0, %v3188_v4, %v3187_v3  ;;  %v2306_v21 = vsel %vm13_vm2, %v3178_v10, %v2302_v9 }
  0xd4   :  { %2204 = vrot.lane.b32.xlu1 %v2203_v38, %s3486_s11  ;;  %v3189_v16 = vld [vmem:[%s5562_s0 + $0x2e] sm:$0x4]   ;;  %v3191_v17 = vld [vmem:[%s5562_s0 + $0x5] sm:$0x1]   ;;  %vm1110_vm4 = vcmask 654952   ;;  %s3490_s18 = smov 20   ;;  %v2343_v25 = vsel %vm9_vm1, %v3185_v13, %v2339_v14 }
  0xd5   :  { %v985_v39 = vpop.permute.xlu0 %984   ;;  %v3192_v18 = vld [vmem:[%s5562_s0 + $0x104] sm:$0x2]   ;;  %vm1131_vm5 = vcmask 646752   ;;  %v3195_v19 = vld [vmem:[%s5562_s0 + $0xda] sm:$0x1]   ;;  %v2364_v27 = vsel %vm9_vm1, %v3189_v16, %v2360_v15  ;;  %s3491_s6 = smov 19  }
  0xd6   :  { %988 = vst.msk [vmem:[#allocation0 + $0x28] sm:$0x3] %vm986_vm11, %v985_v39   ;;  %990 = vst.msk [vmem:[#allocation0 + $0xe] sm:$0xc] %vm986_vm11, %v985_v39   ;;  %v1047_v56 = vpop.permute.xlu1 %1046   ;;  %v3196_v20 = vld [vmem:[%s5562_s0 + $0x1d9] sm:$0x2]   ;;  %v2381_v30 = vsel %vm5_vm0, %v3192_v18, %v3191_v17 }
  0xd7   :  { %2183 = vrot.lane.b32.xlu0 %v2182_v37, %s3485_s10  ;;  %1050 = vst.msk [vmem:[#allocation0 + $0x28] sm:$0x3] %vm1048_vm14, %v1047_v56   ;;  %1052 = vst.msk [vmem:[#allocation0 + $0xe] sm:$0xc] %vm1048_vm14, %v1047_v56   ;;  %v3186_v26 = vld [vmem:[%s5562_s0 + $0x158] sm:$0x8]   ;;  %v2401_v31 = vsel %vm5_vm0, %v3196_v20, %v3195_v19 }
  0xd8   :  { %2245 = vrot.lane.b32.xlu1 %v2244_v54, %s3488_s29  ;;  %v3190_v28 = vld [vmem:[%s5562_s0 + $0x12d] sm:$0x8]   ;;  %v3193_v29 = vld [vmem:[%s5562_s0 + $0x83] sm:$0x4]   ;;  %v3197_v32 = vld [vmem:[%s5562_s0 + $0x58] sm:$0x4]   ;;  %v2347_v37 = vsel %vm13_vm2, %v3186_v26, %v2343_v25 }
  0xd9   :  { %v1027_v55 = vpop.permute.xlu0 %1026   ;;  %v3199_v33 = vld [vmem:[%s5562_s0 + $0xaf] sm:$0x1]   ;;  %vm1152_vm6 = vcmask 638552   ;;  %s3492_s7 = smov 18   ;;  %vm1172_vm7 = vcmask 630352   ;;  %v2368_v38 = vsel %vm13_vm2, %v3190_v28, %v2364_v27  ;;  %v2385_v41 = vsel %vm9_vm1, %v3193_v29, %v2381_v30  ;;  %s3493_s24 = smov 17  }
  0xda   :  { %1029 = vst.msk [vmem:[#allocation0] sm:$0x3] %vm1028_vm13, %v1027_v55   ;;  %1031 = vst.msk [vmem:[#allocation0 + $0x16] sm:$0xc] %vm1028_vm13, %v1027_v55   ;;  %v1089_v8 = vpop.permute.xlu1 %1088   ;;  %v3200_v34 = vld [vmem:[%s5562_s0 + $0x1ae] sm:$0x2]   ;;  %v2405_v43 = vsel %vm9_vm1, %v3197_v32, %v2401_v31 }
  0xdb   :  { %2224 = vrot.lane.b32.xlu0 %v2223_v53, %s3487_s28  ;;  %1091 = vst.msk [vmem:[#allocation0] sm:$0x3] %vm1090_vm3, %v1089_v8   ;;  %1093 = vst.msk [vmem:[#allocation0 + $0x16] sm:$0xc] %vm1090_vm3, %v1089_v8   ;;  %v3203_v35 = vld [vmem:[%s5562_s0 + $0x4] sm:$0x1]   ;;  %v2422_v46 = vsel %vm5_vm0, %v3200_v34, %v3199_v33 }
  0xdc   :  { %2286 = vrot.lane.b32.xlu1 %v2285_v6, %s3490_s18  ;;  %v3204_v36 = vld [vmem:[%s5562_s0 + $0x103] sm:$0x2]   ;;  %v3194_v42 = vld [vmem:[%s5562_s0 + $0x182] sm:$0x8]   ;;  %v3198_v44 = vld [vmem:[%s5562_s0 + $0x157] sm:$0x8]  }
  0xdd   :  { %v1068_v7 = vpop.permute.xlu0 %1067   ;;  %v3201_v45 = vld [vmem:[%s5562_s0 + $0x2d] sm:$0x4]   ;;  %v2443_v47 = vsel %vm5_vm0, %v3204_v36, %v3203_v35  ;;  %v3205_v48 = vld [vmem:[%s5562_s0 + $0x82] sm:$0x4]   ;;  %v3207_v49 = vld [vmem:[%s5562_s0 + $0xd9] sm:$0x1]   ;;  %v2389_v53 = vsel %vm13_vm2, %v3194_v42, %v2385_v41  ;;  %v2409_v54 = vsel %vm13_vm2, %v3198_v44, %v2405_v43 }
  0xde   :  { %1071 = vst.msk [vmem:[#allocation0 + $0x20] sm:$0x3] %vm1069_vm15, %v1068_v7   ;;  %1073 = vst.msk [vmem:[#allocation0 + $0x6] sm:$0xc] %vm1069_vm15, %v1068_v7   ;;  %v1130_v24 = vpop.permute.xlu1 %1129   ;;  %v3208_v50 = vld [vmem:[%s5562_s0 + $0x1d8] sm:$0x2]   ;;  %v2426_v57 = vsel %vm9_vm1, %v3201_v45, %v2422_v46  ;;  %v2447_v59 = vsel %vm9_vm1, %v3205_v48, %v2443_v47 }
  0xdf   :  { %2266 = vrot.lane.b32.xlu0 %v2265_v5, %s3489_s17  ;;  %1133 = vst.msk [vmem:[#allocation0 + $0x20] sm:$0x3] %vm1131_vm5, %v1130_v24   ;;  %1135 = vst.msk [vmem:[#allocation0 + $0x6] sm:$0xc] %vm1131_vm5, %v1130_v24   ;;  %vm1193_vm8 = vcmask 622152   ;;  %s3494_s25 = smov 16   ;;  %v2463_v62 = vsel %vm5_vm0, %v3208_v50, %v3207_v49 }
  0xe0   :  { %2328 = vrot.lane.b32.xlu1 %v2327_v22, %s3492_s7  ;;  %vm1214_vm9 = vcmask 613952   ;;  %v3211_v51 = vld [vmem:[%s5562_s0 + $0xae] sm:$0x1]   ;;  %v3202_v58 = vld [vmem:[%s5562_s0 + $0x12c] sm:$0x8]   ;;  %s3495_s13 = smov 15  }
  0xe1   :  { %v1109_v23 = vpop.permute.xlu0 %1108   ;;  %v3212_v52 = vld [vmem:[%s5562_s0 + $0x1ad] sm:$0x2]   ;;  %v3206_v60 = vld [vmem:[%s5562_s0 + $0x181] sm:$0x8]   ;;  %v3209_v61 = vld [vmem:[%s5562_s0 + $0x57] sm:$0x4]   ;;  %v2430_v5 = vsel %vm13_vm2, %v3202_v58, %v2426_v57 }
  0xe2   :  { %1112 = vst.msk [vmem:[#allocation0 + $0x28] sm:$0x3] %vm1110_vm4, %v1109_v23   ;;  %1114 = vst.msk [vmem:[#allocation0 + $0xe] sm:$0xc] %vm1110_vm4, %v1109_v23   ;;  %v1171_v40 = vpop.permute.xlu1 %1170   ;;  %v2484_v63 = vsel %vm5_vm0, %v3212_v52, %v3211_v51  ;;  %v3213_v0 = vld [vmem:[%s5562_s0 + $0x2c] sm:$0x4]   ;;  %v2451_v6 = vsel %vm13_vm2, %v3206_v60, %v2447_v59  ;;  %v2467_v9 = vsel %vm9_vm1, %v3209_v61, %v2463_v62 }
  0xe3   :  { %2307 = vrot.lane.b32.xlu0 %v2306_v21, %s3491_s6  ;;  %1174 = vst.msk [vmem:[#allocation0 + $0x28] sm:$0x3] %vm1172_vm7, %v1171_v40   ;;  %1176 = vst.msk [vmem:[#allocation0 + $0xe] sm:$0xc] %vm1172_vm7, %v1171_v40   ;;  %v3215_v1 = vld [vmem:[%s5562_s0 + $0x3] sm:$0x1]   ;;  %v2488_v11 = vsel %vm9_vm1, %v3213_v0, %v2484_v63 }
  0xe4   :  { %2369 = vrot.lane.b32.xlu1 %v2368_v38, %s3494_s25  ;;  %v3216_v2 = vld [vmem:[%s5562_s0 + $0x102] sm:$0x2]   ;;  %vm1234_vm10 = vcmask 605752   ;;  %s3496_s14 = smov 14   ;;  %vm1255_vm11 = vcmask 597552   ;;  %s3497_s2 = smov 13  }
  0xe5   :  { %v1151_v39 = vpop.permute.xlu0 %1150   ;;  %v3219_v3 = vld [vmem:[%s5562_s0 + $0xd8] sm:$0x1]   ;;  %v3210_v10 = vld [vmem:[%s5562_s0 + $0x156] sm:$0x8]   ;;  %v3214_v12 = vld [vmem:[%s5562_s0 + $0x12b] sm:$0x8]   ;;  %v2505_v14 = vsel %vm5_vm0, %v3216_v2, %v3215_v1 }
  0xe6   :  { %1153 = vst.msk [vmem:[#allocation0] sm:$0x3] %vm1152_vm6, %v1151_v39   ;;  %1155 = vst.msk [vmem:[#allocation0 + $0x16] sm:$0xc] %vm1152_vm6, %v1151_v39   ;;  %v1213_v56 = vpop.permute.xlu1 %1212   ;;  %v3220_v4 = vld [vmem:[%s5562_s0 + $0x1d7] sm:$0x2]   ;;  %v2471_v21 = vsel %vm13_vm2, %v3210_v10, %v2467_v9  ;;  %v2492_v22 = vsel %vm13_vm2, %v3214_v12, %v2488_v11 }
  0xe7   :  { %2348 = vrot.lane.b32.xlu0 %v2347_v37, %s3493_s24  ;;  %1215 = vst.msk [vmem:[#allocation0] sm:$0x3] %vm1214_vm9, %v1213_v56   ;;  %1217 = vst.msk [vmem:[#allocation0 + $0x16] sm:$0xc] %vm1214_vm9, %v1213_v56   ;;  %v3217_v13 = vld [vmem:[%s5562_s0 + $0x81] sm:$0x4]   ;;  %v2525_v15 = vsel %vm5_vm0, %v3220_v4, %v3219_v3 }
  0xe8   :  { %2410 = vrot.lane.b32.xlu1 %v2409_v54, %s3496_s14  ;;  %v3221_v16 = vld [vmem:[%s5562_s0 + $0x56] sm:$0x4]   ;;  %v3223_v17 = vld [vmem:[%s5562_s0 + $0xad] sm:$0x1]   ;;  %vm1276_vm12 = vcmask 589352   ;;  %s3498_s3 = smov 12   ;;  %v2509_v25 = vsel %vm9_vm1, %v3217_v13, %v2505_v14 }
  0xe9   :  { %v1192_v55 = vpop.permute.xlu0 %1191   ;;  %v3224_v18 = vld [vmem:[%s5562_s0 + $0x1ac] sm:$0x2]   ;;  %vm1296_vm13 = vcmask 581152   ;;  %v3227_v19 = vld [vmem:[%s5562_s0 + $0x2] sm:$0x1]   ;;  %v2529_v27 = vsel %vm9_vm1, %v3221_v16, %v2525_v15  ;;  %s3499_s20 = smov 11  }
  0xea   :  { %1195 = vst.msk [vmem:[#allocation0 + $0x20] sm:$0x3] %vm1193_vm8, %v1192_v55   ;;  %1197 = vst.msk [vmem:[#allocation0 + $0x6] sm:$0xc] %vm1193_vm8, %v1192_v55   ;;  %v1254_v8 = vpop.permute.xlu1 %1253   ;;  %v3228_v20 = vld [vmem:[%s5562_s0 + $0x101] sm:$0x2]   ;;  %v2546_v30 = vsel %vm5_vm0, %v3224_v18, %v3223_v17 }
  0xeb   :  { %2390 = vrot.lane.b32.xlu0 %v2389_v53, %s3495_s13  ;;  %1257 = vst.msk [vmem:[#allocation0 + $0x20] sm:$0x3] %vm1255_vm11, %v1254_v8   ;;  %1259 = vst.msk [vmem:[#allocation0 + $0x6] sm:$0xc] %vm1255_vm11, %v1254_v8   ;;  %v3218_v26 = vld [vmem:[%s5562_s0 + $0x180] sm:$0x8]   ;;  %v2567_v31 = vsel %vm5_vm0, %v3228_v20, %v3227_v19 }
  0xec   :  { %2452 = vrot.lane.b32.xlu1 %v2451_v6, %s3498_s3  ;;  %v3222_v28 = vld [vmem:[%s5562_s0 + $0x155] sm:$0x8]   ;;  %v3225_v29 = vld [vmem:[%s5562_s0 + $0x2b] sm:$0x4]   ;;  %v3229_v32 = vld [vmem:[%s5562_s0 + $0x80] sm:$0x4]   ;;  %v2513_v37 = vsel %vm13_vm2, %v3218_v26, %v2509_v25 }
  0xed   :  { %v1233_v7 = vpop.permute.xlu0 %1232   ;;  %v3231_v33 = vld [vmem:[%s5562_s0 + $0xd7] sm:$0x1]   ;;  %vm1317_vm14 = vcmask 572952   ;;  %s3500_s21 = smov 10   ;;  %vm1338_vm15 = vcmask 564752   ;;  %v2533_v38 = vsel %vm13_vm2, %v3222_v28, %v2529_v27  ;;  %v2550_v41 = vsel %vm9_vm1, %v3225_v29, %v2546_v30  ;;  %s3501_s9 = smov 9  }
  0xee   :  { %1236 = vst.msk [vmem:[#allocation0 + $0x28] sm:$0x3] %vm1234_vm10, %v1233_v7   ;;  %1238 = vst.msk [vmem:[#allocation0 + $0xe] sm:$0xc] %vm1234_vm10, %v1233_v7   ;;  %v1295_v24 = vpop.permute.xlu1 %1294   ;;  %v3232_v34 = vld [vmem:[%s5562_s0 + $0x1d6] sm:$0x2]   ;;  %v2571_v43 = vsel %vm9_vm1, %v3229_v32, %v2567_v31 }
  0xef   :  { %2431 = vrot.lane.b32.xlu0 %v2430_v5, %s3497_s2  ;;  %1298 = vst.msk [vmem:[#allocation0 + $0x28] sm:$0x3] %vm1296_vm13, %v1295_v24   ;;  %1300 = vst.msk [vmem:[#allocation0 + $0xe] sm:$0xc] %vm1296_vm13, %v1295_v24   ;;  %v3235_v35 = vld [vmem:[%s5562_s0 + $0xac] sm:$0x1]   ;;  %v2587_v46 = vsel %vm5_vm0, %v3232_v34, %v3231_v33 }
  0xf0   :  { %2493 = vrot.lane.b32.xlu1 %v2492_v22, %s3500_s21  ;;  %v3236_v36 = vld [vmem:[%s5562_s0 + $0x1ab] sm:$0x2]   ;;  %v3226_v42 = vld [vmem:[%s5562_s0 + $0x12a] sm:$0x8]   ;;  %v3230_v44 = vld [vmem:[%s5562_s0 + $0x17f] sm:$0x8]  }
  0xf1   :  { %v1275_v23 = vpop.permute.xlu0 %1274   ;;  %v3233_v45 = vld [vmem:[%s5562_s0 + $0x55] sm:$0x4]   ;;  %v2608_v47 = vsel %vm5_vm0, %v3236_v36, %v3235_v35  ;;  %v3237_v48 = vld [vmem:[%s5562_s0 + $0x2a] sm:$0x4]   ;;  %v3239_v49 = vld [vmem:[%s5562_s0 + $0x1] sm:$0x1]   ;;  %v2554_v53 = vsel %vm13_vm2, %v3226_v42, %v2550_v41  ;;  %v2575_v54 = vsel %vm13_vm2, %v3230_v44, %v2571_v43 }
  0xf2   :  { %1277 = vst.msk [vmem:[#allocation0] sm:$0x3] %vm1276_vm12, %v1275_v23   ;;  %1279 = vst.msk [vmem:[#allocation0 + $0x16] sm:$0xc] %vm1276_vm12, %v1275_v23   ;;  %v1337_v40 = vpop.permute.xlu1 %1336   ;;  %v3240_v50 = vld [vmem:[%s5562_s0 + $0x100] sm:$0x2]   ;;  %v2591_v57 = vsel %vm9_vm1, %v3233_v45, %v2587_v46  ;;  %v2612_v59 = vsel %vm9_vm1, %v3237_v48, %v2608_v47 }
  0xf3   :  { %2472 = vrot.lane.b32.xlu0 %v2471_v21, %s3499_s20  ;;  %1339 = vst.msk [vmem:[#allocation0] sm:$0x3] %vm1338_vm15, %v1337_v40   ;;  %1341 = vst.msk [vmem:[#allocation0 + $0x16] sm:$0xc] %vm1338_vm15, %v1337_v40   ;;  %vm1358_vm3 = vcmask 556552   ;;  %s3502_s10 = smov 8   ;;  %v2629_v61 = vsel %vm5_vm0, %v3240_v50, %v3239_v49 }
  0xf4   :  { %2534 = vrot.lane.b32.xlu1 %v2533_v38, %s3502_s10  ;;  %vm1379_vm4 = vcmask 548352   ;;  %v3243_v51 = vld [vmem:[%s5562_s0 + $0xd6] sm:$0x1]   ;;  %v3234_v58 = vld [vmem:[%s5562_s0 + $0x154] sm:$0x8]   ;;  %s3503_s23 = smov 7  }
  0xf5   :  { %v1316_v39 = vpop.permute.xlu0 %1315   ;;  %v3244_v52 = vld [vmem:[%s5562_s0 + $0x1d5] sm:$0x2]   ;;  %v3238_v60 = vld [vmem:[%s5562_s0 + $0x129] sm:$0x8]   ;;  %v3241_v62 = vld [vmem:[%s5562_s0 + $0x7f] sm:$0x4]   ;;  %v2595_v3 = vsel %vm13_vm2, %v3234_v58, %v2591_v57 }
  0xf6   :  { %1319 = vst.msk [vmem:[#allocation0 + $0x20] sm:$0x3] %vm1317_vm14, %v1316_v39   ;;  %1321 = vst.msk [vmem:[#allocation0 + $0x6] sm:$0xc] %vm1317_vm14, %v1316_v39   ;;  %v1378_v56 = vpop.permute.xlu1 %1377   ;;  %v2649_v63 = vsel %vm5_vm0, %v3244_v52, %v3243_v51  ;;  %v3245_v0 = vld [vmem:[%s5562_s0 + $0x54] sm:$0x4]   ;;  %v2616_v4 = vsel %vm13_vm2, %v3238_v60, %v2612_v59  ;;  %v2633_v7 = vsel %vm9_vm1, %v3241_v62, %v2629_v61 }
  0xf7   :  { %2514 = vrot.lane.b32.xlu0 %v2513_v37, %s3501_s9  ;;  %1381 = vst.msk [vmem:[#allocation0 + $0x20] sm:$0x3] %vm1379_vm4, %v1378_v56   ;;  %1383 = vst.msk [vmem:[#allocation0 + $0x6] sm:$0xc] %vm1379_vm4, %v1378_v56   ;;  %vm1400_vm5 = vcmask 540152   ;;  %s3504_s24 = smov 6   ;;  %v2653_v9 = vsel %vm9_vm1, %v3245_v0, %v2649_v63 }
  0xf8   :  { %2576 = vrot.lane.b32.xlu1 %v2575_v54, %s3504_s24  ;;  %vm1420_vm6 = vcmask 531952   ;;  %v3247_v1 = vld [vmem:[%s5562_s0 + $0xab] sm:$0x1]   ;;  %v3242_v8 = vld [vmem:[%s5562_s0 + $0x17e] sm:$0x8]   ;;  %s3505_s6 = smov 5  }
  0xf9   :  { %v1357_v55 = vpop.permute.xlu0 %1356   ;;  %v3248_v2 = vld [vmem:[%s5562_s0 + $0x1aa] sm:$0x2]   ;;  %v3246_v10 = vld [vmem:[%s5562_s0 + $0x153] sm:$0x8]   ;;  %s3506_s7 = smov 4   ;;  %vm1462_vm7 = vcmask 515552   ;;  %v2637_v13 = vsel %vm13_vm2, %v3242_v8, %v2633_v7 }
  0xfa   :  { %1360 = vst.msk [vmem:[#allocation0 + $0x28] sm:$0x3] %vm1358_vm3, %v1357_v55   ;;  %1362 = vst.msk [vmem:[#allocation0 + $0xe] sm:$0xc] %vm1358_vm3, %v1357_v55   ;;  %v1419_v6 = vpop.permute.xlu1 %1418   ;;  %v2670_v11 = vsel %vm5_vm0, %v3248_v2, %v3247_v1  ;;  %v3249_v12 = vld [vmem:[%s5562_s0 + $0x29] sm:$0x4]   ;;  %v2657_v14 = vsel %vm13_vm2, %v3246_v10, %v2653_v9 }
  0xfb   :  { %2555 = vrot.lane.b32.xlu0 %v2554_v53, %s3503_s23  ;;  %1422 = vst.msk [vmem:[#allocation0 + $0x28] sm:$0x3] %vm1420_vm6, %v1419_v6   ;;  %1424 = vst.msk [vmem:[#allocation0 + $0xe] sm:$0xc] %vm1420_vm6, %v1419_v6   ;;  %vm1441_vm0 = vcmask 523752   ;;  %v2674_v17 = vsel %vm9_vm1, %v3249_v12, %v2670_v11  ;;  %vm1482_vm1 = vcmask 507352  }
  0xfc   :  { %2617 = vrot.lane.b32.xlu1 %v2616_v4, %s3506_s7  ;;  %v3250_v18 = vld [vmem:[%s5562_s0 + $0x128] sm:$0x8]   ;;  %s3507_s0 = smov 3   ;;  %s3508_s10 = smov 2   ;;  %vm1503_vm8 = vcmask 499152   ;;  %vm1544_vm9 = vcmask 482752  }
  0xfd   :  { %v1399_v5 = vpop.permute.xlu0 %1398   ;;  %v2678_v19 = vsel %vm13_vm2, %v3250_v18, %v2674_v17  ;;  %s3509_s11 = smov 1   ;;  %vm1524_vm2 = vcmask 490952   ;;  %vm1565_vm10 = vcmask 474552   ;;  %vm1586_vm11 = vcmask 466352  }
  0xfe   :  { %1401 = vst.msk [vmem:[#allocation0] sm:$0x3] %vm1400_vm5, %v1399_v5   ;;  %1403 = vst.msk [vmem:[#allocation0 + $0x16] sm:$0xc] %vm1400_vm5, %v1399_v5   ;;  %v1461_v16 = vpop.permute.xlu1 %1460   ;;  %vm1606_vm12 = vcmask 458152   ;;  %vm1627_vm13 = vcmask 449952  }
  0xff   :  { %2596 = vrot.lane.b32.xlu0 %v2595_v3, %s3505_s6  ;;  %1463 = vst.msk [vmem:[#allocation0] sm:$0x3] %vm1462_vm7, %v1461_v16   ;;  %1465 = vst.msk [vmem:[#allocation0 + $0x16] sm:$0xc] %vm1462_vm7, %v1461_v16   ;;  %vm1648_vm14 = vcmask 441752   ;;  %vm1668_vm15 = vcmask 433552  }
 0x100   :  { %2658 = vrot.lane.b32.xlu1 %v2657_v14, %s3508_s10  ;;  %vm1689_vm3 = vcmask 425352   ;;  %vm1710_vm4 = vcmask 417152   ;;  %vm1730_vm5 = vcmask 408952   ;;  %vm1751_vm6 = vcmask 400752  }
 0x101   :  { %v1440_v15 = vpop.permute.xlu0 %1439   ;;  %vm1792_vm7 = vcmask 384352  }
 0x102   :  { %1443 = vst.msk [vmem:[#allocation0 + $0x20] sm:$0x3] %vm1441_vm0, %v1440_v15   ;;  %1445 = vst.msk [vmem:[#allocation0 + $0x6] sm:$0xc] %vm1441_vm0, %v1440_v15   ;;  %v1502_v21 = vpop.permute.xlu1 %1501   ;;  %vm1772_vm0 = vcmask 392552  }
 0x103   :  { %2638 = vrot.lane.b32.xlu0 %v2637_v13, %s3507_s0  ;;  %1505 = vst.msk [vmem:[#allocation0 + $0x20] sm:$0x3] %vm1503_vm8, %v1502_v21   ;;  %1507 = vst.msk [vmem:[#allocation0 + $0x6] sm:$0xc] %vm1503_vm8, %v1502_v21   ;;  %vm1834_vm8 = vcmask 367952  }
 0x105   :  { %v1481_v20 = vpop.permute.xlu0 %1480  }
 0x106   :  { %1484 = vst.msk [vmem:[#allocation0 + $0x28] sm:$0x3] %vm1482_vm1, %v1481_v20   ;;  %1486 = vst.msk [vmem:[#allocation0 + $0xe] sm:$0xc] %vm1482_vm1, %v1481_v20   ;;  %v1543_v23 = vpop.permute.xlu1 %1542   ;;  %vm1813_vm1 = vcmask 376152  }
 0x107   :  { %2679 = vrot.lane.b32.xlu0 %v2678_v19, %s3509_s11  ;;  %1546 = vst.msk [vmem:[#allocation0 + $0x28] sm:$0x3] %vm1544_vm9, %v1543_v23   ;;  %1548 = vst.msk [vmem:[#allocation0 + $0xe] sm:$0xc] %vm1544_vm9, %v1543_v23   ;;  %vm1875_vm9 = vcmask 351552  }
 0x109   :  { %v1523_v22 = vpop.permute.xlu0 %1522  }
 0x10a   :  { %1525 = vst.msk [vmem:[#allocation0] sm:$0x3] %vm1524_vm2, %v1523_v22   ;;  %1527 = vst.msk [vmem:[#allocation0 + $0x16] sm:$0xc] %vm1524_vm2, %v1523_v22   ;;  %v1585_v25 = vpop.permute.xlu1 %1584   ;;  %vm1854_vm2 = vcmask 359752  }
 0x10b   :  { %1587 = vst.msk [vmem:[#allocation0] sm:$0x3] %vm1586_vm11, %v1585_v25   ;;  %1589 = vst.msk [vmem:[#allocation0 + $0x16] sm:$0xc] %vm1586_vm11, %v1585_v25   ;;  %vm1916_vm11 = vcmask 335152  }
 0x10d   :  { %v1564_v24 = vpop.permute.xlu0 %1563  }
 0x10e   :  { %1567 = vst.msk [vmem:[#allocation0 + $0x20] sm:$0x3] %vm1565_vm10, %v1564_v24   ;;  %1569 = vst.msk [vmem:[#allocation0 + $0x6] sm:$0xc] %vm1565_vm10, %v1564_v24   ;;  %v1626_v27 = vpop.permute.xlu1 %1625   ;;  %vm1896_vm10 = vcmask 343352  }
 0x10f   :  { %1629 = vst.msk [vmem:[#allocation0 + $0x20] sm:$0x3] %vm1627_vm13, %v1626_v27   ;;  %1631 = vst.msk [vmem:[#allocation0 + $0x6] sm:$0xc] %vm1627_vm13, %v1626_v27   ;;  %vm1958_vm13 = vcmask 318752  }
 0x111   :  { %v1605_v26 = vpop.permute.xlu0 %1604  }
 0x112   :  { %1608 = vst.msk [vmem:[#allocation0 + $0x28] sm:$0x3] %vm1606_vm12, %v1605_v26   ;;  %1610 = vst.msk [vmem:[#allocation0 + $0xe] sm:$0xc] %vm1606_vm12, %v1605_v26   ;;  %v1667_v29 = vpop.permute.xlu1 %1666   ;;  %vm1937_vm12 = vcmask 326952  }
 0x113   :  { %1670 = vst.msk [vmem:[#allocation0 + $0x28] sm:$0x3] %vm1668_vm15, %v1667_v29   ;;  %1672 = vst.msk [vmem:[#allocation0 + $0xe] sm:$0xc] %vm1668_vm15, %v1667_v29   ;;  %vm1999_vm15 = vcmask 302352  }
 0x115   :  { %v1647_v28 = vpop.permute.xlu0 %1646  }
 0x116   :  { %1649 = vst.msk [vmem:[#allocation0] sm:$0x3] %vm1648_vm14, %v1647_v28   ;;  %1651 = vst.msk [vmem:[#allocation0 + $0x16] sm:$0xc] %vm1648_vm14, %v1647_v28   ;;  %v1709_v31 = vpop.permute.xlu1 %1708   ;;  %vm1978_vm14 = vcmask 310552  }
 0x117   :  { %1711 = vst.msk [vmem:[#allocation0] sm:$0x3] %vm1710_vm4, %v1709_v31   ;;  %1713 = vst.msk [vmem:[#allocation0 + $0x16] sm:$0xc] %vm1710_vm4, %v1709_v31   ;;  %vm2040_vm4 = vcmask 285952  }
 0x119   :  { %v1688_v30 = vpop.permute.xlu0 %1687  }
 0x11a   :  { %1691 = vst.msk [vmem:[#allocation0 + $0x20] sm:$0x3] %vm1689_vm3, %v1688_v30   ;;  %1693 = vst.msk [vmem:[#allocation0 + $0x6] sm:$0xc] %vm1689_vm3, %v1688_v30   ;;  %v1750_v33 = vpop.permute.xlu1 %1749   ;;  %vm2020_vm3 = vcmask 294152  }
 0x11b   :  { %1753 = vst.msk [vmem:[#allocation0 + $0x20] sm:$0x3] %vm1751_vm6, %v1750_v33   ;;  %1755 = vst.msk [vmem:[#allocation0 + $0x6] sm:$0xc] %vm1751_vm6, %v1750_v33   ;;  %vm2082_vm6 = vcmask 269552  }
 0x11d   :  { %v1729_v32 = vpop.permute.xlu0 %1728  }
 0x11e   :  { %1732 = vst.msk [vmem:[#allocation0 + $0x28] sm:$0x3] %vm1730_vm5, %v1729_v32   ;;  %1734 = vst.msk [vmem:[#allocation0 + $0xe] sm:$0xc] %vm1730_vm5, %v1729_v32   ;;  %v1791_v35 = vpop.permute.xlu1 %1790   ;;  %vm2061_vm5 = vcmask 277752  }
 0x11f   :  { %1794 = vst.msk [vmem:[#allocation0 + $0x28] sm:$0x3] %vm1792_vm7, %v1791_v35   ;;  %1796 = vst.msk [vmem:[#allocation0 + $0xe] sm:$0xc] %vm1792_vm7, %v1791_v35   ;;  %vm2123_vm7 = vcmask 253152  }
 0x121   :  { %v1771_v34 = vpop.permute.xlu0 %1770  }
 0x122   :  { %1773 = vst.msk [vmem:[#allocation0] sm:$0x3] %vm1772_vm0, %v1771_v34   ;;  %1775 = vst.msk [vmem:[#allocation0 + $0x16] sm:$0xc] %vm1772_vm0, %v1771_v34   ;;  %v1833_v37 = vpop.permute.xlu1 %1832   ;;  %vm2102_vm0 = vcmask 261352  }
 0x123   :  { %1835 = vst.msk [vmem:[#allocation0] sm:$0x3] %vm1834_vm8, %v1833_v37   ;;  %1837 = vst.msk [vmem:[#allocation0 + $0x16] sm:$0xc] %vm1834_vm8, %v1833_v37   ;;  %vm2164_vm8 = vcmask 236752  }
 0x125   :  { %v1812_v36 = vpop.permute.xlu0 %1811  }
 0x126   :  { %1815 = vst.msk [vmem:[#allocation0 + $0x20] sm:$0x3] %vm1813_vm1, %v1812_v36   ;;  %1817 = vst.msk [vmem:[#allocation0 + $0x6] sm:$0xc] %vm1813_vm1, %v1812_v36   ;;  %v1874_v39 = vpop.permute.xlu1 %1873   ;;  %vm2144_vm1 = vcmask 244952  }
 0x127   :  { %1877 = vst.msk [vmem:[#allocation0 + $0x20] sm:$0x3] %vm1875_vm9, %v1874_v39   ;;  %1879 = vst.msk [vmem:[#allocation0 + $0x6] sm:$0xc] %vm1875_vm9, %v1874_v39   ;;  %vm2206_vm9 = vcmask 220352  }
 0x129   :  { %v1853_v38 = vpop.permute.xlu0 %1852  }
 0x12a   :  { %1856 = vst.msk [vmem:[#allocation0 + $0x28] sm:$0x3] %vm1854_vm2, %v1853_v38   ;;  %1858 = vst.msk [vmem:[#allocation0 + $0xe] sm:$0xc] %vm1854_vm2, %v1853_v38   ;;  %v1915_v41 = vpop.permute.xlu1 %1914   ;;  %vm2185_vm2 = vcmask 228552  }
 0x12b   :  { %1918 = vst.msk [vmem:[#allocation0 + $0x28] sm:$0x3] %vm1916_vm11, %v1915_v41   ;;  %1920 = vst.msk [vmem:[#allocation0 + $0xe] sm:$0xc] %vm1916_vm11, %v1915_v41   ;;  %vm2247_vm11 = vcmask 203952  }
 0x12d   :  { %v1895_v40 = vpop.permute.xlu0 %1894  }
 0x12e   :  { %1897 = vst.msk [vmem:[#allocation0] sm:$0x3] %vm1896_vm10, %v1895_v40   ;;  %1899 = vst.msk [vmem:[#allocation0 + $0x16] sm:$0xc] %vm1896_vm10, %v1895_v40   ;;  %v1957_v43 = vpop.permute.xlu1 %1956   ;;  %vm2226_vm10 = vcmask 212152  }
 0x12f   :  { %1959 = vst.msk [vmem:[#allocation0] sm:$0x3] %vm1958_vm13, %v1957_v43   ;;  %1961 = vst.msk [vmem:[#allocation0 + $0x16] sm:$0xc] %vm1958_vm13, %v1957_v43   ;;  %vm2288_vm13 = vcmask 187552  }
 0x131   :  { %v1936_v42 = vpop.permute.xlu0 %1935  }
 0x132   :  { %1939 = vst.msk [vmem:[#allocation0 + $0x20] sm:$0x3] %vm1937_vm12, %v1936_v42   ;;  %1941 = vst.msk [vmem:[#allocation0 + $0x6] sm:$0xc] %vm1937_vm12, %v1936_v42   ;;  %v1998_v45 = vpop.permute.xlu1 %1997   ;;  %vm2268_vm12 = vcmask 195752  }
 0x133   :  { %2001 = vst.msk [vmem:[#allocation0 + $0x20] sm:$0x3] %vm1999_vm15, %v1998_v45   ;;  %2003 = vst.msk [vmem:[#allocation0 + $0x6] sm:$0xc] %vm1999_vm15, %v1998_v45   ;;  %vm2330_vm15 = vcmask 171152  }
 0x135   :  { %v1977_v44 = vpop.permute.xlu0 %1976  }
 0x136   :  { %1980 = vst.msk [vmem:[#allocation0 + $0x28] sm:$0x3] %vm1978_vm14, %v1977_v44   ;;  %1982 = vst.msk [vmem:[#allocation0 + $0xe] sm:$0xc] %vm1978_vm14, %v1977_v44   ;;  %v2039_v47 = vpop.permute.xlu1 %2038   ;;  %vm2309_vm14 = vcmask 179352  }
 0x137   :  { %2042 = vst.msk [vmem:[#allocation0 + $0x28] sm:$0x3] %vm2040_vm4, %v2039_v47   ;;  %2044 = vst.msk [vmem:[#allocation0 + $0xe] sm:$0xc] %vm2040_vm4, %v2039_v47   ;;  %vm2371_vm4 = vcmask 154752  }
 0x139   :  { %v2019_v46 = vpop.permute.xlu0 %2018  }
 0x13a   :  { %2021 = vst.msk [vmem:[#allocation0] sm:$0x3] %vm2020_vm3, %v2019_v46   ;;  %2023 = vst.msk [vmem:[#allocation0 + $0x16] sm:$0xc] %vm2020_vm3, %v2019_v46   ;;  %v2081_v49 = vpop.permute.xlu1 %2080   ;;  %vm2350_vm3 = vcmask 162952  }
 0x13b   :  { %2083 = vst.msk [vmem:[#allocation0] sm:$0x3] %vm2082_vm6, %v2081_v49   ;;  %2085 = vst.msk [vmem:[#allocation0 + $0x16] sm:$0xc] %vm2082_vm6, %v2081_v49   ;;  %vm2412_vm6 = vcmask 138352  }
 0x13d   :  { %v2060_v48 = vpop.permute.xlu0 %2059  }
 0x13e   :  { %2063 = vst.msk [vmem:[#allocation0 + $0x20] sm:$0x3] %vm2061_vm5, %v2060_v48   ;;  %2065 = vst.msk [vmem:[#allocation0 + $0x6] sm:$0xc] %vm2061_vm5, %v2060_v48   ;;  %v2122_v51 = vpop.permute.xlu1 %2121   ;;  %vm2392_vm5 = vcmask 146552  }
 0x13f   :  { %2125 = vst.msk [vmem:[#allocation0 + $0x20] sm:$0x3] %vm2123_vm7, %v2122_v51   ;;  %2127 = vst.msk [vmem:[#allocation0 + $0x6] sm:$0xc] %vm2123_vm7, %v2122_v51   ;;  %vm2454_vm7 = vcmask 121952  }
 0x141   :  { %v2101_v50 = vpop.permute.xlu0 %2100  }
 0x142   :  { %2104 = vst.msk [vmem:[#allocation0 + $0x28] sm:$0x3] %vm2102_vm0, %v2101_v50   ;;  %2106 = vst.msk [vmem:[#allocation0 + $0xe] sm:$0xc] %vm2102_vm0, %v2101_v50   ;;  %v2163_v53 = vpop.permute.xlu1 %2162   ;;  %vm2433_vm0 = vcmask 130152  }
 0x143   :  { %2166 = vst.msk [vmem:[#allocation0 + $0x28] sm:$0x3] %vm2164_vm8, %v2163_v53   ;;  %2168 = vst.msk [vmem:[#allocation0 + $0xe] sm:$0xc] %vm2164_vm8, %v2163_v53   ;;  %vm2495_vm8 = vcmask 105552  }
 0x145   :  { %v2143_v52 = vpop.permute.xlu0 %2142  }
 0x146   :  { %2145 = vst.msk [vmem:[#allocation0] sm:$0x3] %vm2144_vm1, %v2143_v52   ;;  %2147 = vst.msk [vmem:[#allocation0 + $0x16] sm:$0xc] %vm2144_vm1, %v2143_v52   ;;  %v2205_v55 = vpop.permute.xlu1 %2204   ;;  %vm2474_vm1 = vcmask 113752  }
 0x147   :  { %2207 = vst.msk [vmem:[#allocation0] sm:$0x3] %vm2206_vm9, %v2205_v55   ;;  %2209 = vst.msk [vmem:[#allocation0 + $0x16] sm:$0xc] %vm2206_vm9, %v2205_v55   ;;  %vm2536_vm9 = vcmask 89152  }
 0x149   :  { %v2184_v54 = vpop.permute.xlu0 %2183  }
 0x14a   :  { %2187 = vst.msk [vmem:[#allocation0 + $0x20] sm:$0x3] %vm2185_vm2, %v2184_v54   ;;  %2189 = vst.msk [vmem:[#allocation0 + $0x6] sm:$0xc] %vm2185_vm2, %v2184_v54   ;;  %v2246_v57 = vpop.permute.xlu1 %2245   ;;  %vm2516_vm2 = vcmask 97352  }
 0x14b   :  { %2249 = vst.msk [vmem:[#allocation0 + $0x20] sm:$0x3] %vm2247_vm11, %v2246_v57   ;;  %2251 = vst.msk [vmem:[#allocation0 + $0x6] sm:$0xc] %vm2247_vm11, %v2246_v57   ;;  %vm2578_vm11 = vcmask 72752  }
 0x14d   :  { %v2225_v56 = vpop.permute.xlu0 %2224  }
 0x14e   :  { %2228 = vst.msk [vmem:[#allocation0 + $0x28] sm:$0x3] %vm2226_vm10, %v2225_v56   ;;  %2230 = vst.msk [vmem:[#allocation0 + $0xe] sm:$0xc] %vm2226_vm10, %v2225_v56   ;;  %v2287_v59 = vpop.permute.xlu1 %2286   ;;  %vm2557_vm10 = vcmask 80952  }
 0x14f   :  { %2290 = vst.msk [vmem:[#allocation0 + $0x28] sm:$0x3] %vm2288_vm13, %v2287_v59   ;;  %2292 = vst.msk [vmem:[#allocation0 + $0xe] sm:$0xc] %vm2288_vm13, %v2287_v59   ;;  %vm2619_vm13 = vcmask 56352  }
 0x151   :  { %v2267_v58 = vpop.permute.xlu0 %2266  }
 0x152   :  { %2269 = vst.msk [vmem:[#allocation0] sm:$0x3] %vm2268_vm12, %v2267_v58   ;;  %2271 = vst.msk [vmem:[#allocation0 + $0x16] sm:$0xc] %vm2268_vm12, %v2267_v58   ;;  %v2329_v61 = vpop.permute.xlu1 %2328   ;;  %vm2598_vm12 = vcmask 64552  }
 0x153   :  { %2331 = vst.msk [vmem:[#allocation0] sm:$0x3] %vm2330_vm15, %v2329_v61   ;;  %2333 = vst.msk [vmem:[#allocation0 + $0x16] sm:$0xc] %vm2330_vm15, %v2329_v61   ;;  %vm2660_vm15 = vcmask 39952  }
 0x155   :  { %v2308_v60 = vpop.permute.xlu0 %2307  }
 0x156   :  { %2311 = vst.msk [vmem:[#allocation0 + $0x20] sm:$0x3] %vm2309_vm14, %v2308_v60   ;;  %2313 = vst.msk [vmem:[#allocation0 + $0x6] sm:$0xc] %vm2309_vm14, %v2308_v60   ;;  %v2370_v63 = vpop.permute.xlu1 %2369   ;;  %vm2640_vm14 = vcmask 48152  }
 0x157   :  { %2373 = vst.msk [vmem:[#allocation0 + $0x20] sm:$0x3] %vm2371_vm4, %v2370_v63   ;;  %2375 = vst.msk [vmem:[#allocation0 + $0x6] sm:$0xc] %vm2371_vm4, %v2370_v63  }
 0x159   :  { %v2349_v62 = vpop.permute.xlu0 %2348  }
 0x15a   :  { %2352 = vst.msk [vmem:[#allocation0 + $0x28] sm:$0x3] %vm2350_vm3, %v2349_v62   ;;  %2354 = vst.msk [vmem:[#allocation0 + $0xe] sm:$0xc] %vm2350_vm3, %v2349_v62   ;;  %v2411_v1 = vpop.permute.xlu1 %2410   ;;  %vm2681_vm3 = vcmask 31752  }
 0x15b   :  { %2414 = vst.msk [vmem:[#allocation0 + $0x28] sm:$0x3] %vm2412_vm6, %v2411_v1   ;;  %2416 = vst.msk [vmem:[#allocation0 + $0xe] sm:$0xc] %vm2412_vm6, %v2411_v1  }
 0x15d   :  { %v2391_v0 = vpop.permute.xlu0 %2390  }
 0x15e   :  { %2393 = vst.msk [vmem:[#allocation0] sm:$0x3] %vm2392_vm5, %v2391_v0   ;;  %2395 = vst.msk [vmem:[#allocation0 + $0x16] sm:$0xc] %vm2392_vm5, %v2391_v0   ;;  %v2453_v3 = vpop.permute.xlu1 %2452  }
 0x15f   :  { %2455 = vst.msk [vmem:[#allocation0] sm:$0x3] %vm2454_vm7, %v2453_v3   ;;  %2457 = vst.msk [vmem:[#allocation0 + $0x16] sm:$0xc] %vm2454_vm7, %v2453_v3  }
 0x161   :  { %v2432_v2 = vpop.permute.xlu0 %2431  }
 0x162   :  { %2435 = vst.msk [vmem:[#allocation0 + $0x20] sm:$0x3] %vm2433_vm0, %v2432_v2   ;;  %2437 = vst.msk [vmem:[#allocation0 + $0x6] sm:$0xc] %vm2433_vm0, %v2432_v2   ;;  %v2494_v5 = vpop.permute.xlu1 %2493  }
 0x163   :  { %2497 = vst.msk [vmem:[#allocation0 + $0x20] sm:$0x3] %vm2495_vm8, %v2494_v5   ;;  %2499 = vst.msk [vmem:[#allocation0 + $0x6] sm:$0xc] %vm2495_vm8, %v2494_v5  }
 0x165   :  { %v2473_v4 = vpop.permute.xlu0 %2472  }
 0x166   :  { %2476 = vst.msk [vmem:[#allocation0 + $0x28] sm:$0x3] %vm2474_vm1, %v2473_v4   ;;  %2478 = vst.msk [vmem:[#allocation0 + $0xe] sm:$0xc] %vm2474_vm1, %v2473_v4   ;;  %v2535_v7 = vpop.permute.xlu1 %2534  }
 0x167   :  { %2538 = vst.msk [vmem:[#allocation0 + $0x28] sm:$0x3] %vm2536_vm9, %v2535_v7   ;;  %2540 = vst.msk [vmem:[#allocation0 + $0xe] sm:$0xc] %vm2536_vm9, %v2535_v7  }
 0x169   :  { %v2515_v6 = vpop.permute.xlu0 %2514  }
 0x16a   :  { %2517 = vst.msk [vmem:[#allocation0] sm:$0x3] %vm2516_vm2, %v2515_v6   ;;  %2519 = vst.msk [vmem:[#allocation0 + $0x16] sm:$0xc] %vm2516_vm2, %v2515_v6   ;;  %v2577_v9 = vpop.permute.xlu1 %2576  }
 0x16b   :  { %2579 = vst.msk [vmem:[#allocation0] sm:$0x3] %vm2578_vm11, %v2577_v9   ;;  %2581 = vst.msk [vmem:[#allocation0 + $0x16] sm:$0xc] %vm2578_vm11, %v2577_v9  }
 0x16d   :  { %v2556_v8 = vpop.permute.xlu0 %2555  }
 0x16e   :  { %2559 = vst.msk [vmem:[#allocation0 + $0x20] sm:$0x3] %vm2557_vm10, %v2556_v8   ;;  %2561 = vst.msk [vmem:[#allocation0 + $0x6] sm:$0xc] %vm2557_vm10, %v2556_v8   ;;  %v2618_v11 = vpop.permute.xlu1 %2617  }
 0x16f   :  { %2621 = vst.msk [vmem:[#allocation0 + $0x20] sm:$0x3] %vm2619_vm13, %v2618_v11   ;;  %2623 = vst.msk [vmem:[#allocation0 + $0x6] sm:$0xc] %vm2619_vm13, %v2618_v11  }
 0x171   :  { %v2597_v10 = vpop.permute.xlu0 %2596  }
 0x172   :  { %2600 = vst.msk [vmem:[#allocation0 + $0x28] sm:$0x3] %vm2598_vm12, %v2597_v10   ;;  %2602 = vst.msk [vmem:[#allocation0 + $0xe] sm:$0xc] %vm2598_vm12, %v2597_v10   ;;  %v2659_v13 = vpop.permute.xlu1 %2658  }
 0x173   :  { %2662 = vst.msk [vmem:[#allocation0 + $0x28] sm:$0x3] %vm2660_vm15, %v2659_v13   ;;  %2664 = vst.msk [vmem:[#allocation0 + $0xe] sm:$0xc] %vm2660_vm15, %v2659_v13  }
 0x175   :  { %v2639_v12 = vpop.permute.xlu0 %2638  }
 0x176   :  { %2641 = vst.msk [vmem:[#allocation0] sm:$0x3] %vm2640_vm14, %v2639_v12   ;;  %2643 = vst.msk [vmem:[#allocation0 + $0x16] sm:$0xc] %vm2640_vm14, %v2639_v12  }
 0x179   :  { %v2680_v14 = vpop.permute.xlu0 %2679  }
 0x17a   :  { %2683 = vst.msk [vmem:[#allocation0 + $0x20] sm:$0x3] %vm2681_vm3, %v2680_v14   ;;  %2685 = vst.msk [vmem:[#allocation0 + $0x6] sm:$0xc] %vm2681_vm3, %v2680_v14   ;;  %v2701_v17 = vld [vmem:[#allocation0 + $0x10] sm:$0x3] }
 0x17b   :  { %3252 = vst [vmem:[%s5563_s1 + $0x4] sm:$0x3] %v2701_v17  ;;  %v2722_v18 = vld [vmem:[#allocation0 + $0x28] sm:$0x3] }
 0x17c   :  { %3255 = vst [vmem:[%s5563_s1 + $0xa] sm:$0x3] %v2722_v18 }
 0x17d   :  { %v2690_v15 = vld [vmem:[#allocation0] sm:$0x3]  ;;  %v2708_v16 = vld [vmem:[#allocation0 + $0x18] sm:$0x3] }
 0x17e   :  { %2693 = vst [vmem:[%s5563_s1] sm:$0x3] %v2690_v15  ;;  %3253 = vst [vmem:[%s5563_s1 + $0x6] sm:$0x3] %v2708_v16 }
 0x181   :  { %v2695_v19 = vld [vmem:[#allocation0 + $0x8] sm:$0x3]  ;;  %v2715_v20 = vld [vmem:[#allocation0 + $0x20] sm:$0x3] }
 0x182   :  { %3251 = vst [vmem:[%s5563_s1 + $0x2] sm:$0x3] %v2695_v19  ;;  %3254 = vst [vmem:[%s5563_s1 + $0x8] sm:$0x3] %v2715_v20 }

// kernel: single_conv3d_block_dsc.6
= control target key start
LH: loop header
LB: loop body
LE: loop exit
PB: predicated region body
PF: predicated region fallthrough
CT: control target
= control target key end

     0   :  { %vm280_vm0 = vcmask 1043456   ;;  %vm87_vm1 = vcmask 97280   ;;  %vm669_vm2 = vcmask 64512   ;;  %s1581_s1 = inlined_call_operand.vmem [shape: f32[12,8], index: 1, kind: input, shape index: {}]   ;;  %s1582_s0 = inlined_call_operand.vmem [shape: f32[512,12], index: 0, kind: input, shape index: {}]   ;;  %s1583_s2 = inlined_call_operand.vmem [shape: f32[1,8], index: 2, kind: input, shape index: {}]   ;;  %s1584_s3 = inlined_call_operand.vmem [shape: f32[512,8], index: 3, kind: output, shape index: {}]  }
   0x1   :  { %v79_v0 = vld [vmem:[%s1581_s1 + $0x8] sm:$0xf]  ;;  %v78_v1 = vld [vmem:[%s1581_s1] sm:$0xff]  ;;  %v16_v6 = vld [vmem:[%s1582_s0 + $0x10] sm:$0xff] }
   0x2   :  { %870 = vmatprep.subr.msk.mxu0 %vm280_vm0, %v79_v0  ;;  %970 = vmatprep.subr.msk.mxu1 %vm280_vm0, %v79_v0  ;;  %v14_v2 = vld [vmem:[%s1582_s0] sm:$0xff]  ;;  %v15_v4 = vld [vmem:[%s1582_s0 + $0x8] sm:$0xff]  ;;  %v48_v7 = vld [vmem:[%s1582_s0 + $0x110] sm:$0xff] }
   0x3   :  { %871 = vmatpush3.msk.msra.mxu0 %vm280_vm0, %v79_v0  ;;  %972 = vmatpush3.msk.msra.mxu1 %vm280_vm0, %v79_v0  ;;  %v46_v3 = vld [vmem:[%s1582_s0 + $0x100] sm:$0xff]  ;;  %v47_v5 = vld [vmem:[%s1582_s0 + $0x108] sm:$0xff]  ;;  %v17_v8 = vld [vmem:[%s1582_s0 + $0x18] sm:$0xff] }
   0x4   :  { %872 = vmatprep.subr.mxu0 %v78_v1  ;;  %971 = vmatprep.subr.mxu1 %v78_v1  ;;  %v49_v9 = vld [vmem:[%s1582_s0 + $0x118] sm:$0xff]  ;;  %v18_v10 = vld [vmem:[%s1582_s0 + $0x20] sm:$0xff]  ;;  %v19_v12 = vld [vmem:[%s1582_s0 + $0x28] sm:$0xff] }
   0x5   :  { %873 = vmatpush3.msra.mxu0 %v78_v1  ;;  %973 = vmatpush3.msra.mxu1 %v78_v1  ;;  %v50_v11 = vld [vmem:[%s1582_s0 + $0x120] sm:$0xff]  ;;  %v51_v13 = vld [vmem:[%s1582_s0 + $0x128] sm:$0xff]  ;;  %v20_v14 = vld [vmem:[%s1582_s0 + $0x30] sm:$0xff] }
   0x6   :  { %874 = vmatprep.mubr.msk.f32.mxu0 %vm87_vm1, %v14_v2  ;;  %922 = vmatprep.mubr.msk.f32.mxu1 %vm87_vm1, %v46_v3  ;;  %v52_v15 = vld [vmem:[%s1582_s0 + $0x130] sm:$0xff]  ;;  %v21_v16 = vld [vmem:[%s1582_s0 + $0x38] sm:$0xff]  ;;  %v22_v18 = vld [vmem:[%s1582_s0 + $0x40] sm:$0xff] }
   0x7   :  { %875 = vmatmul.mubr.msk.f32.vlgmr.msra.gmra.mxu0 %vm87_vm1, %v15_v4  ;;  %923 = vmatmul.mubr.msk.f32.vlgmr.msra.gmra.mxu1 %vm87_vm1, %v47_v5  ;;  %v53_v17 = vld [vmem:[%s1582_s0 + $0x138] sm:$0xff]  ;;  %v54_v19 = vld [vmem:[%s1582_s0 + $0x140] sm:$0xff]  ;;  %v23_v20 = vld [vmem:[%s1582_s0 + $0x48] sm:$0xff] }
   0x8   :  { %877 = vmatprep.mubr.msk.f32.mxu0 %vm87_vm1, %v16_v6  ;;  %925 = vmatprep.mubr.msk.f32.mxu1 %vm87_vm1, %v48_v7  ;;  %v55_v21 = vld [vmem:[%s1582_s0 + $0x148] sm:$0xff]  ;;  %v24_v22 = vld [vmem:[%s1582_s0 + $0x50] sm:$0xff]  ;;  %v25_v24 = vld [vmem:[%s1582_s0 + $0x58] sm:$0xff] }
   0x9   :  { %v56_v23 = vld [vmem:[%s1582_s0 + $0x150] sm:$0xff]  ;;  %v57_v25 = vld [vmem:[%s1582_s0 + $0x158] sm:$0xff]  ;;  %v26_v26 = vld [vmem:[%s1582_s0 + $0x60] sm:$0xff] }
   0xa   :  { %v58_v27 = vld [vmem:[%s1582_s0 + $0x160] sm:$0xff]  ;;  %v27_v28 = vld [vmem:[%s1582_s0 + $0x68] sm:$0xff]  ;;  %v28_v30 = vld [vmem:[%s1582_s0 + $0x70] sm:$0xff] }
   0xb   :  { %878 = vmatmul.mubr.msk.f32.gmra.mxu0 %vm87_vm1, %v17_v8  ;;  %926 = vmatmul.mubr.msk.f32.gmra.mxu1 %vm87_vm1, %v49_v9  ;;  %v59_v29 = vld [vmem:[%s1582_s0 + $0x168] sm:$0xff]  ;;  %v60_v31 = vld [vmem:[%s1582_s0 + $0x170] sm:$0xff]  ;;  %v29_v32 = vld [vmem:[%s1582_s0 + $0x78] sm:$0xff] }
   0xc   :  { %880 = vmatprep.mubr.msk.f32.mxu0 %vm87_vm1, %v18_v10  ;;  %928 = vmatprep.mubr.msk.f32.mxu1 %vm87_vm1, %v50_v11  ;;  %v61_v33 = vld [vmem:[%s1582_s0 + $0x178] sm:$0xff]  ;;  %v30_v34 = vld [vmem:[%s1582_s0 + $0x80] sm:$0xff]  ;;  %v31_v36 = vld [vmem:[%s1582_s0 + $0x88] sm:$0xff] }
   0xd   :  { %v62_v35 = vld [vmem:[%s1582_s0 + $0x180] sm:$0xff]  ;;  %v63_v37 = vld [vmem:[%s1582_s0 + $0x188] sm:$0xff]  ;;  %v32_v38 = vld [vmem:[%s1582_s0 + $0x90] sm:$0xff] }
   0xe   :  { %v64_v39 = vld [vmem:[%s1582_s0 + $0x190] sm:$0xff]  ;;  %v33_v40 = vld [vmem:[%s1582_s0 + $0x98] sm:$0xff]  ;;  %v34_v42 = vld [vmem:[%s1582_s0 + $0xa0] sm:$0xff] }
   0xf   :  { %881 = vmatmul.mubr.msk.f32.gmra.mxu0 %vm87_vm1, %v19_v12  ;;  %929 = vmatmul.mubr.msk.f32.gmra.mxu1 %vm87_vm1, %v51_v13  ;;  %v65_v41 = vld [vmem:[%s1582_s0 + $0x198] sm:$0xff]  ;;  %v66_v43 = vld [vmem:[%s1582_s0 + $0x1a0] sm:$0xff]  ;;  %v35_v44 = vld [vmem:[%s1582_s0 + $0xa8] sm:$0xff] }
  0x10   :  { %883 = vmatprep.mubr.msk.f32.mxu0 %vm87_vm1, %v20_v14  ;;  %931 = vmatprep.mubr.msk.f32.mxu1 %vm87_vm1, %v52_v15  ;;  %v67_v45 = vld [vmem:[%s1582_s0 + $0x1a8] sm:$0xff]  ;;  %v36_v46 = vld [vmem:[%s1582_s0 + $0xb0] sm:$0xff]  ;;  %v37_v48 = vld [vmem:[%s1582_s0 + $0xb8] sm:$0xff] }
  0x11   :  { %v68_v47 = vld [vmem:[%s1582_s0 + $0x1b0] sm:$0xff]  ;;  %v69_v49 = vld [vmem:[%s1582_s0 + $0x1b8] sm:$0xff]  ;;  %v38_v50 = vld [vmem:[%s1582_s0 + $0xc0] sm:$0xff] }
  0x12   :  { %v70_v51 = vld [vmem:[%s1582_s0 + $0x1c0] sm:$0xff]  ;;  %v39_v52 = vld [vmem:[%s1582_s0 + $0xc8] sm:$0xff]  ;;  %v40_v54 = vld [vmem:[%s1582_s0 + $0xd0] sm:$0xff] }
  0x13   :  { %884 = vmatmul.mubr.msk.f32.gmra.mxu0 %vm87_vm1, %v21_v16  ;;  %932 = vmatmul.mubr.msk.f32.gmra.mxu1 %vm87_vm1, %v53_v17  ;;  %v71_v53 = vld [vmem:[%s1582_s0 + $0x1c8] sm:$0xff]  ;;  %v72_v55 = vld [vmem:[%s1582_s0 + $0x1d0] sm:$0xff]  ;;  %v41_v56 = vld [vmem:[%s1582_s0 + $0xd8] sm:$0xff] }
  0x14   :  { %886 = vmatprep.mubr.msk.f32.mxu0 %vm87_vm1, %v22_v18  ;;  %934 = vmatprep.mubr.msk.f32.mxu1 %vm87_vm1, %v54_v19  ;;  %v73_v57 = vld [vmem:[%s1582_s0 + $0x1d8] sm:$0xff]  ;;  %v42_v58 = vld [vmem:[%s1582_s0 + $0xe0] sm:$0xff]  ;;  %v43_v60 = vld [vmem:[%s1582_s0 + $0xe8] sm:$0xff] }
  0x15   :  { %v74_v59 = vld [vmem:[%s1582_s0 + $0x1e0] sm:$0xff]  ;;  %v75_v61 = vld [vmem:[%s1582_s0 + $0x1e8] sm:$0xff]  ;;  %v44_v62 = vld [vmem:[%s1582_s0 + $0xf0] sm:$0xff] }
  0x16   :  { %v76_v63 = vld [vmem:[%s1582_s0 + $0x1f0] sm:$0xff]  ;;  %v45_v0 = vld [vmem:[%s1582_s0 + $0xf8] sm:$0xff]  ;;  %v1259_v2 = vld [vmem:[%s1583_s2] ss:$0 sm:$0xff] }
  0x17   :  { %887 = vmatmul.mubr.msk.f32.gmra.mxu0 %vm87_vm1, %v23_v20  ;;  %935 = vmatmul.mubr.msk.f32.gmra.mxu1 %vm87_vm1, %v55_v21  ;;  %v77_v1 = vld [vmem:[%s1582_s0 + $0x1f8] sm:$0xff] }
  0x18   :  { %889 = vmatprep.mubr.msk.f32.mxu0 %vm87_vm1, %v24_v22  ;;  %937 = vmatprep.mubr.msk.f32.mxu1 %vm87_vm1, %v56_v23 }
  0x1b   :  { %890 = vmatmul.mubr.msk.f32.gmra.mxu0 %vm87_vm1, %v25_v24  ;;  %938 = vmatmul.mubr.msk.f32.gmra.mxu1 %vm87_vm1, %v57_v25 }
  0x1c   :  { %892 = vmatprep.mubr.msk.f32.mxu0 %vm87_vm1, %v26_v26  ;;  %940 = vmatprep.mubr.msk.f32.mxu1 %vm87_vm1, %v58_v27 }
  0x1f   :  { %893 = vmatmul.mubr.msk.f32.gmra.mxu0 %vm87_vm1, %v27_v28  ;;  %941 = vmatmul.mubr.msk.f32.gmra.mxu1 %vm87_vm1, %v59_v29 }
  0x20   :  { %895 = vmatprep.mubr.msk.f32.mxu0 %vm87_vm1, %v28_v30  ;;  %943 = vmatprep.mubr.msk.f32.mxu1 %vm87_vm1, %v60_v31 }
  0x23   :  { %896 = vmatmul.mubr.msk.f32.gmra.mxu0 %vm87_vm1, %v29_v32  ;;  %944 = vmatmul.mubr.msk.f32.gmra.mxu1 %vm87_vm1, %v61_v33 }
  0x24   :  { %898 = vmatprep.mubr.msk.f32.mxu0 %vm87_vm1, %v30_v34  ;;  %946 = vmatprep.mubr.msk.f32.mxu1 %vm87_vm1, %v62_v35 }
  0x27   :  { %899 = vmatmul.mubr.msk.f32.gmra.mxu0 %vm87_vm1, %v31_v36  ;;  %947 = vmatmul.mubr.msk.f32.gmra.mxu1 %vm87_vm1, %v63_v37 }
  0x28   :  { %901 = vmatprep.mubr.msk.f32.mxu0 %vm87_vm1, %v32_v38  ;;  %949 = vmatprep.mubr.msk.f32.mxu1 %vm87_vm1, %v64_v39 }
  0x2b   :  { %902 = vmatmul.mubr.msk.f32.gmra.mxu0 %vm87_vm1, %v33_v40  ;;  %950 = vmatmul.mubr.msk.f32.gmra.mxu1 %vm87_vm1, %v65_v41 }
  0x2c   :  { %904 = vmatprep.mubr.msk.f32.mxu0 %vm87_vm1, %v34_v42  ;;  %952 = vmatprep.mubr.msk.f32.mxu1 %vm87_vm1, %v66_v43 }
  0x2f   :  { %905 = vmatmul.mubr.msk.f32.gmra.mxu0 %vm87_vm1, %v35_v44  ;;  %953 = vmatmul.mubr.msk.f32.gmra.mxu1 %vm87_vm1, %v67_v45 }
  0x30   :  { %907 = vmatprep.mubr.msk.f32.mxu0 %vm87_vm1, %v36_v46  ;;  %955 = vmatprep.mubr.msk.f32.mxu1 %vm87_vm1, %v68_v47 }
  0x33   :  { %908 = vmatmul.mubr.msk.f32.gmra.mxu0 %vm87_vm1, %v37_v48  ;;  %956 = vmatmul.mubr.msk.f32.gmra.mxu1 %vm87_vm1, %v69_v49 }
  0x34   :  { %910 = vmatprep.mubr.msk.f32.mxu0 %vm87_vm1, %v38_v50  ;;  %958 = vmatprep.mubr.msk.f32.mxu1 %vm87_vm1, %v70_v51 }
  0x37   :  { %911 = vmatmul.mubr.msk.f32.gmra.mxu0 %vm87_vm1, %v39_v52  ;;  %959 = vmatmul.mubr.msk.f32.gmra.mxu1 %vm87_vm1, %v71_v53 }
  0x38   :  { %913 = vmatprep.mubr.msk.f32.mxu0 %vm87_vm1, %v40_v54  ;;  %961 = vmatprep.mubr.msk.f32.mxu1 %vm87_vm1, %v72_v55 }
  0x3b   :  { %914 = vmatmul.mubr.msk.f32.gmra.mxu0 %vm87_vm1, %v41_v56  ;;  %962 = vmatmul.mubr.msk.f32.gmra.mxu1 %vm87_vm1, %v73_v57 }
  0x3c   :  { %916 = vmatprep.mubr.msk.f32.mxu0 %vm87_vm1, %v42_v58  ;;  %964 = vmatprep.mubr.msk.f32.mxu1 %vm87_vm1, %v74_v59 }
  0x3f   :  { %917 = vmatmul.mubr.msk.f32.gmra.mxu0 %vm87_vm1, %v43_v60  ;;  %965 = vmatmul.mubr.msk.f32.gmra.mxu1 %vm87_vm1, %v75_v61 }
  0x40   :  { %919 = vmatprep.mubr.msk.f32.mxu0 %vm87_vm1, %v44_v62  ;;  %967 = vmatprep.mubr.msk.f32.mxu1 %vm87_vm1, %v76_v63 }
  0x43   :  { %920 = vmatmul.mubr.msk.f32.gmra.mxu0 %vm87_vm1, %v45_v0  ;;  %968 = vmatmul.mubr.msk.f32.gmra.mxu1 %vm87_vm1, %v77_v1 }
  0xc7   :  { %v876_v3 = vpop.f32.mrf.mxu0  ;;  %v924_v4 = vpop.f32.mrf.mxu1 }
  0xc8   :  { %v356_v5 = vadd.f32 %v876_v3, %v1259_v2  ;;  %v516_v6 = vadd.f32 %v924_v4, %v1259_v2 }
  0xc9   :  { %v350_v7 = vpop.f32.mrf.mxu0  ;;  %v510_v8 = vpop.f32.mrf.mxu1 }
  0xca   :  { %671 = vst.msk [vmem:[%s1584_s3 + $0x8] sm:$0xff] %vm669_vm2, %v356_v5  ;;  %703 = vst.msk [vmem:[%s1584_s3 + $0x108] sm:$0xff] %vm669_vm2, %v516_v6  ;;  %v351_v9 = vadd.f32 %v1259_v2, %v350_v7  ;;  %v511_v10 = vadd.f32 %v1259_v2, %v510_v8 }
  0xcb   :  { %v879_v11 = vpop.f32.mrf.mxu0  ;;  %v927_v12 = vpop.f32.mrf.mxu1 }
  0xcc   :  { %670 = vst.msk [vmem:[%s1584_s3] sm:$0xff] %vm669_vm2, %v351_v9  ;;  %702 = vst.msk [vmem:[%s1584_s3 + $0x100] sm:$0xff] %vm669_vm2, %v511_v10  ;;  %v366_v13 = vadd.f32 %v879_v11, %v1259_v2  ;;  %v526_v14 = vadd.f32 %v927_v12, %v1259_v2 }
  0xcd   :  { %v360_v15 = vpop.f32.mrf.mxu0  ;;  %v520_v16 = vpop.f32.mrf.mxu1 }
  0xce   :  { %673 = vst.msk [vmem:[%s1584_s3 + $0x18] sm:$0xff] %vm669_vm2, %v366_v13  ;;  %705 = vst.msk [vmem:[%s1584_s3 + $0x118] sm:$0xff] %vm669_vm2, %v526_v14  ;;  %v361_v17 = vadd.f32 %v1259_v2, %v360_v15  ;;  %v521_v18 = vadd.f32 %v1259_v2, %v520_v16 }
  0xcf   :  { %v882_v19 = vpop.f32.mrf.mxu0  ;;  %v930_v20 = vpop.f32.mrf.mxu1 }
  0xd0   :  { %672 = vst.msk [vmem:[%s1584_s3 + $0x10] sm:$0xff] %vm669_vm2, %v361_v17  ;;  %704 = vst.msk [vmem:[%s1584_s3 + $0x110] sm:$0xff] %vm669_vm2, %v521_v18  ;;  %v376_v21 = vadd.f32 %v882_v19, %v1259_v2  ;;  %v536_v22 = vadd.f32 %v930_v20, %v1259_v2 }
  0xd1   :  { %v370_v23 = vpop.f32.mrf.mxu0  ;;  %v530_v24 = vpop.f32.mrf.mxu1 }
  0xd2   :  { %675 = vst.msk [vmem:[%s1584_s3 + $0x28] sm:$0xff] %vm669_vm2, %v376_v21  ;;  %707 = vst.msk [vmem:[%s1584_s3 + $0x128] sm:$0xff] %vm669_vm2, %v536_v22  ;;  %v371_v25 = vadd.f32 %v1259_v2, %v370_v23  ;;  %v531_v26 = vadd.f32 %v1259_v2, %v530_v24 }
  0xd3   :  { %v885_v27 = vpop.f32.mrf.mxu0  ;;  %v933_v28 = vpop.f32.mrf.mxu1 }
  0xd4   :  { %674 = vst.msk [vmem:[%s1584_s3 + $0x20] sm:$0xff] %vm669_vm2, %v371_v25  ;;  %706 = vst.msk [vmem:[%s1584_s3 + $0x120] sm:$0xff] %vm669_vm2, %v531_v26  ;;  %v386_v29 = vadd.f32 %v885_v27, %v1259_v2  ;;  %v546_v30 = vadd.f32 %v933_v28, %v1259_v2 }
  0xd5   :  { %v380_v31 = vpop.f32.mrf.mxu0  ;;  %v540_v32 = vpop.f32.mrf.mxu1 }
  0xd6   :  { %677 = vst.msk [vmem:[%s1584_s3 + $0x38] sm:$0xff] %vm669_vm2, %v386_v29  ;;  %709 = vst.msk [vmem:[%s1584_s3 + $0x138] sm:$0xff] %vm669_vm2, %v546_v30  ;;  %v381_v33 = vadd.f32 %v1259_v2, %v380_v31  ;;  %v541_v34 = vadd.f32 %v1259_v2, %v540_v32 }
  0xd7   :  { %v888_v35 = vpop.f32.mrf.mxu0  ;;  %v936_v36 = vpop.f32.mrf.mxu1 }
  0xd8   :  { %676 = vst.msk [vmem:[%s1584_s3 + $0x30] sm:$0xff] %vm669_vm2, %v381_v33  ;;  %708 = vst.msk [vmem:[%s1584_s3 + $0x130] sm:$0xff] %vm669_vm2, %v541_v34  ;;  %v396_v37 = vadd.f32 %v888_v35, %v1259_v2  ;;  %v556_v38 = vadd.f32 %v936_v36, %v1259_v2 }
  0xd9   :  { %v390_v39 = vpop.f32.mrf.mxu0  ;;  %v550_v40 = vpop.f32.mrf.mxu1 }
  0xda   :  { %679 = vst.msk [vmem:[%s1584_s3 + $0x48] sm:$0xff] %vm669_vm2, %v396_v37  ;;  %711 = vst.msk [vmem:[%s1584_s3 + $0x148] sm:$0xff] %vm669_vm2, %v556_v38  ;;  %v391_v41 = vadd.f32 %v1259_v2, %v390_v39  ;;  %v551_v42 = vadd.f32 %v1259_v2, %v550_v40 }
  0xdb   :  { %v891_v43 = vpop.f32.mrf.mxu0  ;;  %v939_v44 = vpop.f32.mrf.mxu1 }
  0xdc   :  { %678 = vst.msk [vmem:[%s1584_s3 + $0x40] sm:$0xff] %vm669_vm2, %v391_v41  ;;  %710 = vst.msk [vmem:[%s1584_s3 + $0x140] sm:$0xff] %vm669_vm2, %v551_v42  ;;  %v406_v45 = vadd.f32 %v891_v43, %v1259_v2  ;;  %v566_v46 = vadd.f32 %v939_v44, %v1259_v2 }
  0xdd   :  { %v400_v47 = vpop.f32.mrf.mxu0  ;;  %v560_v48 = vpop.f32.mrf.mxu1 }
  0xde   :  { %681 = vst.msk [vmem:[%s1584_s3 + $0x58] sm:$0xff] %vm669_vm2, %v406_v45  ;;  %713 = vst.msk [vmem:[%s1584_s3 + $0x158] sm:$0xff] %vm669_vm2, %v566_v46  ;;  %v401_v49 = vadd.f32 %v1259_v2, %v400_v47  ;;  %v561_v50 = vadd.f32 %v1259_v2, %v560_v48 }
  0xdf   :  { %v894_v51 = vpop.f32.mrf.mxu0  ;;  %v942_v52 = vpop.f32.mrf.mxu1 }
  0xe0   :  { %680 = vst.msk [vmem:[%s1584_s3 + $0x50] sm:$0xff] %vm669_vm2, %v401_v49  ;;  %712 = vst.msk [vmem:[%s1584_s3 + $0x150] sm:$0xff] %vm669_vm2, %v561_v50  ;;  %v416_v53 = vadd.f32 %v894_v51, %v1259_v2  ;;  %v576_v54 = vadd.f32 %v942_v52, %v1259_v2 }
  0xe1   :  { %v410_v55 = vpop.f32.mrf.mxu0  ;;  %v570_v56 = vpop.f32.mrf.mxu1 }
  0xe2   :  { %683 = vst.msk [vmem:[%s1584_s3 + $0x68] sm:$0xff] %vm669_vm2, %v416_v53  ;;  %715 = vst.msk [vmem:[%s1584_s3 + $0x168] sm:$0xff] %vm669_vm2, %v576_v54  ;;  %v411_v57 = vadd.f32 %v1259_v2, %v410_v55  ;;  %v571_v58 = vadd.f32 %v1259_v2, %v570_v56 }
  0xe3   :  { %v897_v59 = vpop.f32.mrf.mxu0  ;;  %v945_v60 = vpop.f32.mrf.mxu1 }
  0xe4   :  { %682 = vst.msk [vmem:[%s1584_s3 + $0x60] sm:$0xff] %vm669_vm2, %v411_v57  ;;  %714 = vst.msk [vmem:[%s1584_s3 + $0x160] sm:$0xff] %vm669_vm2, %v571_v58  ;;  %v426_v61 = vadd.f32 %v897_v59, %v1259_v2  ;;  %v586_v62 = vadd.f32 %v945_v60, %v1259_v2 }
  0xe5   :  { %v420_v63 = vpop.f32.mrf.mxu0  ;;  %v580_v0 = vpop.f32.mrf.mxu1 }
  0xe6   :  { %685 = vst.msk [vmem:[%s1584_s3 + $0x78] sm:$0xff] %vm669_vm2, %v426_v61  ;;  %717 = vst.msk [vmem:[%s1584_s3 + $0x178] sm:$0xff] %vm669_vm2, %v586_v62  ;;  %v421_v1 = vadd.f32 %v1259_v2, %v420_v63  ;;  %v581_v3 = vadd.f32 %v1259_v2, %v580_v0 }
  0xe7   :  { %v900_v4 = vpop.f32.mrf.mxu0  ;;  %v948_v5 = vpop.f32.mrf.mxu1 }
  0xe8   :  { %684 = vst.msk [vmem:[%s1584_s3 + $0x70] sm:$0xff] %vm669_vm2, %v421_v1  ;;  %716 = vst.msk [vmem:[%s1584_s3 + $0x170] sm:$0xff] %vm669_vm2, %v581_v3  ;;  %v436_v6 = vadd.f32 %v900_v4, %v1259_v2  ;;  %v596_v7 = vadd.f32 %v948_v5, %v1259_v2 }
  0xe9   :  { %v430_v8 = vpop.f32.mrf.mxu0  ;;  %v590_v9 = vpop.f32.mrf.mxu1 }
  0xea   :  { %687 = vst.msk [vmem:[%s1584_s3 + $0x88] sm:$0xff] %vm669_vm2, %v436_v6  ;;  %719 = vst.msk [vmem:[%s1584_s3 + $0x188] sm:$0xff] %vm669_vm2, %v596_v7  ;;  %v431_v10 = vadd.f32 %v1259_v2, %v430_v8  ;;  %v591_v11 = vadd.f32 %v1259_v2, %v590_v9 }
  0xeb   :  { %v903_v12 = vpop.f32.mrf.mxu0  ;;  %v951_v13 = vpop.f32.mrf.mxu1 }
  0xec   :  { %686 = vst.msk [vmem:[%s1584_s3 + $0x80] sm:$0xff] %vm669_vm2, %v431_v10  ;;  %718 = vst.msk [vmem:[%s1584_s3 + $0x180] sm:$0xff] %vm669_vm2, %v591_v11  ;;  %v446_v14 = vadd.f32 %v903_v12, %v1259_v2  ;;  %v606_v15 = vadd.f32 %v951_v13, %v1259_v2 }
  0xed   :  { %v440_v16 = vpop.f32.mrf.mxu0  ;;  %v600_v17 = vpop.f32.mrf.mxu1 }
  0xee   :  { %689 = vst.msk [vmem:[%s1584_s3 + $0x98] sm:$0xff] %vm669_vm2, %v446_v14  ;;  %721 = vst.msk [vmem:[%s1584_s3 + $0x198] sm:$0xff] %vm669_vm2, %v606_v15  ;;  %v441_v18 = vadd.f32 %v1259_v2, %v440_v16  ;;  %v601_v19 = vadd.f32 %v1259_v2, %v600_v17 }
  0xef   :  { %v906_v20 = vpop.f32.mrf.mxu0  ;;  %v954_v21 = vpop.f32.mrf.mxu1 }
  0xf0   :  { %688 = vst.msk [vmem:[%s1584_s3 + $0x90] sm:$0xff] %vm669_vm2, %v441_v18  ;;  %720 = vst.msk [vmem:[%s1584_s3 + $0x190] sm:$0xff] %vm669_vm2, %v601_v19  ;;  %v456_v22 = vadd.f32 %v906_v20, %v1259_v2  ;;  %v616_v23 = vadd.f32 %v954_v21, %v1259_v2 }
  0xf1   :  { %v450_v24 = vpop.f32.mrf.mxu0  ;;  %v610_v25 = vpop.f32.mrf.mxu1 }
  0xf2   :  { %691 = vst.msk [vmem:[%s1584_s3 + $0xa8] sm:$0xff] %vm669_vm2, %v456_v22  ;;  %723 = vst.msk [vmem:[%s1584_s3 + $0x1a8] sm:$0xff] %vm669_vm2, %v616_v23  ;;  %v451_v26 = vadd.f32 %v1259_v2, %v450_v24  ;;  %v611_v27 = vadd.f32 %v1259_v2, %v610_v25 }
  0xf3   :  { %v909_v28 = vpop.f32.mrf.mxu0  ;;  %v957_v29 = vpop.f32.mrf.mxu1 }
  0xf4   :  { %690 = vst.msk [vmem:[%s1584_s3 + $0xa0] sm:$0xff] %vm669_vm2, %v451_v26  ;;  %722 = vst.msk [vmem:[%s1584_s3 + $0x1a0] sm:$0xff] %vm669_vm2, %v611_v27  ;;  %v466_v30 = vadd.f32 %v909_v28, %v1259_v2  ;;  %v626_v31 = vadd.f32 %v957_v29, %v1259_v2 }
  0xf5   :  { %v460_v32 = vpop.f32.mrf.mxu0  ;;  %v620_v33 = vpop.f32.mrf.mxu1 }
  0xf6   :  { %693 = vst.msk [vmem:[%s1584_s3 + $0xb8] sm:$0xff] %vm669_vm2, %v466_v30  ;;  %725 = vst.msk [vmem:[%s1584_s3 + $0x1b8] sm:$0xff] %vm669_vm2, %v626_v31  ;;  %v461_v34 = vadd.f32 %v1259_v2, %v460_v32  ;;  %v621_v35 = vadd.f32 %v1259_v2, %v620_v33 }
  0xf7   :  { %v912_v36 = vpop.f32.mrf.mxu0  ;;  %v960_v37 = vpop.f32.mrf.mxu1 }
  0xf8   :  { %692 = vst.msk [vmem:[%s1584_s3 + $0xb0] sm:$0xff] %vm669_vm2, %v461_v34  ;;  %724 = vst.msk [vmem:[%s1584_s3 + $0x1b0] sm:$0xff] %vm669_vm2, %v621_v35  ;;  %v476_v38 = vadd.f32 %v912_v36, %v1259_v2  ;;  %v636_v39 = vadd.f32 %v960_v37, %v1259_v2 }
  0xf9   :  { %v470_v40 = vpop.f32.mrf.mxu0  ;;  %v630_v41 = vpop.f32.mrf.mxu1 }
  0xfa   :  { %695 = vst.msk [vmem:[%s1584_s3 + $0xc8] sm:$0xff] %vm669_vm2, %v476_v38  ;;  %727 = vst.msk [vmem:[%s1584_s3 + $0x1c8] sm:$0xff] %vm669_vm2, %v636_v39  ;;  %v471_v42 = vadd.f32 %v1259_v2, %v470_v40  ;;  %v631_v43 = vadd.f32 %v1259_v2, %v630_v41 }
  0xfb   :  { %v915_v44 = vpop.f32.mrf.mxu0  ;;  %v963_v45 = vpop.f32.mrf.mxu1 }
  0xfc   :  { %694 = vst.msk [vmem:[%s1584_s3 + $0xc0] sm:$0xff] %vm669_vm2, %v471_v42  ;;  %726 = vst.msk [vmem:[%s1584_s3 + $0x1c0] sm:$0xff] %vm669_vm2, %v631_v43  ;;  %v486_v46 = vadd.f32 %v915_v44, %v1259_v2  ;;  %v646_v47 = vadd.f32 %v963_v45, %v1259_v2 }
  0xfd   :  { %v480_v48 = vpop.f32.mrf.mxu0  ;;  %v640_v49 = vpop.f32.mrf.mxu1 }
  0xfe   :  { %697 = vst.msk [vmem:[%s1584_s3 + $0xd8] sm:$0xff] %vm669_vm2, %v486_v46  ;;  %729 = vst.msk [vmem:[%s1584_s3 + $0x1d8] sm:$0xff] %vm669_vm2, %v646_v47  ;;  %v481_v50 = vadd.f32 %v1259_v2, %v480_v48  ;;  %v641_v51 = vadd.f32 %v1259_v2, %v640_v49 }
  0xff   :  { %v918_v52 = vpop.f32.mrf.mxu0  ;;  %v966_v53 = vpop.f32.mrf.mxu1 }
 0x100   :  { %696 = vst.msk [vmem:[%s1584_s3 + $0xd0] sm:$0xff] %vm669_vm2, %v481_v50  ;;  %728 = vst.msk [vmem:[%s1584_s3 + $0x1d0] sm:$0xff] %vm669_vm2, %v641_v51  ;;  %v496_v54 = vadd.f32 %v918_v52, %v1259_v2  ;;  %v656_v55 = vadd.f32 %v966_v53, %v1259_v2 }
 0x101   :  { %v490_v56 = vpop.f32.mrf.mxu0  ;;  %v650_v57 = vpop.f32.mrf.mxu1 }
 0x102   :  { %699 = vst.msk [vmem:[%s1584_s3 + $0xe8] sm:$0xff] %vm669_vm2, %v496_v54  ;;  %731 = vst.msk [vmem:[%s1584_s3 + $0x1e8] sm:$0xff] %vm669_vm2, %v656_v55  ;;  %v491_v58 = vadd.f32 %v1259_v2, %v490_v56  ;;  %v651_v59 = vadd.f32 %v1259_v2, %v650_v57 }
 0x103   :  { %v921_v60 = vpop.f32.mrf.mxu0  ;;  %v969_v61 = vpop.f32.mrf.mxu1 }
 0x104   :  { %698 = vst.msk [vmem:[%s1584_s3 + $0xe0] sm:$0xff] %vm669_vm2, %v491_v58  ;;  %730 = vst.msk [vmem:[%s1584_s3 + $0x1e0] sm:$0xff] %vm669_vm2, %v651_v59  ;;  %v506_v62 = vadd.f32 %v921_v60, %v1259_v2  ;;  %v666_v63 = vadd.f32 %v969_v61, %v1259_v2 }
 0x105   :  { %v500_v0 = vpop.f32.mrf.mxu0  ;;  %v660_v1 = vpop.f32.mrf.mxu1 }
 0x106   :  { %701 = vst.msk [vmem:[%s1584_s3 + $0xf8] sm:$0xff] %vm669_vm2, %v506_v62  ;;  %733 = vst.msk [vmem:[%s1584_s3 + $0x1f8] sm:$0xff] %vm669_vm2, %v666_v63  ;;  %v501_v3 = vadd.f32 %v1259_v2, %v500_v0  ;;  %v661_v4 = vadd.f32 %v1259_v2, %v660_v1 }
 0x108   :  { %700 = vst.msk [vmem:[%s1584_s3 + $0xf0] sm:$0xff] %vm669_vm2, %v501_v3  ;;  %732 = vst.msk [vmem:[%s1584_s3 + $0x1f0] sm:$0xff] %vm669_vm2, %v661_v4 }

// kernel: single_conv3d_block_dsc.7
= control target key start
LH: loop header
LB: loop body
LE: loop exit
PB: predicated region body
PF: predicated region fallthrough
CT: control target
= control target key end

     0   :  { %s864_s15 = smov 0   ;;  %s1302_s0 = inlined_call_operand.vmem [shape: f32[2,256,8], index: 0, kind: input, shape index: {}]   ;;  %s1303_s1 = inlined_call_operand.vmem [shape: f32[1,8], index: 1, kind: input, shape index: {}]   ;;  %s1304_s2 = inlined_call_operand.vmem [shape: f32[1,8], index: 2, kind: input, shape index: {}]   ;;  %s1305_s3 = inlined_call_operand.vmem [shape: f32[8,8], index: 3, kind: input, shape index: {}]   ;;  %s1306_s4 = inlined_call_operand.vmem [shape: f32[2,256,8], index: 4, kind: output, shape index: {}]  }
   0x1 LB: > { %s788_s16 = sadd.s32 4294967295, %s835_s15   ;;  %p792_p0 = scmp.ge.s32.totalorder %s835_s15, 1  ;;  %s835_s15 = sphi %s864_s15, %s14_s15  }
   0x2   : > { %p162_p1 = scmp.lt.s32.totalorder %s835_s15, 3 }
   0x4   : > { %p163_p2 = pnand %p792_p0, %p162_p1 }
   0x5   : > { %p188_p3 = scmp.lt.s32.totalorder (!%p163_p2), %s788_s16, 1 }
   0x6   : > { %166 = sbr.rel (%p163_p2) target bundleno = 616 (0x268), region = 36 }
   0xb   : > { %v230_v0 = vld [vmem:[%s1305_s3] sm:$0xff]  ;;  %v837_v1 = vmov 0.0   ;;  %vm838_vm0 = vmmov 0   ;;  %s1308_s16 = smov (!%p188_p3, %s788_s16), 1  ;;  %vm231_vm1 = vcmask 64512  }
   0xc   : > { %807 = vmatprep.subr.mxu0 %v837_v1  ;;  %809 = vmatprep.mubr.msk.f32.mxu0 %vm838_vm0, %v837_v1  ;;  %s801_s19 = sshll.u32 %s1308_s16, 8 }
   0xd   : > { %808 = vmatpush3.msra.mxu0 %v230_v0  ;;  %812 = vmatprep.subr.mxu1 %v837_v1  ;;  %s883_s22 = scalar_lea.vmem %s1302_s0, %s801_s19  ;;  %s1213_s29 = scalar_lea.vmem %s1306_s4, %s801_s19 }
   0xe   : > { %813 = vmatpush3.msra.mxu1 %v230_v0  ;;  %814 = vmatprep.mubr.msk.f32.mxu1 %vm838_vm0, %v837_v1  ;;  %v886_v2 = vld [vmem:[%s883_s22] sm:$0xff]  ;;  %v889_v3 = vld [vmem:[%s883_s22 + $0x8] sm:$0xff]  ;;  %v892_v4 = vld [vmem:[%s883_s22 + $0x10] sm:$0xff] }
   0xf   : > { %v895_v5 = vld [vmem:[%s883_s22 + $0x18] sm:$0xff]  ;;  %v232_v6 = vsel %vm231_vm1, %v886_v2, 0.0  ;;  %v233_v7 = vsel %vm231_vm1, %v889_v3, 0.0  ;;  %v235_v8 = vsel %vm231_vm1, %v892_v4, 0.0  ;;  %v904_v9 = vld [vmem:[%s883_s22 + $0x20] sm:$0xff]  ;;  %v909_v12 = vld [vmem:[%s883_s22 + $0x28] sm:$0xff] }
  0x10   : > { %v234_v10 = vadd.f32 %v233_v7, %v232_v6  ;;  %v237_v11 = vsel %vm231_vm1, %v895_v5, 0.0  ;;  %v239_v14 = vsel %vm231_vm1, %v904_v9, 0.0  ;;  %v914_v15 = vld [vmem:[%s883_s22 + $0x30] sm:$0xff]  ;;  %v241_v17 = vsel %vm231_vm1, %v909_v12, 0.0  ;;  %v919_v18 = vld [vmem:[%s883_s22 + $0x38] sm:$0xff]  ;;  %v924_v21 = vld [vmem:[%s883_s22 + $0x40] sm:$0xff] }
  0x11   : > { %v243_v20 = vsel %vm231_vm1, %v914_v15, 0.0  ;;  %v245_v23 = vsel %vm231_vm1, %v919_v18, 0.0  ;;  %v929_v24 = vld [vmem:[%s883_s22 + $0x48] sm:$0xff]  ;;  %v247_v26 = vsel %vm231_vm1, %v924_v21, 0.0  ;;  %v934_v27 = vld [vmem:[%s883_s22 + $0x50] sm:$0xff]  ;;  %v939_v30 = vld [vmem:[%s883_s22 + $0x58] sm:$0xff] }
  0x12   : > { %v236_v13 = vadd.f32 %v235_v8, %v234_v10  ;;  %v249_v29 = vsel %vm231_vm1, %v929_v24, 0.0  ;;  %v251_v32 = vsel %vm231_vm1, %v934_v27, 0.0  ;;  %v944_v33 = vld [vmem:[%s883_s22 + $0x60] sm:$0xff]  ;;  %v253_v35 = vsel %vm231_vm1, %v939_v30, 0.0  ;;  %v949_v36 = vld [vmem:[%s883_s22 + $0x68] sm:$0xff]  ;;  %v954_v39 = vld [vmem:[%s883_s22 + $0x70] sm:$0xff] }
  0x13   : > { %v255_v38 = vsel %vm231_vm1, %v944_v33, 0.0  ;;  %v257_v41 = vsel %vm231_vm1, %v949_v36, 0.0  ;;  %v959_v42 = vld [vmem:[%s883_s22 + $0x78] sm:$0xff]  ;;  %v259_v44 = vsel %vm231_vm1, %v954_v39, 0.0  ;;  %v964_v45 = vld [vmem:[%s883_s22 + $0x80] sm:$0xff]  ;;  %v969_v48 = vld [vmem:[%s883_s22 + $0x88] sm:$0xff] }
  0x14   : > { %v238_v16 = vadd.f32 %v237_v11, %v236_v13  ;;  %v261_v47 = vsel %vm231_vm1, %v959_v42, 0.0  ;;  %v263_v50 = vsel %vm231_vm1, %v964_v45, 0.0  ;;  %v974_v51 = vld [vmem:[%s883_s22 + $0x90] sm:$0xff]  ;;  %v265_v53 = vsel %vm231_vm1, %v969_v48, 0.0  ;;  %v979_v54 = vld [vmem:[%s883_s22 + $0x98] sm:$0xff]  ;;  %v984_v57 = vld [vmem:[%s883_s22 + $0xa0] sm:$0xff] }
  0x15   : > { %v267_v56 = vsel %vm231_vm1, %v974_v51, 0.0  ;;  %v269_v59 = vsel %vm231_vm1, %v979_v54, 0.0  ;;  %v989_v60 = vld [vmem:[%s883_s22 + $0xa8] sm:$0xff]  ;;  %v271_v62 = vsel %vm231_vm1, %v984_v57, 0.0  ;;  %v994_v63 = vld [vmem:[%s883_s22 + $0xb0] sm:$0xff]  ;;  %v999_v6 = vld [vmem:[%s883_s22 + $0xb8] sm:$0xff] }
  0x16   : > { %v240_v19 = vadd.f32 %v239_v14, %v238_v16  ;;  %v273_v1 = vsel %vm231_vm1, %v989_v60, 0.0  ;;  %v275_v8 = vsel %vm231_vm1, %v994_v63, 0.0  ;;  %v1004_v10 = vld [vmem:[%s883_s22 + $0xc0] sm:$0xff]  ;;  %v277_v13 = vsel %vm231_vm1, %v999_v6, 0.0  ;;  %v1009_v14 = vld [vmem:[%s883_s22 + $0xc8] sm:$0xff] }
  0x18   : > { %v242_v22 = vadd.f32 %v241_v17, %v240_v19  ;;  %v279_v17 = vsel %vm231_vm1, %v1004_v10, 0.0  ;;  %v1014_v19 = vld [vmem:[%s883_s22 + $0xd0] sm:$0xff] }
  0x1a   : > { %v244_v25 = vadd.f32 %v243_v20, %v242_v22  ;;  %v281_v22 = vsel %vm231_vm1, %v1009_v14, 0.0 }
  0x1c   : > { %v246_v28 = vadd.f32 %v245_v23, %v244_v25  ;;  %v1019_v23 = vld [vmem:[%s883_s22 + $0xd8] sm:$0xff] }
  0x1e   : > { %v248_v31 = vadd.f32 %v247_v26, %v246_v28  ;;  %v283_v26 = vsel %vm231_vm1, %v1014_v19, 0.0  ;;  %v1024_v28 = vld [vmem:[%s883_s22 + $0xe0] sm:$0xff] }
  0x20   : > { %v250_v34 = vadd.f32 %v249_v29, %v248_v31  ;;  %v285_v31 = vsel %vm231_vm1, %v1019_v23, 0.0 }
  0x22   : > { %v252_v37 = vadd.f32 %v251_v32, %v250_v34  ;;  %v1029_v32 = vld [vmem:[%s883_s22 + $0xe8] sm:$0xff] }
  0x24   : > { %v254_v40 = vadd.f32 %v253_v35, %v252_v37  ;;  %v287_v35 = vsel %vm231_vm1, %v1024_v28, 0.0  ;;  %v1034_v37 = vld [vmem:[%s883_s22 + $0xf0] sm:$0xff] }
  0x26   : > { %v256_v43 = vadd.f32 %v255_v38, %v254_v40  ;;  %v289_v40 = vsel %vm231_vm1, %v1029_v32, 0.0 }
  0x28   : > { %v258_v46 = vadd.f32 %v257_v41, %v256_v43  ;;  %v1039_v41 = vld [vmem:[%s883_s22 + $0xf8] sm:$0xff] }
  0x2a   : > { %v260_v49 = vadd.f32 %v259_v44, %v258_v46  ;;  %v291_v44 = vsel %vm231_vm1, %v1034_v37, 0.0 }
  0x2c   : > { %v262_v52 = vadd.f32 %v261_v47, %v260_v49  ;;  %v293_v47 = vsel %vm231_vm1, %v1039_v41, 0.0 }
  0x2e   : > { %v264_v55 = vadd.f32 %v263_v50, %v262_v52 }
  0x30   : > { %v266_v58 = vadd.f32 %v265_v53, %v264_v55 }
  0x32   : > { %v268_v61 = vadd.f32 %v267_v56, %v266_v58 }
  0x34   : > { %v270_v0 = vadd.f32 %v269_v59, %v268_v61  ;;  %v375_v61 = vlaneseq }
  0x36   : > { %v272_v7 = vadd.f32 %v271_v62, %v270_v0  ;;  %v376_v0 = vshrl.u32 %v375_v61, 7 }
  0x38   : > { %v274_v11 = vadd.f32 %v273_v1, %v272_v7 }
  0x3a   : > { %v276_v16 = vadd.f32 %v275_v8, %v274_v11  ;;  %v1048_v8 = vsub.s32 0, %v376_v0 }
  0x3c   : > { %v278_v20 = vadd.f32 %v277_v13, %v276_v16 }
  0x3e   : > { %v280_v25 = vadd.f32 %v279_v17, %v278_v20 }
  0x40   : > { %v282_v29 = vadd.f32 %v281_v22, %v280_v25 }
  0x42   : > { %v284_v34 = vadd.f32 %v283_v26, %v282_v29 }
  0x44   : > { %v286_v38 = vadd.f32 %v285_v31, %v284_v34 }
  0x46   : > { %v288_v43 = vadd.f32 %v287_v35, %v286_v38 }
  0x48   : > { %v290_v46 = vadd.f32 %v289_v40, %v288_v43 }
  0x4a   : > { %v292_v49 = vadd.f32 %v291_v44, %v290_v46 }
  0x4c   : > { %v294_v50 = vadd.f32 %v293_v47, %v292_v49 }
  0x4e   : > { %v295_v52 = vrot.slane %v294_v50, 4 }
  0x50   : > { %v296_v53 = vadd.f32 %v295_v52, %v294_v50 }
  0x52   : > { %v297_v55 = vrot.slane %v296_v53, 2 }
  0x54   : > { %v298_v56 = vadd.f32 %v297_v55, %v296_v53 }
  0x56   : > { %v299_v58 = vrot.slane %v298_v56, 1 }
  0x58   : > { %v300_v59 = vadd.f32 %v299_v58, %v298_v56 }
  0x5a   : > { %810 = vmatmul.mubr.msk.f32.vlgmr.msra.gmra.mxu0 %vm231_vm1, %v300_v59 }
 0x11a   : > { %v370_v62 = vpop.f32.mrf.mxu0 }
 0x11b   : > { %v1046_v7 = vmul.f32 0.0009765625, %v370_v62 }
 0x11c   : > { %v811_v1 = vpop.f32.mrf.mxu0 }
 0x11d   : > { %v1052_v11 = vrot.slane %v1046_v7, %v1048_v8 }
 0x11f   : > { %v379_v13 = vsub.f32 %v886_v2, %v1052_v11  ;;  %v380_v16 = vsub.f32 %v889_v3, %v1052_v11  ;;  %v381_v17 = vsub.f32 %v892_v4, %v1052_v11  ;;  %v382_v20 = vsub.f32 %v895_v5, %v1052_v11 }
 0x120   : > { %v383_v26 = vsub.f32 %v904_v9, %v1052_v11  ;;  %v384_v31 = vsub.f32 %v909_v12, %v1052_v11  ;;  %v385_v43 = vsub.f32 %v914_v15, %v1052_v11  ;;  %v386_v49 = vsub.f32 %v919_v18, %v1052_v11 }
 0x121   : > { %v411_v22 = vmul.f32 %v379_v13, %v379_v13  ;;  %v412_v25 = vmul.f32 %v380_v16, %v380_v16  ;;  %v413_v29 = vmul.f32 %v381_v17, %v381_v17  ;;  %v414_v34 = vmul.f32 %v382_v20, %v382_v20 }
 0x122   : > { %v415_v44 = vmul.f32 %v383_v26, %v383_v26  ;;  %v416_v50 = vmul.f32 %v384_v31, %v384_v31  ;;  %v387_v55 = vsub.f32 %v924_v21, %v1052_v11  ;;  %v417_v56 = vmul.f32 %v385_v43, %v385_v43 }
 0x123   : > { %v443_v35 = vsel %vm231_vm1, %v411_v22, 0.0  ;;  %v444_v38 = vsel %vm231_vm1, %v412_v25, 0.0  ;;  %v446_v46 = vsel %vm231_vm1, %v413_v29, 0.0  ;;  %v448_v52 = vsel %vm231_vm1, %v414_v34, 0.0 }
 0x124   : > { %v445_v40 = vadd.f32 %v444_v38, %v443_v35  ;;  %v450_v58 = vsel %vm231_vm1, %v415_v44, 0.0  ;;  %v388_v61 = vsub.f32 %v929_v24, %v1052_v11  ;;  %v418_v62 = vmul.f32 %v386_v49, %v386_v49 }
 0x125   : > { %v452_v0 = vsel %vm231_vm1, %v416_v50, 0.0  ;;  %v389_v13 = vsub.f32 %v934_v27, %v1052_v11  ;;  %v419_v16 = vmul.f32 %v387_v55, %v387_v55  ;;  %v454_v17 = vsel %vm231_vm1, %v417_v56, 0.0 }
 0x126   : > { %v447_v47 = vadd.f32 %v446_v46, %v445_v40  ;;  %v390_v22 = vsub.f32 %v939_v30, %v1052_v11  ;;  %v420_v25 = vmul.f32 %v388_v61, %v388_v61  ;;  %v456_v26 = vsel %vm231_vm1, %v418_v62, 0.0 }
 0x127   : > { %v391_v31 = vsub.f32 %v944_v33, %v1052_v11  ;;  %v421_v34 = vmul.f32 %v389_v13, %v389_v13  ;;  %v458_v35 = vsel %vm231_vm1, %v419_v16, 0.0  ;;  %v392_v40 = vsub.f32 %v949_v36, %v1052_v11 }
 0x128   : > { %v449_v53 = vadd.f32 %v448_v52, %v447_v47  ;;  %v422_v43 = vmul.f32 %v390_v22, %v390_v22  ;;  %v460_v44 = vsel %vm231_vm1, %v420_v25, 0.0  ;;  %v393_v47 = vsub.f32 %v954_v39, %v1052_v11 }
 0x129   : > { %v423_v49 = vmul.f32 %v391_v31, %v391_v31  ;;  %v462_v50 = vsel %vm231_vm1, %v421_v34, 0.0  ;;  %v424_v55 = vmul.f32 %v392_v40, %v392_v40 }
 0x12a   : > { %v451_v59 = vadd.f32 %v450_v58, %v449_v53  ;;  %v394_v53 = vsub.f32 %v959_v42, %v1052_v11  ;;  %v464_v56 = vsel %vm231_vm1, %v422_v43, 0.0  ;;  %v425_v61 = vmul.f32 %v393_v47, %v393_v47 }
 0x12b   : > { %v466_v62 = vsel %vm231_vm1, %v423_v49, 0.0  ;;  %v468_v16 = vsel %vm231_vm1, %v424_v55, 0.0 }
 0x12c   : > { %v453_v1 = vadd.f32 %v452_v0, %v451_v59  ;;  %v395_v59 = vsub.f32 %v964_v45, %v1052_v11  ;;  %v426_v13 = vmul.f32 %v394_v53, %v394_v53  ;;  %v470_v25 = vsel %vm231_vm1, %v425_v61, 0.0 }
 0x12e   : > { %v455_v20 = vadd.f32 %v454_v17, %v453_v1  ;;  %v396_v1 = vsub.f32 %v969_v48, %v1052_v11  ;;  %v427_v22 = vmul.f32 %v395_v59, %v395_v59  ;;  %v472_v34 = vsel %vm231_vm1, %v426_v13, 0.0 }
 0x130   : > { %v457_v29 = vadd.f32 %v456_v26, %v455_v20  ;;  %v397_v20 = vsub.f32 %v974_v51, %v1052_v11  ;;  %v428_v31 = vmul.f32 %v396_v1, %v396_v1  ;;  %v474_v43 = vsel %vm231_vm1, %v427_v22, 0.0 }
 0x132   : > { %v459_v38 = vadd.f32 %v458_v35, %v457_v29  ;;  %v398_v29 = vsub.f32 %v979_v54, %v1052_v11  ;;  %v429_v40 = vmul.f32 %v397_v20, %v397_v20  ;;  %v476_v49 = vsel %vm231_vm1, %v428_v31, 0.0 }
 0x134   : > { %v461_v46 = vadd.f32 %v460_v44, %v459_v38  ;;  %v399_v38 = vsub.f32 %v984_v57, %v1052_v11  ;;  %v430_v47 = vmul.f32 %v398_v29, %v398_v29  ;;  %v478_v55 = vsel %vm231_vm1, %v429_v40, 0.0 }
 0x136   : > { %v463_v52 = vadd.f32 %v462_v50, %v461_v46  ;;  %v400_v46 = vsub.f32 %v989_v60, %v1052_v11  ;;  %v431_v53 = vmul.f32 %v399_v38, %v399_v38  ;;  %v480_v61 = vsel %vm231_vm1, %v430_v47, 0.0 }
 0x138   : > { %v465_v58 = vadd.f32 %v464_v56, %v463_v52  ;;  %v401_v52 = vsub.f32 %v994_v63, %v1052_v11  ;;  %v432_v59 = vmul.f32 %v400_v46, %v400_v46  ;;  %v482_v13 = vsel %vm231_vm1, %v431_v53, 0.0 }
 0x13a   : > { %v467_v0 = vadd.f32 %v466_v62, %v465_v58  ;;  %v402_v58 = vsub.f32 %v999_v6, %v1052_v11  ;;  %v433_v1 = vmul.f32 %v401_v52, %v401_v52  ;;  %v484_v22 = vsel %vm231_vm1, %v432_v59, 0.0 }
 0x13c   : > { %v469_v17 = vadd.f32 %v468_v16, %v467_v0  ;;  %v403_v0 = vsub.f32 %v1004_v10, %v1052_v11  ;;  %v434_v20 = vmul.f32 %v402_v58, %v402_v58  ;;  %v486_v31 = vsel %vm231_vm1, %v433_v1, 0.0 }
 0x13e   : > { %v471_v26 = vadd.f32 %v470_v25, %v469_v17  ;;  %v404_v17 = vsub.f32 %v1009_v14, %v1052_v11  ;;  %v435_v29 = vmul.f32 %v403_v0, %v403_v0  ;;  %v488_v40 = vsel %vm231_vm1, %v434_v20, 0.0 }
 0x140   : > { %v473_v35 = vadd.f32 %v472_v34, %v471_v26  ;;  %v405_v26 = vsub.f32 %v1014_v19, %v1052_v11  ;;  %v436_v38 = vmul.f32 %v404_v17, %v404_v17  ;;  %v490_v47 = vsel %vm231_vm1, %v435_v29, 0.0 }
 0x142   : > { %v475_v44 = vadd.f32 %v474_v43, %v473_v35  ;;  %v406_v35 = vsub.f32 %v1019_v23, %v1052_v11  ;;  %v437_v46 = vmul.f32 %v405_v26, %v405_v26  ;;  %v492_v53 = vsel %vm231_vm1, %v436_v38, 0.0 }
 0x144   : > { %v477_v50 = vadd.f32 %v476_v49, %v475_v44  ;;  %v407_v44 = vsub.f32 %v1024_v28, %v1052_v11  ;;  %v438_v52 = vmul.f32 %v406_v35, %v406_v35  ;;  %v494_v59 = vsel %vm231_vm1, %v437_v46, 0.0 }
 0x146   : > { %v479_v56 = vadd.f32 %v478_v55, %v477_v50  ;;  %v408_v50 = vsub.f32 %v1029_v32, %v1052_v11  ;;  %v439_v58 = vmul.f32 %v407_v44, %v407_v44  ;;  %v496_v1 = vsel %vm231_vm1, %v438_v52, 0.0 }
 0x148   : > { %v481_v62 = vadd.f32 %v480_v61, %v479_v56  ;;  %v409_v56 = vsub.f32 %v1034_v37, %v1052_v11  ;;  %v440_v0 = vmul.f32 %v408_v50, %v408_v50  ;;  %v498_v17 = vsel %vm231_vm1, %v439_v58, 0.0  ;;  %v590_v58 = vld [vmem:[%s1304_s2] sm:$0x1] }
 0x14a   : > { %v483_v16 = vadd.f32 %v482_v13, %v481_v62  ;;  %v410_v62 = vsub.f32 %v1039_v41, %v1052_v11 }
 0x14c   : > { %v485_v25 = vadd.f32 %v484_v22, %v483_v16  ;;  %v441_v16 = vmul.f32 %v409_v56, %v409_v56  ;;  %v442_v22 = vmul.f32 %v410_v62, %v410_v62 }
 0x14e   : > { %v487_v34 = vadd.f32 %v486_v31, %v485_v25  ;;  %v500_v25 = vsel %vm231_vm1, %v440_v0, 0.0  ;;  %v502_v29 = vsel %vm231_vm1, %v441_v16, 0.0 }
 0x150   : > { %v489_v43 = vadd.f32 %v488_v40, %v487_v34  ;;  %v504_v34 = vsel %vm231_vm1, %v442_v22, 0.0 }
 0x152   : > { %v491_v49 = vadd.f32 %v490_v47, %v489_v43 }
 0x154   : > { %v493_v55 = vadd.f32 %v492_v53, %v491_v49  ;;  %v586_v53 = vld [vmem:[%s1303_s1] sm:$0x1] }
 0x156   : > { %v495_v61 = vadd.f32 %v494_v59, %v493_v55 }
 0x158   : > { %v497_v13 = vadd.f32 %v496_v1, %v495_v61 }
 0x15a   : > { %v499_v20 = vadd.f32 %v498_v17, %v497_v13 }
 0x15c   : > { %v501_v26 = vadd.f32 %v500_v25, %v499_v20 }
 0x15e   : > { %v503_v31 = vadd.f32 %v502_v29, %v501_v26 }
 0x160   : > { %v505_v35 = vadd.f32 %v504_v34, %v503_v31 }
 0x162   : > { %v506_v38 = vrot.slane %v505_v35, 4 }
 0x164   : > { %v507_v11 = vadd.f32 %v506_v38, %v505_v35 }
 0x166   : > { %v508_v40 = vrot.slane %v507_v11, 2 }
 0x168   : > { %v509_v43 = vadd.f32 %v508_v40, %v507_v11 }
 0x16a   : > { %v510_v44 = vrot.slane %v509_v43, 1 }
 0x16c   : > { %v511_v46 = vadd.f32 %v510_v44, %v509_v43 }
 0x16e   : > { %815 = vmatmul.mubr.msk.f32.vlgmr.msra.gmra.mxu1 %vm231_vm1, %v511_v46 }
 0x22e   : > { %v581_v47 = vpop.f32.mrf.mxu1 }
 0x22f   : > { %v585_v49 = vmul.f32 0.0009765625, %v581_v47 }
 0x230   : > { %v816_v50 = vpop.f32.mrf.mxu1 }
 0x231   : > { %v587_v52 = vadd.f32 1e-05, %v585_v49 }
 0x233   : > { %827 = vrsqrt.f32 %v587_v52 }
 0x240   : > { %v828_v55 = vpop.eup %827 }
 0x241   : > { %v589_v56 = vmul.f32 %v828_v55, %v586_v53 }
 0x243   : > { %v591_v59 = vmul.f32 %v589_v56, %v1046_v7  ;;  %v597_v61 = vrot.slane %v589_v56, %v1048_v8 }
 0x245   : > { %v592_v62 = vsub.f32 %v590_v58, %v591_v59  ;;  %v599_v0 = vmul.f32 %v597_v61, %v886_v2  ;;  %v600_v1 = vmul.f32 %v597_v61, %v889_v3  ;;  %v601_v13 = vmul.f32 %v597_v61, %v892_v4 }
 0x246   : > { %v602_v16 = vmul.f32 %v597_v61, %v895_v5  ;;  %v603_v17 = vmul.f32 %v597_v61, %v904_v9  ;;  %v604_v20 = vmul.f32 %v597_v61, %v909_v12  ;;  %v605_v22 = vmul.f32 %v597_v61, %v914_v15 }
 0x247   : > { %v606_v25 = vmul.f32 %v597_v61, %v919_v18  ;;  %v607_v7 = vmul.f32 %v597_v61, %v924_v21  ;;  %v608_v26 = vmul.f32 %v597_v61, %v929_v24  ;;  %v609_v2 = vmul.f32 %v597_v61, %v934_v27 }
 0x248   : > { %v610_v3 = vmul.f32 %v597_v61, %v939_v30  ;;  %v611_v4 = vmul.f32 %v597_v61, %v944_v33  ;;  %v612_v5 = vmul.f32 %v597_v61, %v949_v36  ;;  %v613_v9 = vmul.f32 %v597_v61, %v954_v39 }
 0x249   : > { %v614_v12 = vmul.f32 %v597_v61, %v959_v42  ;;  %v615_v15 = vmul.f32 %v597_v61, %v964_v45  ;;  %v616_v18 = vmul.f32 %v597_v61, %v969_v48  ;;  %v617_v21 = vmul.f32 %v597_v61, %v974_v51 }
 0x24a   : > { %v618_v24 = vmul.f32 %v597_v61, %v979_v54  ;;  %v619_v27 = vmul.f32 %v597_v61, %v984_v57  ;;  %v620_v30 = vmul.f32 %v597_v61, %v989_v60  ;;  %v621_v33 = vmul.f32 %v597_v61, %v994_v63 }
 0x24b   : > { %v622_v36 = vmul.f32 %v597_v61, %v999_v6  ;;  %v623_v39 = vmul.f32 %v597_v61, %v1004_v10  ;;  %v624_v42 = vmul.f32 %v597_v61, %v1009_v14  ;;  %v625_v45 = vmul.f32 %v597_v61, %v1014_v19 }
 0x24c   : > { %v626_v48 = vmul.f32 %v597_v61, %v1019_v23  ;;  %v635_v51 = vrot.slane %v592_v62, %v1048_v8  ;;  %v627_v54 = vmul.f32 %v597_v61, %v1024_v28  ;;  %v628_v57 = vmul.f32 %v597_v61, %v1029_v32 }
 0x24d   : > { %v629_v60 = vmul.f32 %v597_v61, %v1034_v37  ;;  %v630_v63 = vmul.f32 %v597_v61, %v1039_v41 }
 0x24e   : > { %v637_v29 = vadd.f32 %v635_v51, %v599_v0  ;;  %v638_v6 = vadd.f32 %v635_v51, %v600_v1  ;;  %v639_v31 = vadd.f32 %v635_v51, %v601_v13  ;;  %v640_v10 = vadd.f32 %v635_v51, %v602_v16 }
 0x24f   : > { %v641_v34 = vadd.f32 %v635_v51, %v603_v17  ;;  %v642_v14 = vadd.f32 %v635_v51, %v604_v20  ;;  %v643_v35 = vadd.f32 %v635_v51, %v605_v22  ;;  %v644_v19 = vadd.f32 %v635_v51, %v606_v25 }
 0x250   : > { %v645_v38 = vadd.f32 %v635_v51, %v607_v7  ;;  %v646_v23 = vadd.f32 %v635_v51, %v608_v26  ;;  %v647_v11 = vadd.f32 %v635_v51, %v609_v2  ;;  %v648_v8 = vadd.f32 %v635_v51, %v610_v3 }
 0x251   : > { %v649_v40 = vadd.f32 %v635_v51, %v611_v4  ;;  %v650_v28 = vadd.f32 %v635_v51, %v612_v5  ;;  %v651_v32 = vadd.f32 %v635_v51, %v613_v9  ;;  %v652_v43 = vadd.f32 %v635_v51, %v614_v12 }
 0x252   : > { %v653_v37 = vadd.f32 %v635_v51, %v615_v15  ;;  %v654_v44 = vadd.f32 %v635_v51, %v616_v18  ;;  %v655_v41 = vadd.f32 %v635_v51, %v617_v21  ;;  %v656_v46 = vadd.f32 %v635_v51, %v618_v24 }
 0x253   : > { %v1192_v47 = vadd.f32 %v635_v51, %v619_v27  ;;  %v1194_v49 = vadd.f32 %v635_v51, %v620_v30  ;;  %v1196_v50 = vadd.f32 %v635_v51, %v621_v33  ;;  %v1198_v52 = vadd.f32 %v635_v51, %v622_v36 }
 0x254   : > { %v1200_v53 = vadd.f32 %v635_v51, %v623_v39  ;;  %v1202_v55 = vadd.f32 %v635_v51, %v624_v42  ;;  %v1204_v56 = vadd.f32 %v635_v51, %v625_v45  ;;  %v1206_v58 = vadd.f32 %v635_v51, %v626_v48 }
 0x255   : > { %v1215_v59 = vadd.f32 %v635_v51, %v627_v54  ;;  %v1217_v61 = vadd.f32 %v635_v51, %v628_v57  ;;  %v1219_v62 = vadd.f32 %v635_v51, %v629_v60  ;;  %v1221_v0 = vadd.f32 %v635_v51, %v630_v63 }
 0x256   : > { %v669_v1 = vmax.f32 %v637_v29, 0.0  ;;  %v670_v13 = vmax.f32 %v638_v6, 0.0  ;;  %v671_v16 = vmax.f32 %v639_v31, 0.0  ;;  %v672_v17 = vmax.f32 %v640_v10, 0.0 }
 0x257   : > { %v673_v20 = vmax.f32 %v641_v34, 0.0  ;;  %v674_v22 = vmax.f32 %v642_v14, 0.0  ;;  %v675_v25 = vmax.f32 %v643_v35, 0.0  ;;  %v676_v7 = vmax.f32 %v644_v19, 0.0 }
 0x258   : > { %v677_v26 = vmax.f32 %v645_v38, 0.0  ;;  %v678_v2 = vmax.f32 %v646_v23, 0.0  ;;  %v679_v3 = vmax.f32 %v647_v11, 0.0  ;;  %v680_v4 = vmax.f32 %v648_v8, 0.0  ;;  %701 = vst.msk [vmem:[%s1213_s29] sm:$0xff] %vm231_vm1, %v669_v1  ;;  %702 = vst.msk [vmem:[%s1213_s29 + $0x8] sm:$0xff] %vm231_vm1, %v670_v13 }
 0x259   : > { %703 = vst.msk [vmem:[%s1213_s29 + $0x10] sm:$0xff] %vm231_vm1, %v671_v16  ;;  %704 = vst.msk [vmem:[%s1213_s29 + $0x18] sm:$0xff] %vm231_vm1, %v672_v17  ;;  %v681_v5 = vmax.f32 %v649_v40, 0.0  ;;  %v682_v9 = vmax.f32 %v650_v28, 0.0  ;;  %v683_v12 = vmax.f32 %v651_v32, 0.0  ;;  %v684_v15 = vmax.f32 %v652_v43, 0.0 }
 0x25a   : > { %705 = vst.msk [vmem:[%s1213_s29 + $0x20] sm:$0xff] %vm231_vm1, %v673_v20  ;;  %706 = vst.msk [vmem:[%s1213_s29 + $0x28] sm:$0xff] %vm231_vm1, %v674_v22  ;;  %v685_v18 = vmax.f32 %v653_v37, 0.0  ;;  %v686_v21 = vmax.f32 %v654_v44, 0.0  ;;  %v687_v24 = vmax.f32 %v655_v41, 0.0  ;;  %v688_v27 = vmax.f32 %v656_v46, 0.0 }
 0x25b   : > { %707 = vst.msk [vmem:[%s1213_s29 + $0x30] sm:$0xff] %vm231_vm1, %v675_v25  ;;  %708 = vst.msk [vmem:[%s1213_s29 + $0x38] sm:$0xff] %vm231_vm1, %v676_v7  ;;  %v689_v30 = vmax.f32 %v1192_v47, 0.0  ;;  %v690_v33 = vmax.f32 %v1194_v49, 0.0  ;;  %v691_v36 = vmax.f32 %v1196_v50, 0.0  ;;  %v692_v39 = vmax.f32 %v1198_v52, 0.0 }
 0x25c   : > { %709 = vst.msk [vmem:[%s1213_s29 + $0x40] sm:$0xff] %vm231_vm1, %v677_v26  ;;  %710 = vst.msk [vmem:[%s1213_s29 + $0x48] sm:$0xff] %vm231_vm1, %v678_v2  ;;  %v693_v42 = vmax.f32 %v1200_v53, 0.0  ;;  %v694_v45 = vmax.f32 %v1202_v55, 0.0  ;;  %v695_v48 = vmax.f32 %v1204_v56, 0.0  ;;  %v696_v51 = vmax.f32 %v1206_v58, 0.0 }
 0x25d   : > { %711 = vst.msk [vmem:[%s1213_s29 + $0x50] sm:$0xff] %vm231_vm1, %v679_v3  ;;  %712 = vst.msk [vmem:[%s1213_s29 + $0x58] sm:$0xff] %vm231_vm1, %v680_v4  ;;  %v697_v54 = vmax.f32 %v1215_v59, 0.0  ;;  %v698_v57 = vmax.f32 %v1217_v61, 0.0  ;;  %v699_v60 = vmax.f32 %v1219_v62, 0.0  ;;  %v700_v63 = vmax.f32 %v1221_v0, 0.0 }
 0x25e   : > { %713 = vst.msk [vmem:[%s1213_s29 + $0x60] sm:$0xff] %vm231_vm1, %v681_v5  ;;  %714 = vst.msk [vmem:[%s1213_s29 + $0x68] sm:$0xff] %vm231_vm1, %v682_v9 }
 0x25f   : > { %715 = vst.msk [vmem:[%s1213_s29 + $0x70] sm:$0xff] %vm231_vm1, %v683_v12  ;;  %716 = vst.msk [vmem:[%s1213_s29 + $0x78] sm:$0xff] %vm231_vm1, %v684_v15 }
 0x260   : > { %717 = vst.msk [vmem:[%s1213_s29 + $0x80] sm:$0xff] %vm231_vm1, %v685_v18  ;;  %718 = vst.msk [vmem:[%s1213_s29 + $0x88] sm:$0xff] %vm231_vm1, %v686_v21 }
 0x261   : > { %719 = vst.msk [vmem:[%s1213_s29 + $0x90] sm:$0xff] %vm231_vm1, %v687_v24  ;;  %720 = vst.msk [vmem:[%s1213_s29 + $0x98] sm:$0xff] %vm231_vm1, %v688_v27 }
 0x262   : > { %721 = vst.msk [vmem:[%s1213_s29 + $0xa0] sm:$0xff] %vm231_vm1, %v689_v30  ;;  %722 = vst.msk [vmem:[%s1213_s29 + $0xa8] sm:$0xff] %vm231_vm1, %v690_v33 }
 0x263   : > { %723 = vst.msk [vmem:[%s1213_s29 + $0xb0] sm:$0xff] %vm231_vm1, %v691_v36  ;;  %724 = vst.msk [vmem:[%s1213_s29 + $0xb8] sm:$0xff] %vm231_vm1, %v692_v39 }
 0x264   : > { %725 = vst.msk [vmem:[%s1213_s29 + $0xc0] sm:$0xff] %vm231_vm1, %v693_v42  ;;  %726 = vst.msk [vmem:[%s1213_s29 + $0xc8] sm:$0xff] %vm231_vm1, %v694_v45 }
 0x265   : > { %727 = vst.msk [vmem:[%s1213_s29 + $0xd0] sm:$0xff] %vm231_vm1, %v695_v48  ;;  %728 = vst.msk [vmem:[%s1213_s29 + $0xd8] sm:$0xff] %vm231_vm1, %v696_v51 }
 0x266   : > { %729 = vst.msk [vmem:[%s1213_s29 + $0xe0] sm:$0xff] %vm231_vm1, %v697_v54  ;;  %730 = vst.msk [vmem:[%s1213_s29 + $0xe8] sm:$0xff] %vm231_vm1, %v698_v57 }
 0x267   : > { %731 = vst.msk [vmem:[%s1213_s29 + $0xf0] sm:$0xff] %vm231_vm1, %v699_v60  ;;  %732 = vst.msk [vmem:[%s1213_s29 + $0xf8] sm:$0xff] %vm231_vm1, %v700_v63 }
 0x268 PF: > { %s14_s15 = sadd.s32 1, %s835_s15  }
 0x269   : > { %p11_p4 = scmp.ge.s32.totalorder %s14_s15, 4  }
 0x26b   :  { %13 = sbr.rel (!%p11_p4) target bundleno = 1 (0x1), region = 66 }

</bundles_post_ra>
